<compile_context>
chip_gen: v7x
topology: tpu7x:2x2x1
jax: 0.10.0
libtpu: 0.0.40
codegen_flags: <defaults>
</compile_context>

<pallas_src>
import numpy as np
import jax
import jax.numpy as jnp
from jax.experimental import pallas as pl
from jax.experimental.pallas import tpu as pltpu

jax.config.update("jax_default_matmul_precision", "highest")


# ----------------------------- configuration ---------------------------------
class Config:
    gcn_rnn = True
    gcn_rnn_hidden = 16
    gcn_rnn_layers = 1          # single layer -> inter-layer LSTM dropout is a no-op
    gcn_rnn_dropout = 0.0


CFG = Config()
INPUT_DIM = 24                  # feature dim of gcn_inputs fed to the LSTM
MEM_DIM = 32                    # mem_dim
LAYERS = 2                      # GCN layers
HETE_DEP_NUM = 2
HEAD_DIM = MEM_DIM // LAYERS
RNN_H = CFG.gcn_rnn_hidden
B = 2
T = 16                          # maxlen / padded sequence length
BT = B * T


# ----------------- host-side tree -> adjacency preprocessing -----------------
class Tree:
    def __init__(self):
        self.children = []
        self.idx = -1
        self.dist = -1
        self.phead = 0.0

    def add_child(self, c):
        self.children.append(c)


def head_to_tree(head, tokens, len_, prune, pheads=None):
    head = head[:len_]
    assert -1 in head
    root = None
    assert prune < 0
    nodes = [Tree() for _ in head]
    for i in range(len(nodes)):
        h = head[i] + 1
        if pheads is not None:
            nodes[i].phead = float(pheads[i])
        nodes[i].idx = i
        nodes[i].dist = -1
        if h == 0:
            root = nodes[i]
        else:
            nodes[h - 1].add_child(nodes[i])
    assert root is not None
    return root


def tree_to_adj(sent_len, tree, directed=True, self_loop=False):
    ret = np.zeros((sent_len, sent_len), dtype=np.float32)
    queue = [tree]
    idx = []
    while len(queue) > 0:
        t, queue = queue[0], queue[1:]
        idx += [t.idx]
        for c in t.children:
            ret[t.idx, c.idx] = c.phead if c.phead > 0 else 1
        queue += t.children
    if not directed:
        ret = ret + ret.T
    if self_loop:
        for i in idx:
            ret[i, i] = 1
    return ret


def inputs_to_tree_reps(head, words, maxlen, l, prune, pheads=None):
    trees = [head_to_tree(head[i], None, l[i], prune, pheads=None) for i in range(len(l))]
    adj = [tree_to_adj(maxlen, t, directed=False, self_loop=False).reshape(1, maxlen, maxlen)
           for t in trees]
    return np.concatenate(adj, axis=0)


# ------------------------------- Pallas kernel --------------------------------
def hpgcn_fused_kernel(x_ref, vm_ref, adj_ref,
                       wih_ref, bih_ref, whh_ref,
                       wrnn_ref, brnn_ref,
                       wg0_ref, bg0_ref, wg1_ref, bg1_ref,
                       wout_ref, bout_ref,
                       out_ref,
                       rnn_buf):
    H = RNN_H

    # ---- hoisted input projection: both directions, all gates, one matmul ----
    # rows of x_ref are r = t*B + b (position-major)
    xw_all = (jnp.dot(x_ref[...], wih_ref[...], preferred_element_type=jnp.float32)
              + bih_ref[...])                                    # (BT, 8H)
    whh_bd = whh_ref[...]                                        # (2H, 8H) block-diagonal

    # hoisted lane masks / gate-activation constants (never re-emitted per step)
    lane = jax.lax.broadcasted_iota(jnp.int32, (B, 8 * H), 1)
    fwd_lanes = (lane % (2 * H)) < H                             # fwd half of each gate block
    is_g = (lane >= 4 * H) & (lane < 6 * H)                      # g-gate block -> plain tanh
    gate_half = jnp.where(is_g, 1.0, 0.5)                        # sigmoid via 0.5*tanh(0.5x)+0.5
    gate_off = jnp.where(is_g, 0.0, 0.5)

    # ---- fused bi-directional masked LSTM (packed-sequence semantics) -------
    h = jnp.zeros((B, 2 * H), jnp.float32)                       # [h_fwd | h_bwd]
    c = jnp.zeros((B, 2 * H), jnp.float32)

    for t in range(T):                                           # static unrolled recurrence
        rt = T - 1 - t                                           # position the bwd dir visits
        xw = jnp.where(fwd_lanes,
                       xw_all[t * B:(t + 1) * B, :],
                       xw_all[rt * B:(rt + 1) * B, :])           # (B, 8H)
        gates = jnp.dot(h, whh_bd, preferred_element_type=jnp.float32) + xw
        # one EUP push for all sigmoid+tanh gates
        act = jnp.tanh(gates * gate_half) * gate_half + gate_off
        i_g = act[:, 0 * 2 * H:1 * 2 * H]
        f_g = act[:, 1 * 2 * H:2 * 2 * H]
        g_g = act[:, 2 * 2 * H:3 * 2 * H]
        o_g = act[:, 3 * 2 * H:4 * 2 * H]
        c_new = f_g * c + i_g * g_g
        h_new = o_g * jnp.tanh(c_new)

        valid = vm_ref[t] > 0.0                                  # (B, 2H) bool
        h_out = jnp.where(valid, h_new, 0.0)                     # pad_packed zero-pads
        rnn_buf[t * B:(t + 1) * B, 0:H] = h_out[:, 0:H]          # fwd output at position t
        rnn_buf[rt * B:(rt + 1) * B, H:2 * H] = h_out[:, H:2 * H]  # bwd output at position rt
        h = jnp.where(valid, h_new, h)                           # freeze carry when padded
        c = jnp.where(valid, c_new, c)

    # ---- rnn_linear ----------------------------------------------------------
    gcn_in = (jnp.dot(rnn_buf[...], wrnn_ref[...], preferred_element_type=jnp.float32)
              + brnn_ref[...])                                   # (BT, MEM_DIM)

    # ---- GCN layers ----------------------------------------------------------
    adj = adj_ref[...]                                           # (BT, BT) block-structured
    # off-diagonal blocks are zero, so row sums == per-token denom of reference
    inv_denom = 1.0 / (jnp.sum(adj, axis=1, keepdims=True) + 1.0)

    gcn_ws = (wg0_ref, wg1_ref)
    gcn_b2 = (bg0_ref, bg1_ref)
    cur = gcn_in
    outs = []
    for l in range(LAYERS):
        xw_l = jnp.dot(cur, gcn_ws[l][...], preferred_element_type=jnp.float32)
        # W(adj@x) + W(x) + 2b (double bias of the reference), then /denom
        axw = (jnp.dot(adj, xw_l, preferred_element_type=jnp.float32)
               + xw_l + gcn_b2[l][...]) * inv_denom
        g = jnp.maximum(axw, 0.0)                                # relu; gcn_drop == identity
        outs.append(g)
        cur = jnp.concatenate([cur, g], axis=1)

    # ---- output linear -------------------------------------------------------
    gcn_out = jnp.concatenate(outs, axis=1) + gcn_in
    out_ref[...] = (jnp.dot(gcn_out, wout_ref[...], preferred_element_type=jnp.float32)
                    + bout_ref[...]).astype(out_ref.dtype)


def hpgcn_pallas(x_flat, vmask, adj_bd, packed):
    (wih_both, b_both, whh_bd, w_rnn_t, b_rnn,
     wg0, bg0, wg1, bg1, w_out_t, b_out) = packed

    def full(shape):
        return pl.BlockSpec(shape, lambda i: (0,) * len(shape))

    return pl.pallas_call(
        hpgcn_fused_kernel,
        out_shape=jax.ShapeDtypeStruct((BT, MEM_DIM), jnp.float32),
        grid_spec=pltpu.PrefetchScalarGridSpec(
            num_scalar_prefetch=0,
            grid=(1,),                                            # single fused step
            in_specs=[
                full((BT, INPUT_DIM)),                            # x, rows r = t*B + b
                full((T, B, 2 * RNN_H)),                          # validity mask [fwd | bwd]
                full((BT, BT)),                                   # block-diagonal adjacency
                full((INPUT_DIM, 8 * RNN_H)),                     # fused W_ih (both dirs)
                full((1, 8 * RNN_H)),                             # fused LSTM bias
                full((2 * RNN_H, 8 * RNN_H)),                     # block-diagonal W_hh
                full((2 * RNN_H, MEM_DIM)),                       # rnn_linear W^T
                full((1, MEM_DIM)),                               # rnn_linear b
                full((MEM_DIM, HEAD_DIM)),                        # gcn layer 0 W^T
                full((1, HEAD_DIM)),                              # 2*b gcn layer 0
                full((MEM_DIM + HEAD_DIM, HEAD_DIM)),             # gcn layer 1 W^T
                full((1, HEAD_DIM)),                              # 2*b gcn layer 1
                full((MEM_DIM, MEM_DIM)),                         # out linear W^T
                full((1, MEM_DIM)),                               # out linear b
            ],
            out_specs=full((BT, MEM_DIM)),
            scratch_shapes=[
                pltpu.VMEM((BT, 2 * RNN_H), jnp.float32),         # [fwd | bwd] LSTM outputs
            ],
        ),
        compiler_params=pltpu.CompilerParams(dimension_semantics=("arbitrary",)),
    )(x_flat, vmask, adj_bd, wih_both, b_both, whh_bd, w_rnn_t, b_rnn,
      wg0, bg0, wg1, bg1, w_out_t, b_out)


# ------------------------------ parameter setup --------------------------------
def init_params(key):
    ks = jax.random.split(key, 16)
    s_lstm = 1.0 / np.sqrt(RNN_H)
    s_lin = 1.0 / np.sqrt(MEM_DIM)

    def n(k, shape, s):
        return s * jax.random.normal(k, shape, jnp.float32)

    p = {}
    p["lstm_f"] = dict(W_ih=n(ks[0], (4 * RNN_H, INPUT_DIM), s_lstm),
                       W_hh=n(ks[1], (4 * RNN_H, RNN_H), s_lstm),
                       b_ih=n(ks[2], (4 * RNN_H,), s_lstm),
                       b_hh=n(ks[3], (4 * RNN_H,), s_lstm))
    p["lstm_b"] = dict(W_ih=n(ks[4], (4 * RNN_H, INPUT_DIM), s_lstm),
                       W_hh=n(ks[5], (4 * RNN_H, RNN_H), s_lstm),
                       b_ih=n(ks[6], (4 * RNN_H,), s_lstm),
                       b_hh=n(ks[7], (4 * RNN_H,), s_lstm))
    p["w_rnn"] = n(ks[8], (MEM_DIM, 2 * RNN_H), s_lin)           # rnn_linear
    p["b_rnn"] = n(ks[9], (MEM_DIM,), s_lin)
    p["w_gcn"] = [n(jax.random.fold_in(ks[10], l), (HEAD_DIM, MEM_DIM + HEAD_DIM * l), s_lin)
                  for l in range(LAYERS)]                        # hete_dep_module[0]
    p["b_gcn"] = [n(jax.random.fold_in(ks[11], l), (HEAD_DIM,), s_lin) for l in range(LAYERS)]
    p["w_out"] = n(ks[12], (MEM_DIM, MEM_DIM), s_lin)            # linear_outputs[0]
    p["b_out"] = n(ks[13], (MEM_DIM,), s_lin)
    return p


def pack_kernel_params(p):
    H = RNN_H
    # fused gate lane layout: block k in {i,f,g,o}; lanes [k*2H, k*2H+H) = fwd,
    # [k*2H+H, (k+1)*2H) = bwd.
    wih_f_t = p["lstm_f"]["W_ih"].T                               # (IN, 4H) cols [i|f|g|o]
    wih_b_t = p["lstm_b"]["W_ih"].T
    whh_f_t = p["lstm_f"]["W_hh"].T                               # (H, 4H)
    whh_b_t = p["lstm_b"]["W_hh"].T
    bf = p["lstm_f"]["b_ih"] + p["lstm_f"]["b_hh"]                # (4H,)
    bb = p["lstm_b"]["b_ih"] + p["lstm_b"]["b_hh"]

    wih_both = jnp.zeros((INPUT_DIM, 8 * H), jnp.float32)
    b_both = jnp.zeros((1, 8 * H), jnp.float32)
    whh_bd = jnp.zeros((2 * H, 8 * H), jnp.float32)
    for k in range(4):
        f_lo, f_hi = k * 2 * H, k * 2 * H + H
        b_lo, b_hi = k * 2 * H + H, (k + 1) * 2 * H
        wih_both = wih_both.at[:, f_lo:f_hi].set(wih_f_t[:, k * H:(k + 1) * H])
        wih_both = wih_both.at[:, b_lo:b_hi].set(wih_b_t[:, k * H:(k + 1) * H])
        whh_bd = whh_bd.at[0:H, f_lo:f_hi].set(whh_f_t[:, k * H:(k + 1) * H])
        whh_bd = whh_bd.at[H:2 * H, b_lo:b_hi].set(whh_b_t[:, k * H:(k + 1) * H])
        b_both = b_both.at[0, f_lo:f_hi].set(bf[k * H:(k + 1) * H])
        b_both = b_both.at[0, b_lo:b_hi].set(bb[k * H:(k + 1) * H])

    w_rnn_t = p["w_rnn"].T                                        # (2H, MEM) [fwd rows | bwd rows]
    b_rnn = p["b_rnn"].reshape(1, MEM_DIM)
    wg0 = p["w_gcn"][0].T                                         # (MEM, HEAD)
    wg1 = p["w_gcn"][1].T                                         # (MEM+HEAD, HEAD)
    bg0 = (2.0 * p["b_gcn"][0]).reshape(1, HEAD_DIM)              # folded double bias
    bg1 = (2.0 * p["b_gcn"][1]).reshape(1, HEAD_DIM)
    w_out_t = p["w_out"].T
    b_out = p["b_out"].reshape(1, MEM_DIM)
    return (wih_both, b_both, whh_bd, w_rnn_t, b_rnn, wg0, bg0, wg1, bg1, w_out_t, b_out)


# ------------------------------ full forward -----------------------------------
def hpgcn_forward_wrnn(p, adj, gcn_inputs, masks):
    lens = jnp.sum((masks == 1).astype(jnp.int32), axis=1)        # RNN lengths
    # position-major row order r = t*B + b throughout the kernel
    x_flat = jnp.transpose(gcn_inputs, (1, 0, 2)).reshape(BT, INPUT_DIM)

    t_idx = jnp.arange(T)
    vf = (t_idx[:, None] < lens[None, :]).astype(jnp.float32)             # valid at pos t
    vb = ((T - 1 - t_idx)[:, None] < lens[None, :]).astype(jnp.float32)   # valid at pos T-1-t
    vmask = jnp.concatenate(
        [jnp.broadcast_to(vf[:, :, None], (T, B, RNN_H)),
         jnp.broadcast_to(vb[:, :, None], (T, B, RNN_H))], axis=2)        # (T, B, 2H)

    # block-structured adjacency in the same r = t*B + b ordering
    # (keep per-batch (B,T,T) blocks instead once B*T grows to ~1-2K: VMEM quadratic)
    adj_bd = jnp.zeros((BT, BT), jnp.float32)
    for b in range(B):
        adj_bd = adj_bd.at[b::B, b::B].set(adj[b])

    out_flat = hpgcn_pallas(x_flat, vmask, adj_bd, pack_kernel_params(p))
    out = jnp.transpose(out_flat.reshape(T, B, MEM_DIM), (1, 0, 2))       # (B, T, MEM_DIM)
    return out


# ------------------------- pure-JAX reference (for checking) -------------------
def _sigmoid(x):
    return 1.0 / (1.0 + jnp.exp(-x))


def lstm_direction_ref(x, lens, prm, reverse):
    Bsz, Tlen, _ = x.shape
    H = prm["W_hh"].shape[1]
    Wih_t = prm["W_ih"].T
    Whh_t = prm["W_hh"].T
    b = (prm["b_ih"] + prm["b_hh"])[None, :]
    h = jnp.zeros((Bsz, H), x.dtype)
    c = jnp.zeros((Bsz, H), x.dtype)
    outs = [None] * Tlen
    order = range(Tlen - 1, -1, -1) if reverse else range(Tlen)
    for t in order:
        v = (t < lens).astype(x.dtype)[:, None]
        gates = x[:, t, :] @ Wih_t + h @ Whh_t + b
        i, f, g, o = jnp.split(gates, 4, axis=-1)
        i = _sigmoid(i)
        f = _sigmoid(f)
        g = jnp.tanh(g)
        o = _sigmoid(o)
        c_new = f * c + i * g
        h_new = o * jnp.tanh(c_new)
        outs[t] = h_new * v
        h = v * h_new + (1.0 - v) * h
        c = v * c_new + (1.0 - v) * c
    return jnp.stack(outs, axis=1)                                 # (B, T, H)


def gcn_reference(adj, rnn_out, p):
    gcn_in = rnn_out @ p["w_rnn"].T + p["b_rnn"]
    denom = adj.sum(-1, keepdims=True) + 1.0
    outputs = gcn_in
    cache = [gcn_in]
    outs = []
    for l in range(LAYERS):
        Ax = jnp.einsum("bij,bjd->bid", adj, outputs)
        AxW = Ax @ p["w_gcn"][l].T + p["b_gcn"][l]
        AxW = AxW + outputs @ p["w_gcn"][l].T + p["b_gcn"][l]
        AxW = AxW / denom
        g = jax.nn.relu(AxW)
        cache.append(g)
        outputs = jnp.concatenate(cache, axis=2)
        outs.append(g)
    gcn_outputs = jnp.concatenate(outs, axis=2) + gcn_in
    return gcn_outputs @ p["w_out"].T + p["b_out"]


def reference_forward(p, adj, gcn_inputs, masks):
    lens = jnp.sum((masks == 1).astype(jnp.int32), axis=1)
    fwd = lstm_direction_ref(gcn_inputs, lens, p["lstm_f"], reverse=False)
    bwd = lstm_direction_ref(gcn_inputs, lens, p["lstm_b"], reverse=True)
    rnn_out = jnp.concatenate([fwd, bwd], axis=-1)
    return gcn_reference(adj, rnn_out, p)


# ----------------------------------- main ---------------------------------------
if __name__ == "__main__":
    key = jax.random.PRNGKey(0)
    keys = jax.random.split(key, 10)

    gcn_inputs = jax.random.normal(keys[0], (B, T, INPUT_DIM), jnp.float32)
    masks = jnp.ones((B, T), jnp.int32)                            # 1 == valid token
    masks = masks.at[1, 12:].set(0)                                # one padded sequence

    # heterogeneous dependency heads (0-indexed parent, -1 == root) + pheads
    hete_heads = []
    for j in range(HETE_DEP_NUM):
        hk = jax.random.split(keys[1 + j], T)
        heads = np.zeros((B, T), dtype=np.int64)
        heads[:, 0] = -1
        for i in range(1, T):
            heads[:, i] = np.asarray(jax.random.randint(hk[i], (B,), 0, i))
        pheads = np.asarray(jax.random.uniform(keys[3 + j], (B, T)))
        hete_heads.append((heads, pheads))

    # host-side adjacency construction (valid-token lengths; see fidelity note)
    lens_np = np.asarray(jnp.sum((masks == 1).astype(jnp.int32), axis=1))
    hete_adjs = [inputs_to_tree_reps(h, None, T, lens_np, -1, pheads=ph)
                 for (h, ph) in hete_heads]
    adj_sum = jnp.asarray(sum(hete_adjs), dtype=jnp.float32)       # (B, T, T)

    params = init_params(keys[5])

    out = jax.block_until_ready(hpgcn_forward_wrnn(params, adj_sum, gcn_inputs, masks))

    ref = jax.block_until_ready(reference_forward(params, adj_sum, gcn_inputs, masks))
    if not np.allclose(np.asarray(out), np.asarray(ref), rtol=2e-2, atol=2e-2):
        raise AssertionError(
            "Pallas kernel mismatch, max abs diff = %g"
            % float(np.max(np.abs(np.asarray(out) - np.asarray(ref)))))

    print("KERNEL_OK")
</pallas_src>

<mosaic_0001>
module attributes {stable_mosaic.version = 11 : i64} {
  func.func @hpgcn_fused_kernel(%arg0: i32, %arg1: memref<32x24xf32, #tpu.memory_space<vmem>>, %arg2: memref<16x2x32xf32, #tpu.memory_space<vmem>>, %arg3: memref<32x32xf32, #tpu.memory_space<vmem>>, %arg4: memref<24x128xf32, #tpu.memory_space<vmem>>, %arg5: memref<1x128xf32, #tpu.memory_space<vmem>>, %arg6: memref<32x128xf32, #tpu.memory_space<vmem>>, %arg7: memref<32x32xf32, #tpu.memory_space<vmem>>, %arg8: memref<1x32xf32, #tpu.memory_space<vmem>>, %arg9: memref<32x16xf32, #tpu.memory_space<vmem>>, %arg10: memref<1x16xf32, #tpu.memory_space<vmem>>, %arg11: memref<48x16xf32, #tpu.memory_space<vmem>>, %arg12: memref<1x16xf32, #tpu.memory_space<vmem>>, %arg13: memref<32x32xf32, #tpu.memory_space<vmem>>, %arg14: memref<1x32xf32, #tpu.memory_space<vmem>>, %arg15: memref<32x32xf32, #tpu.memory_space<vmem>>, %arg16: memref<32x32xf32, #tpu.memory_space<vmem>>) attributes {dimension_semantics = [#tpu.dimension_semantics<arbitrary>], iteration_bounds = array<i64: 1>, scalar_prefetch = 0 : i64, scratch_operands = 1 : i64, tpu.core_type = #tpu.core_type<tc>, window_params = [{pipeline_mode = #tpu.pipeline_mode<synchronous>, transform_indices = @transform_0, window_bounds = array<i64: 32, 24>}, {pipeline_mode = #tpu.pipeline_mode<synchronous>, transform_indices = @transform_1, window_bounds = array<i64: 16, 2, 32>}, {pipeline_mode = #tpu.pipeline_mode<synchronous>, transform_indices = @transform_2, window_bounds = array<i64: 32, 32>}, {pipeline_mode = #tpu.pipeline_mode<synchronous>, transform_indices = @transform_3, window_bounds = array<i64: 24, 128>}, {pipeline_mode = #tpu.pipeline_mode<synchronous>, transform_indices = @transform_4, window_bounds = array<i64: 1, 128>}, {pipeline_mode = #tpu.pipeline_mode<synchronous>, transform_indices = @transform_5, window_bounds = array<i64: 32, 128>}, {pipeline_mode = #tpu.pipeline_mode<synchronous>, transform_indices = @transform_6, window_bounds = array<i64: 32, 32>}, {pipeline_mode = #tpu.pipeline_mode<synchronous>, transform_indices = @transform_7, window_bounds = array<i64: 1, 32>}, {pipeline_mode = #tpu.pipeline_mode<synchronous>, transform_indices = @transform_8, window_bounds = array<i64: 32, 16>}, {pipeline_mode = #tpu.pipeline_mode<synchronous>, transform_indices = @transform_9, window_bounds = array<i64: 1, 16>}, {pipeline_mode = #tpu.pipeline_mode<synchronous>, transform_indices = @transform_10, window_bounds = array<i64: 48, 16>}, {pipeline_mode = #tpu.pipeline_mode<synchronous>, transform_indices = @transform_11, window_bounds = array<i64: 1, 16>}, {pipeline_mode = #tpu.pipeline_mode<synchronous>, transform_indices = @transform_12, window_bounds = array<i64: 32, 32>}, {pipeline_mode = #tpu.pipeline_mode<synchronous>, transform_indices = @transform_13, window_bounds = array<i64: 1, 32>}, {pipeline_mode = #tpu.pipeline_mode<synchronous>, transform_indices = @transform_14, window_bounds = array<i64: 32, 32>}]} {
    %c0 = arith.constant 0 : index
    %c0_0 = arith.constant 0 : index
    %0 = vector.load %arg1[%c0, %c0_0] : memref<32x24xf32, #tpu.memory_space<vmem>>, vector<32x24xf32>
    %c0_1 = arith.constant 0 : index
    %c0_2 = arith.constant 0 : index
    %1 = vector.load %arg4[%c0_1, %c0_2] : memref<24x128xf32, #tpu.memory_space<vmem>>, vector<24x128xf32>
    %cst = arith.constant dense<0.000000e+00> : vector<32x128xf32>
    %2 = tpu.matmul %0, %1, %cst {dimension_numbers = #tpu.dot_dimension_numbers<[1], [0], [0], [1], [0, 0, 1, 1], [], []>, precision = #tpu.contract_precision<fp32>} : vector<32x24xf32>, vector<24x128xf32>, vector<32x128xf32> -> vector<32x128xf32>
    %c0_3 = arith.constant 0 : index
    %c0_4 = arith.constant 0 : index
    %3 = vector.load %arg5[%c0_3, %c0_4] : memref<1x128xf32, #tpu.memory_space<vmem>>, vector<1x128xf32>
    %4 = vector.broadcast %3 : vector<1x128xf32> to vector<32x128xf32>
    %5 = arith.addf %2, %4 : vector<32x128xf32>
    %c0_5 = arith.constant 0 : index
    %c0_6 = arith.constant 0 : index
    %6 = vector.load %arg6[%c0_5, %c0_6] : memref<32x128xf32, #tpu.memory_space<vmem>>, vector<32x128xf32>
    %7 = tpu.iota {dimensions = array<i32: 1>} : vector<2x128xi32>
    %c32_i32 = arith.constant 32 : i32
    %c0_i32 = arith.constant 0 : i32
    %8 = arith.cmpi eq, %c32_i32, %c0_i32 : i32
    %c1_i32 = arith.constant 1 : i32
    %9 = arith.select %8, %c1_i32, %c32_i32 : i32
    %10 = vector.broadcast %9 : i32 to vector<2x128xi32>
    %11 = arith.remsi %7, %10 : vector<2x128xi32>
    %c0_i32_7 = arith.constant 0 : i32
    %12 = vector.broadcast %c0_i32_7 : i32 to vector<2x128xi32>
    %13 = arith.cmpi ne, %11, %12 : vector<2x128xi32>
    %c0_i32_8 = arith.constant 0 : i32
    %14 = vector.broadcast %c0_i32_8 : i32 to vector<2x128xi32>
    %15 = arith.cmpi slt, %11, %14 : vector<2x128xi32>
    %c0_i32_9 = arith.constant 0 : i32
    %16 = arith.cmpi slt, %9, %c0_i32_9 : i32
    %17 = vector.broadcast %16 : i1 to vector<2x128xi1>
    %18 = vector.broadcast %17 : vector<2x128xi1> to vector<2x128xi1>
    %19 = arith.xori %15, %18 : vector<2x128xi1>
    %20 = arith.andi %19, %13 : vector<2x128xi1>
    %21 = vector.broadcast %9 : i32 to vector<2x128xi32>
    %22 = arith.addi %11, %21 : vector<2x128xi32>
    %23 = arith.select %20, %22, %11 : vector<2x128xi1>, vector<2x128xi32>
    %c16_i32 = arith.constant 16 : i32
    %24 = vector.broadcast %c16_i32 : i32 to vector<2x128xi32>
    %25 = arith.cmpi slt, %23, %24 : vector<2x128xi32>
    %c64_i32 = arith.constant 64 : i32
    %26 = vector.broadcast %c64_i32 : i32 to vector<2x128xi32>
    %27 = arith.cmpi sge, %7, %26 : vector<2x128xi32>
    %c96_i32 = arith.constant 96 : i32
    %28 = vector.broadcast %c96_i32 : i32 to vector<2x128xi32>
    %29 = arith.cmpi slt, %7, %28 : vector<2x128xi32>
    %30 = arith.andi %27, %29 : vector<2x128xi1>
    %cst_10 = arith.constant 1.000000e+00 : f32
    %cst_11 = arith.constant 5.000000e-01 : f32
    %31 = vector.broadcast %cst_10 : f32 to vector<2x128xf32>
    %32 = vector.broadcast %cst_11 : f32 to vector<2x128xf32>
    %33 = arith.select %30, %31, %32 : vector<2x128xi1>, vector<2x128xf32>
    %cst_12 = arith.constant 0.000000e+00 : f32
    %cst_13 = arith.constant 5.000000e-01 : f32
    %34 = vector.broadcast %cst_12 : f32 to vector<2x128xf32>
    %35 = vector.broadcast %cst_13 : f32 to vector<2x128xf32>
    %36 = arith.select %30, %34, %35 : vector<2x128xi1>, vector<2x128xf32>
    %cst_14 = arith.constant 0.000000e+00 : f32
    %37 = vector.broadcast %cst_14 : f32 to vector<2x32xf32>
    %cst_15 = arith.constant 0.000000e+00 : f32
    %38 = vector.broadcast %cst_15 : f32 to vector<2x32xf32>
    %39 = vector.extract_strided_slice %5 {offsets = [0, 0], sizes = [2, 128], strides = [1, 1]} : vector<32x128xf32> to vector<2x128xf32>
    %40 = vector.extract_strided_slice %5 {offsets = [30, 0], sizes = [2, 128], strides = [1, 1]} : vector<32x128xf32> to vector<2x128xf32>
    %41 = arith.select %25, %39, %40 : vector<2x128xi1>, vector<2x128xf32>
    %cst_16 = arith.constant dense<0.000000e+00> : vector<2x128xf32>
    %42 = tpu.matmul %37, %6, %cst_16 {dimension_numbers = #tpu.dot_dimension_numbers<[1], [0], [0], [1], [0, 0, 1, 1], [], []>, precision = #tpu.contract_precision<fp32>} : vector<2x32xf32>, vector<32x128xf32>, vector<2x128xf32> -> vector<2x128xf32>
    %43 = arith.addf %42, %41 : vector<2x128xf32>
    %44 = arith.mulf %43, %33 : vector<2x128xf32>
    %45 = math.tanh %44 : vector<2x128xf32>
    %46 = arith.mulf %45, %33 : vector<2x128xf32>
    %47 = arith.addf %46, %36 : vector<2x128xf32>
    %48 = vector.extract_strided_slice %47 {offsets = [0, 0], sizes = [2, 32], strides = [1, 1]} : vector<2x128xf32> to vector<2x32xf32>
    %49 = vector.extract_strided_slice %47 {offsets = [0, 32], sizes = [2, 32], strides = [1, 1]} : vector<2x128xf32> to vector<2x32xf32>
    %50 = vector.extract_strided_slice %47 {offsets = [0, 64], sizes = [2, 32], strides = [1, 1]} : vector<2x128xf32> to vector<2x32xf32>
    %51 = vector.extract_strided_slice %47 {offsets = [0, 96], sizes = [2, 32], strides = [1, 1]} : vector<2x128xf32> to vector<2x32xf32>
    %52 = arith.mulf %49, %38 : vector<2x32xf32>
    %53 = arith.mulf %48, %50 : vector<2x32xf32>
    %54 = arith.addf %52, %53 : vector<2x32xf32>
    %55 = math.tanh %54 : vector<2x32xf32>
    %56 = arith.mulf %51, %55 : vector<2x32xf32>
    %c0_17 = arith.constant 0 : index
    %c0_18 = arith.constant 0 : index
    %c0_19 = arith.constant 0 : index
    %57 = vector.load %arg2[%c0_17, %c0_18, %c0_19] : memref<16x2x32xf32, #tpu.memory_space<vmem>>, vector<1x2x32xf32>
    %58 = vector.shape_cast %57 : vector<1x2x32xf32> to vector<2x32xf32>
    %cst_20 = arith.constant 0.000000e+00 : f32
    %59 = vector.broadcast %cst_20 : f32 to vector<2x32xf32>
    %60 = arith.cmpf ogt, %58, %59 : vector<2x32xf32>
    %cst_21 = arith.constant 0.000000e+00 : f32
    %61 = vector.broadcast %cst_21 : f32 to vector<2x32xf32>
    %62 = arith.select %60, %56, %61 : vector<2x32xi1>, vector<2x32xf32>
    %63 = vector.extract_strided_slice %62 {offsets = [0, 0], sizes = [2, 16], strides = [1, 1]} : vector<2x32xf32> to vector<2x16xf32>
    %c0_22 = arith.constant 0 : index
    %c0_23 = arith.constant 0 : index
    %64 = vector.load %arg16[%c0_22, %c0_23] : memref<32x32xf32, #tpu.memory_space<vmem>>, vector<2x16xf32>
    tpu.vector_store %arg16[%c0_22, %c0_23], %63 {strides = array<i32>} : memref<32x32xf32, #tpu.memory_space<vmem>>, vector<2x16xf32>,
    %65 = vector.extract_strided_slice %62 {offsets = [0, 16], sizes = [2, 16], strides = [1, 1]} : vector<2x32xf32> to vector<2x16xf32>
    %c30 = arith.constant 30 : index
    %c16 = arith.constant 16 : index
    %66 = vector.load %arg16[%c30, %c16] : memref<32x32xf32, #tpu.memory_space<vmem>>, vector<2x16xf32>
    tpu.vector_store %arg16[%c30, %c16], %65 {strides = array<i32>} : memref<32x32xf32, #tpu.memory_space<vmem>>, vector<2x16xf32>,
    %67 = arith.select %60, %56, %37 : vector<2x32xi1>, vector<2x32xf32>
    %68 = arith.select %60, %54, %38 : vector<2x32xi1>, vector<2x32xf32>
    %69 = vector.extract_strided_slice %5 {offsets = [2, 0], sizes = [2, 128], strides = [1, 1]} : vector<32x128xf32> to vector<2x128xf32>
    %70 = vector.extract_strided_slice %5 {offsets = [28, 0], sizes = [2, 128], strides = [1, 1]} : vector<32x128xf32> to vector<2x128xf32>
    %71 = arith.select %25, %69, %70 : vector<2x128xi1>, vector<2x128xf32>
    %cst_24 = arith.constant dense<0.000000e+00> : vector<2x128xf32>
    %72 = tpu.matmul %67, %6, %cst_24 {dimension_numbers = #tpu.dot_dimension_numbers<[1], [0], [0], [1], [0, 0, 1, 1], [], []>, precision = #tpu.contract_precision<fp32>} : vector<2x32xf32>, vector<32x128xf32>, vector<2x128xf32> -> vector<2x128xf32>
    %73 = arith.addf %72, %71 : vector<2x128xf32>
    %74 = arith.mulf %73, %33 : vector<2x128xf32>
    %75 = math.tanh %74 : vector<2x128xf32>
    %76 = arith.mulf %75, %33 : vector<2x128xf32>
    %77 = arith.addf %76, %36 : vector<2x128xf32>
    %78 = vector.extract_strided_slice %77 {offsets = [0, 0], sizes = [2, 32], strides = [1, 1]} : vector<2x128xf32> to vector<2x32xf32>
    %79 = vector.extract_strided_slice %77 {offsets = [0, 32], sizes = [2, 32], strides = [1, 1]} : vector<2x128xf32> to vector<2x32xf32>
    %80 = vector.extract_strided_slice %77 {offsets = [0, 64], sizes = [2, 32], strides = [1, 1]} : vector<2x128xf32> to vector<2x32xf32>
    %81 = vector.extract_strided_slice %77 {offsets = [0, 96], sizes = [2, 32], strides = [1, 1]} : vector<2x128xf32> to vector<2x32xf32>
    %82 = arith.mulf %79, %68 : vector<2x32xf32>
    %83 = arith.mulf %78, %80 : vector<2x32xf32>
    %84 = arith.addf %82, %83 : vector<2x32xf32>
    %85 = math.tanh %84 : vector<2x32xf32>
    %86 = arith.mulf %81, %85 : vector<2x32xf32>
    %c1 = arith.constant 1 : index
    %c0_25 = arith.constant 0 : index
    %c0_26 = arith.constant 0 : index
    %87 = vector.load %arg2[%c1, %c0_25, %c0_26] : memref<16x2x32xf32, #tpu.memory_space<vmem>>, vector<1x2x32xf32>
    %88 = vector.shape_cast %87 : vector<1x2x32xf32> to vector<2x32xf32>
    %cst_27 = arith.constant 0.000000e+00 : f32
    %89 = vector.broadcast %cst_27 : f32 to vector<2x32xf32>
    %90 = arith.cmpf ogt, %88, %89 : vector<2x32xf32>
    %cst_28 = arith.constant 0.000000e+00 : f32
    %91 = vector.broadcast %cst_28 : f32 to vector<2x32xf32>
    %92 = arith.select %90, %86, %91 : vector<2x32xi1>, vector<2x32xf32>
    %93 = vector.extract_strided_slice %92 {offsets = [0, 0], sizes = [2, 16], strides = [1, 1]} : vector<2x32xf32> to vector<2x16xf32>
    %c2 = arith.constant 2 : index
    %c0_29 = arith.constant 0 : index
    %94 = vector.load %arg16[%c2, %c0_29] : memref<32x32xf32, #tpu.memory_space<vmem>>, vector<2x16xf32>
    tpu.vector_store %arg16[%c2, %c0_29], %93 {strides = array<i32>} : memref<32x32xf32, #tpu.memory_space<vmem>>, vector<2x16xf32>,
    %95 = vector.extract_strided_slice %92 {offsets = [0, 16], sizes = [2, 16], strides = [1, 1]} : vector<2x32xf32> to vector<2x16xf32>
    %c28 = arith.constant 28 : index
    %c16_30 = arith.constant 16 : index
    %96 = vector.load %arg16[%c28, %c16_30] : memref<32x32xf32, #tpu.memory_space<vmem>>, vector<2x16xf32>
    tpu.vector_store %arg16[%c28, %c16_30], %95 {strides = array<i32>} : memref<32x32xf32, #tpu.memory_space<vmem>>, vector<2x16xf32>,
    %97 = arith.select %90, %86, %67 : vector<2x32xi1>, vector<2x32xf32>
    %98 = arith.select %90, %84, %68 : vector<2x32xi1>, vector<2x32xf32>
    %99 = vector.extract_strided_slice %5 {offsets = [4, 0], sizes = [2, 128], strides = [1, 1]} : vector<32x128xf32> to vector<2x128xf32>
    %100 = vector.extract_strided_slice %5 {offsets = [26, 0], sizes = [2, 128], strides = [1, 1]} : vector<32x128xf32> to vector<2x128xf32>
    %101 = arith.select %25, %99, %100 : vector<2x128xi1>, vector<2x128xf32>
    %cst_31 = arith.constant dense<0.000000e+00> : vector<2x128xf32>
    %102 = tpu.matmul %97, %6, %cst_31 {dimension_numbers = #tpu.dot_dimension_numbers<[1], [0], [0], [1], [0, 0, 1, 1], [], []>, precision = #tpu.contract_precision<fp32>} : vector<2x32xf32>, vector<32x128xf32>, vector<2x128xf32> -> vector<2x128xf32>
    %103 = arith.addf %102, %101 : vector<2x128xf32>
    %104 = arith.mulf %103, %33 : vector<2x128xf32>
    %105 = math.tanh %104 : vector<2x128xf32>
    %106 = arith.mulf %105, %33 : vector<2x128xf32>
    %107 = arith.addf %106, %36 : vector<2x128xf32>
    %108 = vector.extract_strided_slice %107 {offsets = [0, 0], sizes = [2, 32], strides = [1, 1]} : vector<2x128xf32> to vector<2x32xf32>
    %109 = vector.extract_strided_slice %107 {offsets = [0, 32], sizes = [2, 32], strides = [1, 1]} : vector<2x128xf32> to vector<2x32xf32>
    %110 = vector.extract_strided_slice %107 {offsets = [0, 64], sizes = [2, 32], strides = [1, 1]} : vector<2x128xf32> to vector<2x32xf32>
    %111 = vector.extract_strided_slice %107 {offsets = [0, 96], sizes = [2, 32], strides = [1, 1]} : vector<2x128xf32> to vector<2x32xf32>
    %112 = arith.mulf %109, %98 : vector<2x32xf32>
    %113 = arith.mulf %108, %110 : vector<2x32xf32>
    %114 = arith.addf %112, %113 : vector<2x32xf32>
    %115 = math.tanh %114 : vector<2x32xf32>
    %116 = arith.mulf %111, %115 : vector<2x32xf32>
    %c2_32 = arith.constant 2 : index
    %c0_33 = arith.constant 0 : index
    %c0_34 = arith.constant 0 : index
    %117 = vector.load %arg2[%c2_32, %c0_33, %c0_34] : memref<16x2x32xf32, #tpu.memory_space<vmem>>, vector<1x2x32xf32>
    %118 = vector.shape_cast %117 : vector<1x2x32xf32> to vector<2x32xf32>
    %cst_35 = arith.constant 0.000000e+00 : f32
    %119 = vector.broadcast %cst_35 : f32 to vector<2x32xf32>
    %120 = arith.cmpf ogt, %118, %119 : vector<2x32xf32>
    %cst_36 = arith.constant 0.000000e+00 : f32
    %121 = vector.broadcast %cst_36 : f32 to vector<2x32xf32>
    %122 = arith.select %120, %116, %121 : vector<2x32xi1>, vector<2x32xf32>
    %123 = vector.extract_strided_slice %122 {offsets = [0, 0], sizes = [2, 16], strides = [1, 1]} : vector<2x32xf32> to vector<2x16xf32>
    %c4 = arith.constant 4 : index
    %c0_37 = arith.constant 0 : index
    %124 = vector.load %arg16[%c4, %c0_37] : memref<32x32xf32, #tpu.memory_space<vmem>>, vector<2x16xf32>
    tpu.vector_store %arg16[%c4, %c0_37], %123 {strides = array<i32>} : memref<32x32xf32, #tpu.memory_space<vmem>>, vector<2x16xf32>,
    %125 = vector.extract_strided_slice %122 {offsets = [0, 16], sizes = [2, 16], strides = [1, 1]} : vector<2x32xf32> to vector<2x16xf32>
    %c26 = arith.constant 26 : index
    %c16_38 = arith.constant 16 : index
    %126 = vector.load %arg16[%c26, %c16_38] : memref<32x32xf32, #tpu.memory_space<vmem>>, vector<2x16xf32>
    tpu.vector_store %arg16[%c26, %c16_38], %125 {strides = array<i32>} : memref<32x32xf32, #tpu.memory_space<vmem>>, vector<2x16xf32>,
    %127 = arith.select %120, %116, %97 : vector<2x32xi1>, vector<2x32xf32>
    %128 = arith.select %120, %114, %98 : vector<2x32xi1>, vector<2x32xf32>
    %129 = vector.extract_strided_slice %5 {offsets = [6, 0], sizes = [2, 128], strides = [1, 1]} : vector<32x128xf32> to vector<2x128xf32>
    %130 = vector.extract_strided_slice %5 {offsets = [24, 0], sizes = [2, 128], strides = [1, 1]} : vector<32x128xf32> to vector<2x128xf32>
    %131 = arith.select %25, %129, %130 : vector<2x128xi1>, vector<2x128xf32>
    %cst_39 = arith.constant dense<0.000000e+00> : vector<2x128xf32>
    %132 = tpu.matmul %127, %6, %cst_39 {dimension_numbers = #tpu.dot_dimension_numbers<[1], [0], [0], [1], [0, 0, 1, 1], [], []>, precision = #tpu.contract_precision<fp32>} : vector<2x32xf32>, vector<32x128xf32>, vector<2x128xf32> -> vector<2x128xf32>
    %133 = arith.addf %132, %131 : vector<2x128xf32>
    %134 = arith.mulf %133, %33 : vector<2x128xf32>
    %135 = math.tanh %134 : vector<2x128xf32>
    %136 = arith.mulf %135, %33 : vector<2x128xf32>
    %137 = arith.addf %136, %36 : vector<2x128xf32>
    %138 = vector.extract_strided_slice %137 {offsets = [0, 0], sizes = [2, 32], strides = [1, 1]} : vector<2x128xf32> to vector<2x32xf32>
    %139 = vector.extract_strided_slice %137 {offsets = [0, 32], sizes = [2, 32], strides = [1, 1]} : vector<2x128xf32> to vector<2x32xf32>
    %140 = vector.extract_strided_slice %137 {offsets = [0, 64], sizes = [2, 32], strides = [1, 1]} : vector<2x128xf32> to vector<2x32xf32>
    %141 = vector.extract_strided_slice %137 {offsets = [0, 96], sizes = [2, 32], strides = [1, 1]} : vector<2x128xf32> to vector<2x32xf32>
    %142 = arith.mulf %139, %128 : vector<2x32xf32>
    %143 = arith.mulf %138, %140 : vector<2x32xf32>
    %144 = arith.addf %142, %143 : vector<2x32xf32>
    %145 = math.tanh %144 : vector<2x32xf32>
    %146 = arith.mulf %141, %145 : vector<2x32xf32>
    %c3 = arith.constant 3 : index
    %c0_40 = arith.constant 0 : index
    %c0_41 = arith.constant 0 : index
    %147 = vector.load %arg2[%c3, %c0_40, %c0_41] : memref<16x2x32xf32, #tpu.memory_space<vmem>>, vector<1x2x32xf32>
    %148 = vector.shape_cast %147 : vector<1x2x32xf32> to vector<2x32xf32>
    %cst_42 = arith.constant 0.000000e+00 : f32
    %149 = vector.broadcast %cst_42 : f32 to vector<2x32xf32>
    %150 = arith.cmpf ogt, %148, %149 : vector<2x32xf32>
    %cst_43 = arith.constant 0.000000e+00 : f32
    %151 = vector.broadcast %cst_43 : f32 to vector<2x32xf32>
    %152 = arith.select %150, %146, %151 : vector<2x32xi1>, vector<2x32xf32>
    %153 = vector.extract_strided_slice %152 {offsets = [0, 0], sizes = [2, 16], strides = [1, 1]} : vector<2x32xf32> to vector<2x16xf32>
    %c6 = arith.constant 6 : index
    %c0_44 = arith.constant 0 : index
    %154 = vector.load %arg16[%c6, %c0_44] : memref<32x32xf32, #tpu.memory_space<vmem>>, vector<2x16xf32>
    tpu.vector_store %arg16[%c6, %c0_44], %153 {strides = array<i32>} : memref<32x32xf32, #tpu.memory_space<vmem>>, vector<2x16xf32>,
    %155 = vector.extract_strided_slice %152 {offsets = [0, 16], sizes = [2, 16], strides = [1, 1]} : vector<2x32xf32> to vector<2x16xf32>
    %c24 = arith.constant 24 : index
    %c16_45 = arith.constant 16 : index
    %156 = vector.load %arg16[%c24, %c16_45] : memref<32x32xf32, #tpu.memory_space<vmem>>, vector<2x16xf32>
    tpu.vector_store %arg16[%c24, %c16_45], %155 {strides = array<i32>} : memref<32x32xf32, #tpu.memory_space<vmem>>, vector<2x16xf32>,
    %157 = arith.select %150, %146, %127 : vector<2x32xi1>, vector<2x32xf32>
    %158 = arith.select %150, %144, %128 : vector<2x32xi1>, vector<2x32xf32>
    %159 = vector.extract_strided_slice %5 {offsets = [8, 0], sizes = [2, 128], strides = [1, 1]} : vector<32x128xf32> to vector<2x128xf32>
    %160 = vector.extract_strided_slice %5 {offsets = [22, 0], sizes = [2, 128], strides = [1, 1]} : vector<32x128xf32> to vector<2x128xf32>
    %161 = arith.select %25, %159, %160 : vector<2x128xi1>, vector<2x128xf32>
    %cst_46 = arith.constant dense<0.000000e+00> : vector<2x128xf32>
    %162 = tpu.matmul %157, %6, %cst_46 {dimension_numbers = #tpu.dot_dimension_numbers<[1], [0], [0], [1], [0, 0, 1, 1], [], []>, precision = #tpu.contract_precision<fp32>} : vector<2x32xf32>, vector<32x128xf32>, vector<2x128xf32> -> vector<2x128xf32>
    %163 = arith.addf %162, %161 : vector<2x128xf32>
    %164 = arith.mulf %163, %33 : vector<2x128xf32>
    %165 = math.tanh %164 : vector<2x128xf32>
    %166 = arith.mulf %165, %33 : vector<2x128xf32>
    %167 = arith.addf %166, %36 : vector<2x128xf32>
    %168 = vector.extract_strided_slice %167 {offsets = [0, 0], sizes = [2, 32], strides = [1, 1]} : vector<2x128xf32> to vector<2x32xf32>
    %169 = vector.extract_strided_slice %167 {offsets = [0, 32], sizes = [2, 32], strides = [1, 1]} : vector<2x128xf32> to vector<2x32xf32>
    %170 = vector.extract_strided_slice %167 {offsets = [0, 64], sizes = [2, 32], strides = [1, 1]} : vector<2x128xf32> to vector<2x32xf32>
    %171 = vector.extract_strided_slice %167 {offsets = [0, 96], sizes = [2, 32], strides = [1, 1]} : vector<2x128xf32> to vector<2x32xf32>
    %172 = arith.mulf %169, %158 : vector<2x32xf32>
    %173 = arith.mulf %168, %170 : vector<2x32xf32>
    %174 = arith.addf %172, %173 : vector<2x32xf32>
    %175 = math.tanh %174 : vector<2x32xf32>
    %176 = arith.mulf %171, %175 : vector<2x32xf32>
    %c4_47 = arith.constant 4 : index
    %c0_48 = arith.constant 0 : index
    %c0_49 = arith.constant 0 : index
    %177 = vector.load %arg2[%c4_47, %c0_48, %c0_49] : memref<16x2x32xf32, #tpu.memory_space<vmem>>, vector<1x2x32xf32>
    %178 = vector.shape_cast %177 : vector<1x2x32xf32> to vector<2x32xf32>
    %cst_50 = arith.constant 0.000000e+00 : f32
    %179 = vector.broadcast %cst_50 : f32 to vector<2x32xf32>
    %180 = arith.cmpf ogt, %178, %179 : vector<2x32xf32>
    %cst_51 = arith.constant 0.000000e+00 : f32
    %181 = vector.broadcast %cst_51 : f32 to vector<2x32xf32>
    %182 = arith.select %180, %176, %181 : vector<2x32xi1>, vector<2x32xf32>
    %183 = vector.extract_strided_slice %182 {offsets = [0, 0], sizes = [2, 16], strides = [1, 1]} : vector<2x32xf32> to vector<2x16xf32>
    %c8 = arith.constant 8 : index
    %c0_52 = arith.constant 0 : index
    %184 = vector.load %arg16[%c8, %c0_52] : memref<32x32xf32, #tpu.memory_space<vmem>>, vector<2x16xf32>
    tpu.vector_store %arg16[%c8, %c0_52], %183 {strides = array<i32>} : memref<32x32xf32, #tpu.memory_space<vmem>>, vector<2x16xf32>,
    %185 = vector.extract_strided_slice %182 {offsets = [0, 16], sizes = [2, 16], strides = [1, 1]} : vector<2x32xf32> to vector<2x16xf32>
    %c22 = arith.constant 22 : index
    %c16_53 = arith.constant 16 : index
    %186 = vector.load %arg16[%c22, %c16_53] : memref<32x32xf32, #tpu.memory_space<vmem>>, vector<2x16xf32>
    tpu.vector_store %arg16[%c22, %c16_53], %185 {strides = array<i32>} : memref<32x32xf32, #tpu.memory_space<vmem>>, vector<2x16xf32>,
    %187 = arith.select %180, %176, %157 : vector<2x32xi1>, vector<2x32xf32>
    %188 = arith.select %180, %174, %158 : vector<2x32xi1>, vector<2x32xf32>
    %189 = vector.extract_strided_slice %5 {offsets = [10, 0], sizes = [2, 128], strides = [1, 1]} : vector<32x128xf32> to vector<2x128xf32>
    %190 = vector.extract_strided_slice %5 {offsets = [20, 0], sizes = [2, 128], strides = [1, 1]} : vector<32x128xf32> to vector<2x128xf32>
    %191 = arith.select %25, %189, %190 : vector<2x128xi1>, vector<2x128xf32>
    %cst_54 = arith.constant dense<0.000000e+00> : vector<2x128xf32>
    %192 = tpu.matmul %187, %6, %cst_54 {dimension_numbers = #tpu.dot_dimension_numbers<[1], [0], [0], [1], [0, 0, 1, 1], [], []>, precision = #tpu.contract_precision<fp32>} : vector<2x32xf32>, vector<32x128xf32>, vector<2x128xf32> -> vector<2x128xf32>
    %193 = arith.addf %192, %191 : vector<2x128xf32>
    %194 = arith.mulf %193, %33 : vector<2x128xf32>
    %195 = math.tanh %194 : vector<2x128xf32>
    %196 = arith.mulf %195, %33 : vector<2x128xf32>
    %197 = arith.addf %196, %36 : vector<2x128xf32>
    %198 = vector.extract_strided_slice %197 {offsets = [0, 0], sizes = [2, 32], strides = [1, 1]} : vector<2x128xf32> to vector<2x32xf32>
    %199 = vector.extract_strided_slice %197 {offsets = [0, 32], sizes = [2, 32], strides = [1, 1]} : vector<2x128xf32> to vector<2x32xf32>
    %200 = vector.extract_strided_slice %197 {offsets = [0, 64], sizes = [2, 32], strides = [1, 1]} : vector<2x128xf32> to vector<2x32xf32>
    %201 = vector.extract_strided_slice %197 {offsets = [0, 96], sizes = [2, 32], strides = [1, 1]} : vector<2x128xf32> to vector<2x32xf32>
    %202 = arith.mulf %199, %188 : vector<2x32xf32>
    %203 = arith.mulf %198, %200 : vector<2x32xf32>
    %204 = arith.addf %202, %203 : vector<2x32xf32>
    %205 = math.tanh %204 : vector<2x32xf32>
    %206 = arith.mulf %201, %205 : vector<2x32xf32>
    %c5 = arith.constant 5 : index
    %c0_55 = arith.constant 0 : index
    %c0_56 = arith.constant 0 : index
    %207 = vector.load %arg2[%c5, %c0_55, %c0_56] : memref<16x2x32xf32, #tpu.memory_space<vmem>>, vector<1x2x32xf32>
    %208 = vector.shape_cast %207 : vector<1x2x32xf32> to vector<2x32xf32>
    %cst_57 = arith.constant 0.000000e+00 : f32
    %209 = vector.broadcast %cst_57 : f32 to vector<2x32xf32>
    %210 = arith.cmpf ogt, %208, %209 : vector<2x32xf32>
    %cst_58 = arith.constant 0.000000e+00 : f32
    %211 = vector.broadcast %cst_58 : f32 to vector<2x32xf32>
    %212 = arith.select %210, %206, %211 : vector<2x32xi1>, vector<2x32xf32>
    %213 = vector.extract_strided_slice %212 {offsets = [0, 0], sizes = [2, 16], strides = [1, 1]} : vector<2x32xf32> to vector<2x16xf32>
    %c10 = arith.constant 10 : index
    %c0_59 = arith.constant 0 : index
    %214 = vector.load %arg16[%c10, %c0_59] : memref<32x32xf32, #tpu.memory_space<vmem>>, vector<2x16xf32>
    tpu.vector_store %arg16[%c10, %c0_59], %213 {strides = array<i32>} : memref<32x32xf32, #tpu.memory_space<vmem>>, vector<2x16xf32>,
    %215 = vector.extract_strided_slice %212 {offsets = [0, 16], sizes = [2, 16], strides = [1, 1]} : vector<2x32xf32> to vector<2x16xf32>
    %c20 = arith.constant 20 : index
    %c16_60 = arith.constant 16 : index
    %216 = vector.load %arg16[%c20, %c16_60] : memref<32x32xf32, #tpu.memory_space<vmem>>, vector<2x16xf32>
    tpu.vector_store %arg16[%c20, %c16_60], %215 {strides = array<i32>} : memref<32x32xf32, #tpu.memory_space<vmem>>, vector<2x16xf32>,
    %217 = arith.select %210, %206, %187 : vector<2x32xi1>, vector<2x32xf32>
    %218 = arith.select %210, %204, %188 : vector<2x32xi1>, vector<2x32xf32>
    %219 = vector.extract_strided_slice %5 {offsets = [12, 0], sizes = [2, 128], strides = [1, 1]} : vector<32x128xf32> to vector<2x128xf32>
    %220 = vector.extract_strided_slice %5 {offsets = [18, 0], sizes = [2, 128], strides = [1, 1]} : vector<32x128xf32> to vector<2x128xf32>
    %221 = arith.select %25, %219, %220 : vector<2x128xi1>, vector<2x128xf32>
    %cst_61 = arith.constant dense<0.000000e+00> : vector<2x128xf32>
    %222 = tpu.matmul %217, %6, %cst_61 {dimension_numbers = #tpu.dot_dimension_numbers<[1], [0], [0], [1], [0, 0, 1, 1], [], []>, precision = #tpu.contract_precision<fp32>} : vector<2x32xf32>, vector<32x128xf32>, vector<2x128xf32> -> vector<2x128xf32>
    %223 = arith.addf %222, %221 : vector<2x128xf32>
    %224 = arith.mulf %223, %33 : vector<2x128xf32>
    %225 = math.tanh %224 : vector<2x128xf32>
    %226 = arith.mulf %225, %33 : vector<2x128xf32>
    %227 = arith.addf %226, %36 : vector<2x128xf32>
    %228 = vector.extract_strided_slice %227 {offsets = [0, 0], sizes = [2, 32], strides = [1, 1]} : vector<2x128xf32> to vector<2x32xf32>
    %229 = vector.extract_strided_slice %227 {offsets = [0, 32], sizes = [2, 32], strides = [1, 1]} : vector<2x128xf32> to vector<2x32xf32>
    %230 = vector.extract_strided_slice %227 {offsets = [0, 64], sizes = [2, 32], strides = [1, 1]} : vector<2x128xf32> to vector<2x32xf32>
    %231 = vector.extract_strided_slice %227 {offsets = [0, 96], sizes = [2, 32], strides = [1, 1]} : vector<2x128xf32> to vector<2x32xf32>
    %232 = arith.mulf %229, %218 : vector<2x32xf32>
    %233 = arith.mulf %228, %230 : vector<2x32xf32>
    %234 = arith.addf %232, %233 : vector<2x32xf32>
    %235 = math.tanh %234 : vector<2x32xf32>
    %236 = arith.mulf %231, %235 : vector<2x32xf32>
    %c6_62 = arith.constant 6 : index
    %c0_63 = arith.constant 0 : index
    %c0_64 = arith.constant 0 : index
    %237 = vector.load %arg2[%c6_62, %c0_63, %c0_64] : memref<16x2x32xf32, #tpu.memory_space<vmem>>, vector<1x2x32xf32>
    %238 = vector.shape_cast %237 : vector<1x2x32xf32> to vector<2x32xf32>
    %cst_65 = arith.constant 0.000000e+00 : f32
    %239 = vector.broadcast %cst_65 : f32 to vector<2x32xf32>
    %240 = arith.cmpf ogt, %238, %239 : vector<2x32xf32>
    %cst_66 = arith.constant 0.000000e+00 : f32
    %241 = vector.broadcast %cst_66 : f32 to vector<2x32xf32>
    %242 = arith.select %240, %236, %241 : vector<2x32xi1>, vector<2x32xf32>
    %243 = vector.extract_strided_slice %242 {offsets = [0, 0], sizes = [2, 16], strides = [1, 1]} : vector<2x32xf32> to vector<2x16xf32>
    %c12 = arith.constant 12 : index
    %c0_67 = arith.constant 0 : index
    %244 = vector.load %arg16[%c12, %c0_67] : memref<32x32xf32, #tpu.memory_space<vmem>>, vector<2x16xf32>
    tpu.vector_store %arg16[%c12, %c0_67], %243 {strides = array<i32>} : memref<32x32xf32, #tpu.memory_space<vmem>>, vector<2x16xf32>,
    %245 = vector.extract_strided_slice %242 {offsets = [0, 16], sizes = [2, 16], strides = [1, 1]} : vector<2x32xf32> to vector<2x16xf32>
    %c18 = arith.constant 18 : index
    %c16_68 = arith.constant 16 : index
    %246 = vector.load %arg16[%c18, %c16_68] : memref<32x32xf32, #tpu.memory_space<vmem>>, vector<2x16xf32>
    tpu.vector_store %arg16[%c18, %c16_68], %245 {strides = array<i32>} : memref<32x32xf32, #tpu.memory_space<vmem>>, vector<2x16xf32>,
    %247 = arith.select %240, %236, %217 : vector<2x32xi1>, vector<2x32xf32>
    %248 = arith.select %240, %234, %218 : vector<2x32xi1>, vector<2x32xf32>
    %249 = vector.extract_strided_slice %5 {offsets = [14, 0], sizes = [2, 128], strides = [1, 1]} : vector<32x128xf32> to vector<2x128xf32>
    %250 = vector.extract_strided_slice %5 {offsets = [16, 0], sizes = [2, 128], strides = [1, 1]} : vector<32x128xf32> to vector<2x128xf32>
    %251 = arith.select %25, %249, %250 : vector<2x128xi1>, vector<2x128xf32>
    %cst_69 = arith.constant dense<0.000000e+00> : vector<2x128xf32>
    %252 = tpu.matmul %247, %6, %cst_69 {dimension_numbers = #tpu.dot_dimension_numbers<[1], [0], [0], [1], [0, 0, 1, 1], [], []>, precision = #tpu.contract_precision<fp32>} : vector<2x32xf32>, vector<32x128xf32>, vector<2x128xf32> -> vector<2x128xf32>
    %253 = arith.addf %252, %251 : vector<2x128xf32>
    %254 = arith.mulf %253, %33 : vector<2x128xf32>
    %255 = math.tanh %254 : vector<2x128xf32>
    %256 = arith.mulf %255, %33 : vector<2x128xf32>
    %257 = arith.addf %256, %36 : vector<2x128xf32>
    %258 = vector.extract_strided_slice %257 {offsets = [0, 0], sizes = [2, 32], strides = [1, 1]} : vector<2x128xf32> to vector<2x32xf32>
    %259 = vector.extract_strided_slice %257 {offsets = [0, 32], sizes = [2, 32], strides = [1, 1]} : vector<2x128xf32> to vector<2x32xf32>
    %260 = vector.extract_strided_slice %257 {offsets = [0, 64], sizes = [2, 32], strides = [1, 1]} : vector<2x128xf32> to vector<2x32xf32>
    %261 = vector.extract_strided_slice %257 {offsets = [0, 96], sizes = [2, 32], strides = [1, 1]} : vector<2x128xf32> to vector<2x32xf32>
    %262 = arith.mulf %259, %248 : vector<2x32xf32>
    %263 = arith.mulf %258, %260 : vector<2x32xf32>
    %264 = arith.addf %262, %263 : vector<2x32xf32>
    %265 = math.tanh %264 : vector<2x32xf32>
    %266 = arith.mulf %261, %265 : vector<2x32xf32>
    %c7 = arith.constant 7 : index
    %c0_70 = arith.constant 0 : index
    %c0_71 = arith.constant 0 : index
    %267 = vector.load %arg2[%c7, %c0_70, %c0_71] : memref<16x2x32xf32, #tpu.memory_space<vmem>>, vector<1x2x32xf32>
    %268 = vector.shape_cast %267 : vector<1x2x32xf32> to vector<2x32xf32>
    %cst_72 = arith.constant 0.000000e+00 : f32
    %269 = vector.broadcast %cst_72 : f32 to vector<2x32xf32>
    %270 = arith.cmpf ogt, %268, %269 : vector<2x32xf32>
    %cst_73 = arith.constant 0.000000e+00 : f32
    %271 = vector.broadcast %cst_73 : f32 to vector<2x32xf32>
    %272 = arith.select %270, %266, %271 : vector<2x32xi1>, vector<2x32xf32>
    %273 = vector.extract_strided_slice %272 {offsets = [0, 0], sizes = [2, 16], strides = [1, 1]} : vector<2x32xf32> to vector<2x16xf32>
    %c14 = arith.constant 14 : index
    %c0_74 = arith.constant 0 : index
    %274 = vector.load %arg16[%c14, %c0_74] : memref<32x32xf32, #tpu.memory_space<vmem>>, vector<2x16xf32>
    tpu.vector_store %arg16[%c14, %c0_74], %273 {strides = array<i32>} : memref<32x32xf32, #tpu.memory_space<vmem>>, vector<2x16xf32>,
    %275 = vector.extract_strided_slice %272 {offsets = [0, 16], sizes = [2, 16], strides = [1, 1]} : vector<2x32xf32> to vector<2x16xf32>
    %c16_75 = arith.constant 16 : index
    %c16_76 = arith.constant 16 : index
    %276 = vector.load %arg16[%c16_75, %c16_76] : memref<32x32xf32, #tpu.memory_space<vmem>>, vector<2x16xf32>
    tpu.vector_store %arg16[%c16_75, %c16_76], %275 {strides = array<i32>} : memref<32x32xf32, #tpu.memory_space<vmem>>, vector<2x16xf32>,
    %277 = arith.select %270, %266, %247 : vector<2x32xi1>, vector<2x32xf32>
    %278 = arith.select %270, %264, %248 : vector<2x32xi1>, vector<2x32xf32>
    %279 = vector.extract_strided_slice %5 {offsets = [16, 0], sizes = [2, 128], strides = [1, 1]} : vector<32x128xf32> to vector<2x128xf32>
    %280 = vector.extract_strided_slice %5 {offsets = [14, 0], sizes = [2, 128], strides = [1, 1]} : vector<32x128xf32> to vector<2x128xf32>
    %281 = arith.select %25, %279, %280 : vector<2x128xi1>, vector<2x128xf32>
    %cst_77 = arith.constant dense<0.000000e+00> : vector<2x128xf32>
    %282 = tpu.matmul %277, %6, %cst_77 {dimension_numbers = #tpu.dot_dimension_numbers<[1], [0], [0], [1], [0, 0, 1, 1], [], []>, precision = #tpu.contract_precision<fp32>} : vector<2x32xf32>, vector<32x128xf32>, vector<2x128xf32> -> vector<2x128xf32>
    %283 = arith.addf %282, %281 : vector<2x128xf32>
    %284 = arith.mulf %283, %33 : vector<2x128xf32>
    %285 = math.tanh %284 : vector<2x128xf32>
    %286 = arith.mulf %285, %33 : vector<2x128xf32>
    %287 = arith.addf %286, %36 : vector<2x128xf32>
    %288 = vector.extract_strided_slice %287 {offsets = [0, 0], sizes = [2, 32], strides = [1, 1]} : vector<2x128xf32> to vector<2x32xf32>
    %289 = vector.extract_strided_slice %287 {offsets = [0, 32], sizes = [2, 32], strides = [1, 1]} : vector<2x128xf32> to vector<2x32xf32>
    %290 = vector.extract_strided_slice %287 {offsets = [0, 64], sizes = [2, 32], strides = [1, 1]} : vector<2x128xf32> to vector<2x32xf32>
    %291 = vector.extract_strided_slice %287 {offsets = [0, 96], sizes = [2, 32], strides = [1, 1]} : vector<2x128xf32> to vector<2x32xf32>
    %292 = arith.mulf %289, %278 : vector<2x32xf32>
    %293 = arith.mulf %288, %290 : vector<2x32xf32>
    %294 = arith.addf %292, %293 : vector<2x32xf32>
    %295 = math.tanh %294 : vector<2x32xf32>
    %296 = arith.mulf %291, %295 : vector<2x32xf32>
    %c8_78 = arith.constant 8 : index
    %c0_79 = arith.constant 0 : index
    %c0_80 = arith.constant 0 : index
    %297 = vector.load %arg2[%c8_78, %c0_79, %c0_80] : memref<16x2x32xf32, #tpu.memory_space<vmem>>, vector<1x2x32xf32>
    %298 = vector.shape_cast %297 : vector<1x2x32xf32> to vector<2x32xf32>
    %cst_81 = arith.constant 0.000000e+00 : f32
    %299 = vector.broadcast %cst_81 : f32 to vector<2x32xf32>
    %300 = arith.cmpf ogt, %298, %299 : vector<2x32xf32>
    %cst_82 = arith.constant 0.000000e+00 : f32
    %301 = vector.broadcast %cst_82 : f32 to vector<2x32xf32>
    %302 = arith.select %300, %296, %301 : vector<2x32xi1>, vector<2x32xf32>
    %303 = vector.extract_strided_slice %302 {offsets = [0, 0], sizes = [2, 16], strides = [1, 1]} : vector<2x32xf32> to vector<2x16xf32>
    %c16_83 = arith.constant 16 : index
    %c0_84 = arith.constant 0 : index
    %304 = vector.load %arg16[%c16_83, %c0_84] : memref<32x32xf32, #tpu.memory_space<vmem>>, vector<2x16xf32>
    tpu.vector_store %arg16[%c16_83, %c0_84], %303 {strides = array<i32>} : memref<32x32xf32, #tpu.memory_space<vmem>>, vector<2x16xf32>,
    %305 = vector.extract_strided_slice %302 {offsets = [0, 16], sizes = [2, 16], strides = [1, 1]} : vector<2x32xf32> to vector<2x16xf32>
    %c14_85 = arith.constant 14 : index
    %c16_86 = arith.constant 16 : index
    %306 = vector.load %arg16[%c14_85, %c16_86] : memref<32x32xf32, #tpu.memory_space<vmem>>, vector<2x16xf32>
    tpu.vector_store %arg16[%c14_85, %c16_86], %305 {strides = array<i32>} : memref<32x32xf32, #tpu.memory_space<vmem>>, vector<2x16xf32>,
    %307 = arith.select %300, %296, %277 : vector<2x32xi1>, vector<2x32xf32>
    %308 = arith.select %300, %294, %278 : vector<2x32xi1>, vector<2x32xf32>
    %309 = vector.extract_strided_slice %5 {offsets = [18, 0], sizes = [2, 128], strides = [1, 1]} : vector<32x128xf32> to vector<2x128xf32>
    %310 = vector.extract_strided_slice %5 {offsets = [12, 0], sizes = [2, 128], strides = [1, 1]} : vector<32x128xf32> to vector<2x128xf32>
    %311 = arith.select %25, %309, %310 : vector<2x128xi1>, vector<2x128xf32>
    %cst_87 = arith.constant dense<0.000000e+00> : vector<2x128xf32>
    %312 = tpu.matmul %307, %6, %cst_87 {dimension_numbers = #tpu.dot_dimension_numbers<[1], [0], [0], [1], [0, 0, 1, 1], [], []>, precision = #tpu.contract_precision<fp32>} : vector<2x32xf32>, vector<32x128xf32>, vector<2x128xf32> -> vector<2x128xf32>
    %313 = arith.addf %312, %311 : vector<2x128xf32>
    %314 = arith.mulf %313, %33 : vector<2x128xf32>
    %315 = math.tanh %314 : vector<2x128xf32>
    %316 = arith.mulf %315, %33 : vector<2x128xf32>
    %317 = arith.addf %316, %36 : vector<2x128xf32>
    %318 = vector.extract_strided_slice %317 {offsets = [0, 0], sizes = [2, 32], strides = [1, 1]} : vector<2x128xf32> to vector<2x32xf32>
    %319 = vector.extract_strided_slice %317 {offsets = [0, 32], sizes = [2, 32], strides = [1, 1]} : vector<2x128xf32> to vector<2x32xf32>
    %320 = vector.extract_strided_slice %317 {offsets = [0, 64], sizes = [2, 32], strides = [1, 1]} : vector<2x128xf32> to vector<2x32xf32>
    %321 = vector.extract_strided_slice %317 {offsets = [0, 96], sizes = [2, 32], strides = [1, 1]} : vector<2x128xf32> to vector<2x32xf32>
    %322 = arith.mulf %319, %308 : vector<2x32xf32>
    %323 = arith.mulf %318, %320 : vector<2x32xf32>
    %324 = arith.addf %322, %323 : vector<2x32xf32>
    %325 = math.tanh %324 : vector<2x32xf32>
    %326 = arith.mulf %321, %325 : vector<2x32xf32>
    %c9 = arith.constant 9 : index
    %c0_88 = arith.constant 0 : index
    %c0_89 = arith.constant 0 : index
    %327 = vector.load %arg2[%c9, %c0_88, %c0_89] : memref<16x2x32xf32, #tpu.memory_space<vmem>>, vector<1x2x32xf32>
    %328 = vector.shape_cast %327 : vector<1x2x32xf32> to vector<2x32xf32>
    %cst_90 = arith.constant 0.000000e+00 : f32
    %329 = vector.broadcast %cst_90 : f32 to vector<2x32xf32>
    %330 = arith.cmpf ogt, %328, %329 : vector<2x32xf32>
    %cst_91 = arith.constant 0.000000e+00 : f32
    %331 = vector.broadcast %cst_91 : f32 to vector<2x32xf32>
    %332 = arith.select %330, %326, %331 : vector<2x32xi1>, vector<2x32xf32>
    %333 = vector.extract_strided_slice %332 {offsets = [0, 0], sizes = [2, 16], strides = [1, 1]} : vector<2x32xf32> to vector<2x16xf32>
    %c18_92 = arith.constant 18 : index
    %c0_93 = arith.constant 0 : index
    %334 = vector.load %arg16[%c18_92, %c0_93] : memref<32x32xf32, #tpu.memory_space<vmem>>, vector<2x16xf32>
    tpu.vector_store %arg16[%c18_92, %c0_93], %333 {strides = array<i32>} : memref<32x32xf32, #tpu.memory_space<vmem>>, vector<2x16xf32>,
    %335 = vector.extract_strided_slice %332 {offsets = [0, 16], sizes = [2, 16], strides = [1, 1]} : vector<2x32xf32> to vector<2x16xf32>
    %c12_94 = arith.constant 12 : index
    %c16_95 = arith.constant 16 : index
    %336 = vector.load %arg16[%c12_94, %c16_95] : memref<32x32xf32, #tpu.memory_space<vmem>>, vector<2x16xf32>
    tpu.vector_store %arg16[%c12_94, %c16_95], %335 {strides = array<i32>} : memref<32x32xf32, #tpu.memory_space<vmem>>, vector<2x16xf32>,
    %337 = arith.select %330, %326, %307 : vector<2x32xi1>, vector<2x32xf32>
    %338 = arith.select %330, %324, %308 : vector<2x32xi1>, vector<2x32xf32>
    %339 = vector.extract_strided_slice %5 {offsets = [20, 0], sizes = [2, 128], strides = [1, 1]} : vector<32x128xf32> to vector<2x128xf32>
    %340 = vector.extract_strided_slice %5 {offsets = [10, 0], sizes = [2, 128], strides = [1, 1]} : vector<32x128xf32> to vector<2x128xf32>
    %341 = arith.select %25, %339, %340 : vector<2x128xi1>, vector<2x128xf32>
    %cst_96 = arith.constant dense<0.000000e+00> : vector<2x128xf32>
    %342 = tpu.matmul %337, %6, %cst_96 {dimension_numbers = #tpu.dot_dimension_numbers<[1], [0], [0], [1], [0, 0, 1, 1], [], []>, precision = #tpu.contract_precision<fp32>} : vector<2x32xf32>, vector<32x128xf32>, vector<2x128xf32> -> vector<2x128xf32>
    %343 = arith.addf %342, %341 : vector<2x128xf32>
    %344 = arith.mulf %343, %33 : vector<2x128xf32>
    %345 = math.tanh %344 : vector<2x128xf32>
    %346 = arith.mulf %345, %33 : vector<2x128xf32>
    %347 = arith.addf %346, %36 : vector<2x128xf32>
    %348 = vector.extract_strided_slice %347 {offsets = [0, 0], sizes = [2, 32], strides = [1, 1]} : vector<2x128xf32> to vector<2x32xf32>
    %349 = vector.extract_strided_slice %347 {offsets = [0, 32], sizes = [2, 32], strides = [1, 1]} : vector<2x128xf32> to vector<2x32xf32>
    %350 = vector.extract_strided_slice %347 {offsets = [0, 64], sizes = [2, 32], strides = [1, 1]} : vector<2x128xf32> to vector<2x32xf32>
    %351 = vector.extract_strided_slice %347 {offsets = [0, 96], sizes = [2, 32], strides = [1, 1]} : vector<2x128xf32> to vector<2x32xf32>
    %352 = arith.mulf %349, %338 : vector<2x32xf32>
    %353 = arith.mulf %348, %350 : vector<2x32xf32>
    %354 = arith.addf %352, %353 : vector<2x32xf32>
    %355 = math.tanh %354 : vector<2x32xf32>
    %356 = arith.mulf %351, %355 : vector<2x32xf32>
    %c10_97 = arith.constant 10 : index
    %c0_98 = arith.constant 0 : index
    %c0_99 = arith.constant 0 : index
    %357 = vector.load %arg2[%c10_97, %c0_98, %c0_99] : memref<16x2x32xf32, #tpu.memory_space<vmem>>, vector<1x2x32xf32>
    %358 = vector.shape_cast %357 : vector<1x2x32xf32> to vector<2x32xf32>
    %cst_100 = arith.constant 0.000000e+00 : f32
    %359 = vector.broadcast %cst_100 : f32 to vector<2x32xf32>
    %360 = arith.cmpf ogt, %358, %359 : vector<2x32xf32>
    %cst_101 = arith.constant 0.000000e+00 : f32
    %361 = vector.broadcast %cst_101 : f32 to vector<2x32xf32>
    %362 = arith.select %360, %356, %361 : vector<2x32xi1>, vector<2x32xf32>
    %363 = vector.extract_strided_slice %362 {offsets = [0, 0], sizes = [2, 16], strides = [1, 1]} : vector<2x32xf32> to vector<2x16xf32>
    %c20_102 = arith.constant 20 : index
    %c0_103 = arith.constant 0 : index
    %364 = vector.load %arg16[%c20_102, %c0_103] : memref<32x32xf32, #tpu.memory_space<vmem>>, vector<2x16xf32>
    tpu.vector_store %arg16[%c20_102, %c0_103], %363 {strides = array<i32>} : memref<32x32xf32, #tpu.memory_space<vmem>>, vector<2x16xf32>,
    %365 = vector.extract_strided_slice %362 {offsets = [0, 16], sizes = [2, 16], strides = [1, 1]} : vector<2x32xf32> to vector<2x16xf32>
    %c10_104 = arith.constant 10 : index
    %c16_105 = arith.constant 16 : index
    %366 = vector.load %arg16[%c10_104, %c16_105] : memref<32x32xf32, #tpu.memory_space<vmem>>, vector<2x16xf32>
    tpu.vector_store %arg16[%c10_104, %c16_105], %365 {strides = array<i32>} : memref<32x32xf32, #tpu.memory_space<vmem>>, vector<2x16xf32>,
    %367 = arith.select %360, %356, %337 : vector<2x32xi1>, vector<2x32xf32>
    %368 = arith.select %360, %354, %338 : vector<2x32xi1>, vector<2x32xf32>
    %369 = vector.extract_strided_slice %5 {offsets = [22, 0], sizes = [2, 128], strides = [1, 1]} : vector<32x128xf32> to vector<2x128xf32>
    %370 = vector.extract_strided_slice %5 {offsets = [8, 0], sizes = [2, 128], strides = [1, 1]} : vector<32x128xf32> to vector<2x128xf32>
    %371 = arith.select %25, %369, %370 : vector<2x128xi1>, vector<2x128xf32>
    %cst_106 = arith.constant dense<0.000000e+00> : vector<2x128xf32>
    %372 = tpu.matmul %367, %6, %cst_106 {dimension_numbers = #tpu.dot_dimension_numbers<[1], [0], [0], [1], [0, 0, 1, 1], [], []>, precision = #tpu.contract_precision<fp32>} : vector<2x32xf32>, vector<32x128xf32>, vector<2x128xf32> -> vector<2x128xf32>
    %373 = arith.addf %372, %371 : vector<2x128xf32>
    %374 = arith.mulf %373, %33 : vector<2x128xf32>
    %375 = math.tanh %374 : vector<2x128xf32>
    %376 = arith.mulf %375, %33 : vector<2x128xf32>
    %377 = arith.addf %376, %36 : vector<2x128xf32>
    %378 = vector.extract_strided_slice %377 {offsets = [0, 0], sizes = [2, 32], strides = [1, 1]} : vector<2x128xf32> to vector<2x32xf32>
    %379 = vector.extract_strided_slice %377 {offsets = [0, 32], sizes = [2, 32], strides = [1, 1]} : vector<2x128xf32> to vector<2x32xf32>
    %380 = vector.extract_strided_slice %377 {offsets = [0, 64], sizes = [2, 32], strides = [1, 1]} : vector<2x128xf32> to vector<2x32xf32>
    %381 = vector.extract_strided_slice %377 {offsets = [0, 96], sizes = [2, 32], strides = [1, 1]} : vector<2x128xf32> to vector<2x32xf32>
    %382 = arith.mulf %379, %368 : vector<2x32xf32>
    %383 = arith.mulf %378, %380 : vector<2x32xf32>
    %384 = arith.addf %382, %383 : vector<2x32xf32>
    %385 = math.tanh %384 : vector<2x32xf32>
    %386 = arith.mulf %381, %385 : vector<2x32xf32>
    %c11 = arith.constant 11 : index
    %c0_107 = arith.constant 0 : index
    %c0_108 = arith.constant 0 : index
    %387 = vector.load %arg2[%c11, %c0_107, %c0_108] : memref<16x2x32xf32, #tpu.memory_space<vmem>>, vector<1x2x32xf32>
    %388 = vector.shape_cast %387 : vector<1x2x32xf32> to vector<2x32xf32>
    %cst_109 = arith.constant 0.000000e+00 : f32
    %389 = vector.broadcast %cst_109 : f32 to vector<2x32xf32>
    %390 = arith.cmpf ogt, %388, %389 : vector<2x32xf32>
    %cst_110 = arith.constant 0.000000e+00 : f32
    %391 = vector.broadcast %cst_110 : f32 to vector<2x32xf32>
    %392 = arith.select %390, %386, %391 : vector<2x32xi1>, vector<2x32xf32>
    %393 = vector.extract_strided_slice %392 {offsets = [0, 0], sizes = [2, 16], strides = [1, 1]} : vector<2x32xf32> to vector<2x16xf32>
    %c22_111 = arith.constant 22 : index
    %c0_112 = arith.constant 0 : index
    %394 = vector.load %arg16[%c22_111, %c0_112] : memref<32x32xf32, #tpu.memory_space<vmem>>, vector<2x16xf32>
    tpu.vector_store %arg16[%c22_111, %c0_112], %393 {strides = array<i32>} : memref<32x32xf32, #tpu.memory_space<vmem>>, vector<2x16xf32>,
    %395 = vector.extract_strided_slice %392 {offsets = [0, 16], sizes = [2, 16], strides = [1, 1]} : vector<2x32xf32> to vector<2x16xf32>
    %c8_113 = arith.constant 8 : index
    %c16_114 = arith.constant 16 : index
    %396 = vector.load %arg16[%c8_113, %c16_114] : memref<32x32xf32, #tpu.memory_space<vmem>>, vector<2x16xf32>
    tpu.vector_store %arg16[%c8_113, %c16_114], %395 {strides = array<i32>} : memref<32x32xf32, #tpu.memory_space<vmem>>, vector<2x16xf32>,
    %397 = arith.select %390, %386, %367 : vector<2x32xi1>, vector<2x32xf32>
    %398 = arith.select %390, %384, %368 : vector<2x32xi1>, vector<2x32xf32>
    %399 = vector.extract_strided_slice %5 {offsets = [24, 0], sizes = [2, 128], strides = [1, 1]} : vector<32x128xf32> to vector<2x128xf32>
    %400 = vector.extract_strided_slice %5 {offsets = [6, 0], sizes = [2, 128], strides = [1, 1]} : vector<32x128xf32> to vector<2x128xf32>
    %401 = arith.select %25, %399, %400 : vector<2x128xi1>, vector<2x128xf32>
    %cst_115 = arith.constant dense<0.000000e+00> : vector<2x128xf32>
    %402 = tpu.matmul %397, %6, %cst_115 {dimension_numbers = #tpu.dot_dimension_numbers<[1], [0], [0], [1], [0, 0, 1, 1], [], []>, precision = #tpu.contract_precision<fp32>} : vector<2x32xf32>, vector<32x128xf32>, vector<2x128xf32> -> vector<2x128xf32>
    %403 = arith.addf %402, %401 : vector<2x128xf32>
    %404 = arith.mulf %403, %33 : vector<2x128xf32>
    %405 = math.tanh %404 : vector<2x128xf32>
    %406 = arith.mulf %405, %33 : vector<2x128xf32>
    %407 = arith.addf %406, %36 : vector<2x128xf32>
    %408 = vector.extract_strided_slice %407 {offsets = [0, 0], sizes = [2, 32], strides = [1, 1]} : vector<2x128xf32> to vector<2x32xf32>
    %409 = vector.extract_strided_slice %407 {offsets = [0, 32], sizes = [2, 32], strides = [1, 1]} : vector<2x128xf32> to vector<2x32xf32>
    %410 = vector.extract_strided_slice %407 {offsets = [0, 64], sizes = [2, 32], strides = [1, 1]} : vector<2x128xf32> to vector<2x32xf32>
    %411 = vector.extract_strided_slice %407 {offsets = [0, 96], sizes = [2, 32], strides = [1, 1]} : vector<2x128xf32> to vector<2x32xf32>
    %412 = arith.mulf %409, %398 : vector<2x32xf32>
    %413 = arith.mulf %408, %410 : vector<2x32xf32>
    %414 = arith.addf %412, %413 : vector<2x32xf32>
    %415 = math.tanh %414 : vector<2x32xf32>
    %416 = arith.mulf %411, %415 : vector<2x32xf32>
    %c12_116 = arith.constant 12 : index
    %c0_117 = arith.constant 0 : index
    %c0_118 = arith.constant 0 : index
    %417 = vector.load %arg2[%c12_116, %c0_117, %c0_118] : memref<16x2x32xf32, #tpu.memory_space<vmem>>, vector<1x2x32xf32>
    %418 = vector.shape_cast %417 : vector<1x2x32xf32> to vector<2x32xf32>
    %cst_119 = arith.constant 0.000000e+00 : f32
    %419 = vector.broadcast %cst_119 : f32 to vector<2x32xf32>
    %420 = arith.cmpf ogt, %418, %419 : vector<2x32xf32>
    %cst_120 = arith.constant 0.000000e+00 : f32
    %421 = vector.broadcast %cst_120 : f32 to vector<2x32xf32>
    %422 = arith.select %420, %416, %421 : vector<2x32xi1>, vector<2x32xf32>
    %423 = vector.extract_strided_slice %422 {offsets = [0, 0], sizes = [2, 16], strides = [1, 1]} : vector<2x32xf32> to vector<2x16xf32>
    %c24_121 = arith.constant 24 : index
    %c0_122 = arith.constant 0 : index
    %424 = vector.load %arg16[%c24_121, %c0_122] : memref<32x32xf32, #tpu.memory_space<vmem>>, vector<2x16xf32>
    tpu.vector_store %arg16[%c24_121, %c0_122], %423 {strides = array<i32>} : memref<32x32xf32, #tpu.memory_space<vmem>>, vector<2x16xf32>,
    %425 = vector.extract_strided_slice %422 {offsets = [0, 16], sizes = [2, 16], strides = [1, 1]} : vector<2x32xf32> to vector<2x16xf32>
    %c6_123 = arith.constant 6 : index
    %c16_124 = arith.constant 16 : index
    %426 = vector.load %arg16[%c6_123, %c16_124] : memref<32x32xf32, #tpu.memory_space<vmem>>, vector<2x16xf32>
    tpu.vector_store %arg16[%c6_123, %c16_124], %425 {strides = array<i32>} : memref<32x32xf32, #tpu.memory_space<vmem>>, vector<2x16xf32>,
    %427 = arith.select %420, %416, %397 : vector<2x32xi1>, vector<2x32xf32>
    %428 = arith.select %420, %414, %398 : vector<2x32xi1>, vector<2x32xf32>
    %429 = vector.extract_strided_slice %5 {offsets = [26, 0], sizes = [2, 128], strides = [1, 1]} : vector<32x128xf32> to vector<2x128xf32>
    %430 = vector.extract_strided_slice %5 {offsets = [4, 0], sizes = [2, 128], strides = [1, 1]} : vector<32x128xf32> to vector<2x128xf32>
    %431 = arith.select %25, %429, %430 : vector<2x128xi1>, vector<2x128xf32>
    %cst_125 = arith.constant dense<0.000000e+00> : vector<2x128xf32>
    %432 = tpu.matmul %427, %6, %cst_125 {dimension_numbers = #tpu.dot_dimension_numbers<[1], [0], [0], [1], [0, 0, 1, 1], [], []>, precision = #tpu.contract_precision<fp32>} : vector<2x32xf32>, vector<32x128xf32>, vector<2x128xf32> -> vector<2x128xf32>
    %433 = arith.addf %432, %431 : vector<2x128xf32>
    %434 = arith.mulf %433, %33 : vector<2x128xf32>
    %435 = math.tanh %434 : vector<2x128xf32>
    %436 = arith.mulf %435, %33 : vector<2x128xf32>
    %437 = arith.addf %436, %36 : vector<2x128xf32>
    %438 = vector.extract_strided_slice %437 {offsets = [0, 0], sizes = [2, 32], strides = [1, 1]} : vector<2x128xf32> to vector<2x32xf32>
    %439 = vector.extract_strided_slice %437 {offsets = [0, 32], sizes = [2, 32], strides = [1, 1]} : vector<2x128xf32> to vector<2x32xf32>
    %440 = vector.extract_strided_slice %437 {offsets = [0, 64], sizes = [2, 32], strides = [1, 1]} : vector<2x128xf32> to vector<2x32xf32>
    %441 = vector.extract_strided_slice %437 {offsets = [0, 96], sizes = [2, 32], strides = [1, 1]} : vector<2x128xf32> to vector<2x32xf32>
    %442 = arith.mulf %439, %428 : vector<2x32xf32>
    %443 = arith.mulf %438, %440 : vector<2x32xf32>
    %444 = arith.addf %442, %443 : vector<2x32xf32>
    %445 = math.tanh %444 : vector<2x32xf32>
    %446 = arith.mulf %441, %445 : vector<2x32xf32>
    %c13 = arith.constant 13 : index
    %c0_126 = arith.constant 0 : index
    %c0_127 = arith.constant 0 : index
    %447 = vector.load %arg2[%c13, %c0_126, %c0_127] : memref<16x2x32xf32, #tpu.memory_space<vmem>>, vector<1x2x32xf32>
    %448 = vector.shape_cast %447 : vector<1x2x32xf32> to vector<2x32xf32>
    %cst_128 = arith.constant 0.000000e+00 : f32
    %449 = vector.broadcast %cst_128 : f32 to vector<2x32xf32>
    %450 = arith.cmpf ogt, %448, %449 : vector<2x32xf32>
    %cst_129 = arith.constant 0.000000e+00 : f32
    %451 = vector.broadcast %cst_129 : f32 to vector<2x32xf32>
    %452 = arith.select %450, %446, %451 : vector<2x32xi1>, vector<2x32xf32>
    %453 = vector.extract_strided_slice %452 {offsets = [0, 0], sizes = [2, 16], strides = [1, 1]} : vector<2x32xf32> to vector<2x16xf32>
    %c26_130 = arith.constant 26 : index
    %c0_131 = arith.constant 0 : index
    %454 = vector.load %arg16[%c26_130, %c0_131] : memref<32x32xf32, #tpu.memory_space<vmem>>, vector<2x16xf32>
    tpu.vector_store %arg16[%c26_130, %c0_131], %453 {strides = array<i32>} : memref<32x32xf32, #tpu.memory_space<vmem>>, vector<2x16xf32>,
    %455 = vector.extract_strided_slice %452 {offsets = [0, 16], sizes = [2, 16], strides = [1, 1]} : vector<2x32xf32> to vector<2x16xf32>
    %c4_132 = arith.constant 4 : index
    %c16_133 = arith.constant 16 : index
    %456 = vector.load %arg16[%c4_132, %c16_133] : memref<32x32xf32, #tpu.memory_space<vmem>>, vector<2x16xf32>
    tpu.vector_store %arg16[%c4_132, %c16_133], %455 {strides = array<i32>} : memref<32x32xf32, #tpu.memory_space<vmem>>, vector<2x16xf32>,
    %457 = arith.select %450, %446, %427 : vector<2x32xi1>, vector<2x32xf32>
    %458 = arith.select %450, %444, %428 : vector<2x32xi1>, vector<2x32xf32>
    %459 = vector.extract_strided_slice %5 {offsets = [28, 0], sizes = [2, 128], strides = [1, 1]} : vector<32x128xf32> to vector<2x128xf32>
    %460 = vector.extract_strided_slice %5 {offsets = [2, 0], sizes = [2, 128], strides = [1, 1]} : vector<32x128xf32> to vector<2x128xf32>
    %461 = arith.select %25, %459, %460 : vector<2x128xi1>, vector<2x128xf32>
    %cst_134 = arith.constant dense<0.000000e+00> : vector<2x128xf32>
    %462 = tpu.matmul %457, %6, %cst_134 {dimension_numbers = #tpu.dot_dimension_numbers<[1], [0], [0], [1], [0, 0, 1, 1], [], []>, precision = #tpu.contract_precision<fp32>} : vector<2x32xf32>, vector<32x128xf32>, vector<2x128xf32> -> vector<2x128xf32>
    %463 = arith.addf %462, %461 : vector<2x128xf32>
    %464 = arith.mulf %463, %33 : vector<2x128xf32>
    %465 = math.tanh %464 : vector<2x128xf32>
    %466 = arith.mulf %465, %33 : vector<2x128xf32>
    %467 = arith.addf %466, %36 : vector<2x128xf32>
    %468 = vector.extract_strided_slice %467 {offsets = [0, 0], sizes = [2, 32], strides = [1, 1]} : vector<2x128xf32> to vector<2x32xf32>
    %469 = vector.extract_strided_slice %467 {offsets = [0, 32], sizes = [2, 32], strides = [1, 1]} : vector<2x128xf32> to vector<2x32xf32>
    %470 = vector.extract_strided_slice %467 {offsets = [0, 64], sizes = [2, 32], strides = [1, 1]} : vector<2x128xf32> to vector<2x32xf32>
    %471 = vector.extract_strided_slice %467 {offsets = [0, 96], sizes = [2, 32], strides = [1, 1]} : vector<2x128xf32> to vector<2x32xf32>
    %472 = arith.mulf %469, %458 : vector<2x32xf32>
    %473 = arith.mulf %468, %470 : vector<2x32xf32>
    %474 = arith.addf %472, %473 : vector<2x32xf32>
    %475 = math.tanh %474 : vector<2x32xf32>
    %476 = arith.mulf %471, %475 : vector<2x32xf32>
    %c14_135 = arith.constant 14 : index
    %c0_136 = arith.constant 0 : index
    %c0_137 = arith.constant 0 : index
    %477 = vector.load %arg2[%c14_135, %c0_136, %c0_137] : memref<16x2x32xf32, #tpu.memory_space<vmem>>, vector<1x2x32xf32>
    %478 = vector.shape_cast %477 : vector<1x2x32xf32> to vector<2x32xf32>
    %cst_138 = arith.constant 0.000000e+00 : f32
    %479 = vector.broadcast %cst_138 : f32 to vector<2x32xf32>
    %480 = arith.cmpf ogt, %478, %479 : vector<2x32xf32>
    %cst_139 = arith.constant 0.000000e+00 : f32
    %481 = vector.broadcast %cst_139 : f32 to vector<2x32xf32>
    %482 = arith.select %480, %476, %481 : vector<2x32xi1>, vector<2x32xf32>
    %483 = vector.extract_strided_slice %482 {offsets = [0, 0], sizes = [2, 16], strides = [1, 1]} : vector<2x32xf32> to vector<2x16xf32>
    %c28_140 = arith.constant 28 : index
    %c0_141 = arith.constant 0 : index
    %484 = vector.load %arg16[%c28_140, %c0_141] : memref<32x32xf32, #tpu.memory_space<vmem>>, vector<2x16xf32>
    tpu.vector_store %arg16[%c28_140, %c0_141], %483 {strides = array<i32>} : memref<32x32xf32, #tpu.memory_space<vmem>>, vector<2x16xf32>,
    %485 = vector.extract_strided_slice %482 {offsets = [0, 16], sizes = [2, 16], strides = [1, 1]} : vector<2x32xf32> to vector<2x16xf32>
    %c2_142 = arith.constant 2 : index
    %c16_143 = arith.constant 16 : index
    %486 = vector.load %arg16[%c2_142, %c16_143] : memref<32x32xf32, #tpu.memory_space<vmem>>, vector<2x16xf32>
    tpu.vector_store %arg16[%c2_142, %c16_143], %485 {strides = array<i32>} : memref<32x32xf32, #tpu.memory_space<vmem>>, vector<2x16xf32>,
    %487 = arith.select %480, %476, %457 : vector<2x32xi1>, vector<2x32xf32>
    %488 = arith.select %480, %474, %458 : vector<2x32xi1>, vector<2x32xf32>
    %489 = vector.extract_strided_slice %5 {offsets = [30, 0], sizes = [2, 128], strides = [1, 1]} : vector<32x128xf32> to vector<2x128xf32>
    %490 = vector.extract_strided_slice %5 {offsets = [0, 0], sizes = [2, 128], strides = [1, 1]} : vector<32x128xf32> to vector<2x128xf32>
    %491 = arith.select %25, %489, %490 : vector<2x128xi1>, vector<2x128xf32>
    %cst_144 = arith.constant dense<0.000000e+00> : vector<2x128xf32>
    %492 = tpu.matmul %487, %6, %cst_144 {dimension_numbers = #tpu.dot_dimension_numbers<[1], [0], [0], [1], [0, 0, 1, 1], [], []>, precision = #tpu.contract_precision<fp32>} : vector<2x32xf32>, vector<32x128xf32>, vector<2x128xf32> -> vector<2x128xf32>
    %493 = arith.addf %492, %491 : vector<2x128xf32>
    %494 = arith.mulf %493, %33 : vector<2x128xf32>
    %495 = math.tanh %494 : vector<2x128xf32>
    %496 = arith.mulf %495, %33 : vector<2x128xf32>
    %497 = arith.addf %496, %36 : vector<2x128xf32>
    %498 = vector.extract_strided_slice %497 {offsets = [0, 0], sizes = [2, 32], strides = [1, 1]} : vector<2x128xf32> to vector<2x32xf32>
    %499 = vector.extract_strided_slice %497 {offsets = [0, 32], sizes = [2, 32], strides = [1, 1]} : vector<2x128xf32> to vector<2x32xf32>
    %500 = vector.extract_strided_slice %497 {offsets = [0, 64], sizes = [2, 32], strides = [1, 1]} : vector<2x128xf32> to vector<2x32xf32>
    %501 = vector.extract_strided_slice %497 {offsets = [0, 96], sizes = [2, 32], strides = [1, 1]} : vector<2x128xf32> to vector<2x32xf32>
    %502 = arith.mulf %499, %488 : vector<2x32xf32>
    %503 = arith.mulf %498, %500 : vector<2x32xf32>
    %504 = arith.addf %502, %503 : vector<2x32xf32>
    %505 = math.tanh %504 : vector<2x32xf32>
    %506 = arith.mulf %501, %505 : vector<2x32xf32>
    %c15 = arith.constant 15 : index
    %c0_145 = arith.constant 0 : index
    %c0_146 = arith.constant 0 : index
    %507 = vector.load %arg2[%c15, %c0_145, %c0_146] : memref<16x2x32xf32, #tpu.memory_space<vmem>>, vector<1x2x32xf32>
    %508 = vector.shape_cast %507 : vector<1x2x32xf32> to vector<2x32xf32>
    %cst_147 = arith.constant 0.000000e+00 : f32
    %509 = vector.broadcast %cst_147 : f32 to vector<2x32xf32>
    %510 = arith.cmpf ogt, %508, %509 : vector<2x32xf32>
    %cst_148 = arith.constant 0.000000e+00 : f32
    %511 = vector.broadcast %cst_148 : f32 to vector<2x32xf32>
    %512 = arith.select %510, %506, %511 : vector<2x32xi1>, vector<2x32xf32>
    %513 = vector.extract_strided_slice %512 {offsets = [0, 0], sizes = [2, 16], strides = [1, 1]} : vector<2x32xf32> to vector<2x16xf32>
    %c30_149 = arith.constant 30 : index
    %c0_150 = arith.constant 0 : index
    %514 = vector.load %arg16[%c30_149, %c0_150] : memref<32x32xf32, #tpu.memory_space<vmem>>, vector<2x16xf32>
    tpu.vector_store %arg16[%c30_149, %c0_150], %513 {strides = array<i32>} : memref<32x32xf32, #tpu.memory_space<vmem>>, vector<2x16xf32>,
    %515 = vector.extract_strided_slice %512 {offsets = [0, 16], sizes = [2, 16], strides = [1, 1]} : vector<2x32xf32> to vector<2x16xf32>
    %c0_151 = arith.constant 0 : index
    %c16_152 = arith.constant 16 : index
    %516 = vector.load %arg16[%c0_151, %c16_152] : memref<32x32xf32, #tpu.memory_space<vmem>>, vector<2x16xf32>
    tpu.vector_store %arg16[%c0_151, %c16_152], %515 {strides = array<i32>} : memref<32x32xf32, #tpu.memory_space<vmem>>, vector<2x16xf32>,
    %c0_153 = arith.constant 0 : index
    %c0_154 = arith.constant 0 : index
    %517 = vector.load %arg16[%c0_153, %c0_154] : memref<32x32xf32, #tpu.memory_space<vmem>>, vector<32x32xf32>
    %c0_155 = arith.constant 0 : index
    %c0_156 = arith.constant 0 : index
    %518 = vector.load %arg7[%c0_155, %c0_156] : memref<32x32xf32, #tpu.memory_space<vmem>>, vector<32x32xf32>
    %cst_157 = arith.constant dense<0.000000e+00> : vector<32x32xf32>
    %519 = tpu.matmul %517, %518, %cst_157 {dimension_numbers = #tpu.dot_dimension_numbers<[1], [0], [0], [1], [0, 0, 1, 1], [], []>, precision = #tpu.contract_precision<fp32>} : vector<32x32xf32>, vector<32x32xf32>, vector<32x32xf32> -> vector<32x32xf32>
    %c0_158 = arith.constant 0 : index
    %c0_159 = arith.constant 0 : index
    %520 = vector.load %arg8[%c0_158, %c0_159] : memref<1x32xf32, #tpu.memory_space<vmem>>, vector<1x32xf32>
    %521 = vector.broadcast %520 : vector<1x32xf32> to vector<32x32xf32>
    %522 = arith.addf %519, %521 : vector<32x32xf32>
    %c0_160 = arith.constant 0 : index
    %c0_161 = arith.constant 0 : index
    %523 = vector.load %arg3[%c0_160, %c0_161] : memref<32x32xf32, #tpu.memory_space<vmem>>, vector<32x32xf32>
    %cst_162 = arith.constant dense<0.000000e+00> : vector<32xf32>
    %524 = vector.multi_reduction <add>, %523, %cst_162 [1] : vector<32x32xf32> to vector<32xf32>
    %525 = vector.shape_cast %524 : vector<32xf32> to vector<32x1xf32>
    %cst_163 = arith.constant 1.000000e+00 : f32
    %526 = vector.broadcast %cst_163 : f32 to vector<32x1xf32>
    %527 = arith.addf %525, %526 : vector<32x1xf32>
    %cst_164 = arith.constant 1.000000e+00 : f32
    %528 = vector.broadcast %cst_164 : f32 to vector<32x1xf32>
    %529 = arith.divf %528, %527 : vector<32x1xf32>
    %c0_165 = arith.constant 0 : index
    %c0_166 = arith.constant 0 : index
    %530 = vector.load %arg9[%c0_165, %c0_166] : memref<32x16xf32, #tpu.memory_space<vmem>>, vector<32x16xf32>
    %cst_167 = arith.constant dense<0.000000e+00> : vector<32x16xf32>
    %531 = tpu.matmul %522, %530, %cst_167 {dimension_numbers = #tpu.dot_dimension_numbers<[1], [0], [0], [1], [0, 0, 1, 1], [], []>, precision = #tpu.contract_precision<fp32>} : vector<32x32xf32>, vector<32x16xf32>, vector<32x16xf32> -> vector<32x16xf32>
    %cst_168 = arith.constant dense<0.000000e+00> : vector<32x16xf32>
    %532 = tpu.matmul %523, %531, %cst_168 {dimension_numbers = #tpu.dot_dimension_numbers<[1], [0], [0], [1], [0, 0, 1, 1], [], []>, precision = #tpu.contract_precision<fp32>} : vector<32x32xf32>, vector<32x16xf32>, vector<32x16xf32> -> vector<32x16xf32>
    %533 = arith.addf %532, %531 : vector<32x16xf32>
    %c0_169 = arith.constant 0 : index
    %c0_170 = arith.constant 0 : index
    %534 = vector.load %arg10[%c0_169, %c0_170] : memref<1x16xf32, #tpu.memory_space<vmem>>, vector<1x16xf32>
    %535 = vector.broadcast %534 : vector<1x16xf32> to vector<32x16xf32>
    %536 = arith.addf %533, %535 : vector<32x16xf32>
    %537 = vector.broadcast %529 : vector<32x1xf32> to vector<32x16xf32>
    %538 = arith.mulf %536, %537 : vector<32x16xf32>
    %cst_171 = arith.constant 0.000000e+00 : f32
    %539 = vector.broadcast %cst_171 : f32 to vector<32x16xf32>
    %540 = arith.maximumf %538, %539 : vector<32x16xf32>
    %541 = tpu.concatenate %522, %540 in 1 : vector<32x32xf32>, vector<32x16xf32> -> vector<32x48xf32>
    %c0_172 = arith.constant 0 : index
    %c0_173 = arith.constant 0 : index
    %542 = vector.load %arg11[%c0_172, %c0_173] : memref<48x16xf32, #tpu.memory_space<vmem>>, vector<48x16xf32>
    %cst_174 = arith.constant dense<0.000000e+00> : vector<32x16xf32>
    %543 = tpu.matmul %541, %542, %cst_174 {dimension_numbers = #tpu.dot_dimension_numbers<[1], [0], [0], [1], [0, 0, 1, 1], [], []>, precision = #tpu.contract_precision<fp32>} : vector<32x48xf32>, vector<48x16xf32>, vector<32x16xf32> -> vector<32x16xf32>
    %cst_175 = arith.constant dense<0.000000e+00> : vector<32x16xf32>
    %544 = tpu.matmul %523, %543, %cst_175 {dimension_numbers = #tpu.dot_dimension_numbers<[1], [0], [0], [1], [0, 0, 1, 1], [], []>, precision = #tpu.contract_precision<fp32>} : vector<32x32xf32>, vector<32x16xf32>, vector<32x16xf32> -> vector<32x16xf32>
    %545 = arith.addf %544, %543 : vector<32x16xf32>
    %c0_176 = arith.constant 0 : index
    %c0_177 = arith.constant 0 : index
    %546 = vector.load %arg12[%c0_176, %c0_177] : memref<1x16xf32, #tpu.memory_space<vmem>>, vector<1x16xf32>
    %547 = vector.broadcast %546 : vector<1x16xf32> to vector<32x16xf32>
    %548 = arith.addf %545, %547 : vector<32x16xf32>
    %549 = vector.broadcast %529 : vector<32x1xf32> to vector<32x16xf32>
    %550 = arith.mulf %548, %549 : vector<32x16xf32>
    %cst_178 = arith.constant 0.000000e+00 : f32
    %551 = vector.broadcast %cst_178 : f32 to vector<32x16xf32>
    %552 = arith.maximumf %550, %551 : vector<32x16xf32>
    %553 = tpu.concatenate %540, %552 in 1 : vector<32x16xf32>, vector<32x16xf32> -> vector<32x32xf32>
    %554 = arith.addf %553, %522 : vector<32x32xf32>
    %c0_179 = arith.constant 0 : index
    %c0_180 = arith.constant 0 : index
    %555 = vector.load %arg13[%c0_179, %c0_180] : memref<32x32xf32, #tpu.memory_space<vmem>>, vector<32x32xf32>
    %cst_181 = arith.constant dense<0.000000e+00> : vector<32x32xf32>
    %556 = tpu.matmul %554, %555, %cst_181 {dimension_numbers = #tpu.dot_dimension_numbers<[1], [0], [0], [1], [0, 0, 1, 1], [], []>, precision = #tpu.contract_precision<fp32>} : vector<32x32xf32>, vector<32x32xf32>, vector<32x32xf32> -> vector<32x32xf32>
    %c0_182 = arith.constant 0 : index
    %c0_183 = arith.constant 0 : index
    %557 = vector.load %arg14[%c0_182, %c0_183] : memref<1x32xf32, #tpu.memory_space<vmem>>, vector<1x32xf32>
    %558 = vector.broadcast %557 : vector<1x32xf32> to vector<32x32xf32>
    %559 = arith.addf %556, %558 : vector<32x32xf32>
    %c0_184 = arith.constant 0 : index
    %c0_185 = arith.constant 0 : index
    %560 = vector.load %arg15[%c0_184, %c0_185] : memref<32x32xf32, #tpu.memory_space<vmem>>, vector<32x32xf32>
    tpu.vector_store %arg15[%c0_184, %c0_185], %559 {strides = array<i32>} : memref<32x32xf32, #tpu.memory_space<vmem>>, vector<32x32xf32>,
    return
  }
  func.func @transform_0(%arg0: i32) -> (i32, i32) {
    %c0_i32 = arith.constant 0 : i32
    %c0_i32_0 = arith.constant 0 : i32
    %c0_i32_1 = arith.constant 0 : i32
    return %c0_i32, %c0_i32_0 : i32, i32
  }
  func.func @transform_1(%arg0: i32) -> (i32, i32, i32) {
    %c0_i32 = arith.constant 0 : i32
    %c0_i32_0 = arith.constant 0 : i32
    %c0_i32_1 = arith.constant 0 : i32
    %c0_i32_2 = arith.constant 0 : i32
    return %c0_i32, %c0_i32_0, %c0_i32_1 : i32, i32, i32
  }
  func.func @transform_2(%arg0: i32) -> (i32, i32) {
    %c0_i32 = arith.constant 0 : i32
    %c0_i32_0 = arith.constant 0 : i32
    %c0_i32_1 = arith.constant 0 : i32
    return %c0_i32, %c0_i32_0 : i32, i32
  }
  func.func @transform_3(%arg0: i32) -> (i32, i32) {
    %c0_i32 = arith.constant 0 : i32
    %c0_i32_0 = arith.constant 0 : i32
    %c0_i32_1 = arith.constant 0 : i32
    return %c0_i32, %c0_i32_0 : i32, i32
  }
  func.func @transform_4(%arg0: i32) -> (i32, i32) {
    %c0_i32 = arith.constant 0 : i32
    %c0_i32_0 = arith.constant 0 : i32
    %c0_i32_1 = arith.constant 0 : i32
    return %c0_i32, %c0_i32_0 : i32, i32
  }
  func.func @transform_5(%arg0: i32) -> (i32, i32) {
    %c0_i32 = arith.constant 0 : i32
    %c0_i32_0 = arith.constant 0 : i32
    %c0_i32_1 = arith.constant 0 : i32
    return %c0_i32, %c0_i32_0 : i32, i32
  }
  func.func @transform_6(%arg0: i32) -> (i32, i32) {
    %c0_i32 = arith.constant 0 : i32
    %c0_i32_0 = arith.constant 0 : i32
    %c0_i32_1 = arith.constant 0 : i32
    return %c0_i32, %c0_i32_0 : i32, i32
  }
  func.func @transform_7(%arg0: i32) -> (i32, i32) {
    %c0_i32 = arith.constant 0 : i32
    %c0_i32_0 = arith.constant 0 : i32
    %c0_i32_1 = arith.constant 0 : i32
    return %c0_i32, %c0_i32_0 : i32, i32
  }
  func.func @transform_8(%arg0: i32) -> (i32, i32) {
    %c0_i32 = arith.constant 0 : i32
    %c0_i32_0 = arith.constant 0 : i32
    %c0_i32_1 = arith.constant 0 : i32
    return %c0_i32, %c0_i32_0 : i32, i32
  }
  func.func @transform_9(%arg0: i32) -> (i32, i32) {
    %c0_i32 = arith.constant 0 : i32
    %c0_i32_0 = arith.constant 0 : i32
    %c0_i32_1 = arith.constant 0 : i32
    return %c0_i32, %c0_i32_0 : i32, i32
  }
  func.func @transform_10(%arg0: i32) -> (i32, i32) {
    %c0_i32 = arith.constant 0 : i32
    %c0_i32_0 = arith.constant 0 : i32
    %c0_i32_1 = arith.constant 0 : i32
    return %c0_i32, %c0_i32_0 : i32, i32
  }
  func.func @transform_11(%arg0: i32) -> (i32, i32) {
    %c0_i32 = arith.constant 0 : i32
    %c0_i32_0 = arith.constant 0 : i32
    %c0_i32_1 = arith.constant 0 : i32
    return %c0_i32, %c0_i32_0 : i32, i32
  }
  func.func @transform_12(%arg0: i32) -> (i32, i32) {
    %c0_i32 = arith.constant 0 : i32
    %c0_i32_0 = arith.constant 0 : i32
    %c0_i32_1 = arith.constant 0 : i32
    return %c0_i32, %c0_i32_0 : i32, i32
  }
  func.func @transform_13(%arg0: i32) -> (i32, i32) {
    %c0_i32 = arith.constant 0 : i32
    %c0_i32_0 = arith.constant 0 : i32
    %c0_i32_1 = arith.constant 0 : i32
    return %c0_i32, %c0_i32_0 : i32, i32
  }
  func.func @transform_14(%arg0: i32) -> (i32, i32) {
    %c0_i32 = arith.constant 0 : i32
    %c0_i32_0 = arith.constant 0 : i32
    %c0_i32_1 = arith.constant 0 : i32
    return %c0_i32, %c0_i32_0 : i32, i32
  }
}

</mosaic_0001>

<bundles_post_ra>
// kernel: tpu_custom_call.1
= control target key start
LH: loop header
LB: loop body
LE: loop exit
PB: predicated region body
PF: predicated region fallthrough
CT: control target
= control target key end

     0   :  { %19 = vsyncpa [#allocation4], 0  ;;  %s18832_s0 = inlined_call_operand.vmem [shape: f32[32,24], index: 0, kind: input, shape index: {}]   ;;  %s18833_s1 = inlined_call_operand.vmem [shape: f32[16,2,32], index: 1, kind: input, shape index: {}]   ;;  %s18834_s2 = inlined_call_operand.vmem [shape: f32[32,32], index: 2, kind: input, shape index: {}]   ;;  %s18835_s3 = inlined_call_operand.hbm [shape: f32[24,128], index: 3, kind: input, shape index: {}]   ;;  %s18836_s4 = inlined_call_operand.vmem [shape: f32[1,128], index: 4, kind: input, shape index: {}]   ;;  %s18837_s5 = inlined_call_operand.vmem [shape: f32[32,128], index: 5, kind: input, shape index: {}]   ;;  %s18838_s6 = inlined_call_operand.vmem [shape: f32[32,32], index: 6, kind: input, shape index: {}]   ;;  %s18839_s7 = inlined_call_operand.vmem [shape: f32[1,32], index: 7, kind: input, shape index: {}]   ;;  %s18840_s8 = inlined_call_operand.vmem [shape: f32[32,16], index: 8, kind: input, shape index: {}]   ;;  %s18841_s9 = inlined_call_operand.vmem [shape: f32[1,16], index: 9, kind: input, shape index: {}]   ;;  %s18842_s10 = inlined_call_operand.vmem [shape: f32[48,16], index: 10, kind: input, shape index: {}]   ;;  %s18843_s11 = inlined_call_operand.vmem [shape: f32[1,16], index: 11, kind: input, shape index: {}]   ;;  %s18844_s12 = inlined_call_operand.vmem [shape: f32[32,32], index: 12, kind: input, shape index: {}]   ;;  %s18845_s13 = inlined_call_operand.vmem [shape: f32[1,32], index: 13, kind: input, shape index: {}]   ;;  %s18846_s14 = inlined_call_operand.hbm [shape: f32[32,32], index: 14, kind: output, shape index: {}]  }
   0x1   :  { %20 = vsyncpa [#allocation5], 0  ;;  %s17049_s29 = smov [#allocation3]   ;;  %s17001_s17 = scalar_lea.hbm %s18835_s3, 384 }
   0x2   :  { %s32_s30 = sshll.u32 %s17049_s29, 4  ;;  %p17002_p0 = scmp.ne.s32.totalorder %s18835_s3, %s17001_s17  ;;  %s33_s30 = int_to_ptr.vmem [resolvable:$true] %s32_s30 }
   0x3   :  { %p17005_p1 = scmp.lt.u32.totalorder %s17001_s17, %s18835_s3 }
   0x5   :  { %p17007_p2 = pnand %p17005_p1, %p17002_p0 }
   0x7   :  { %17010 = shalt.err (!%p17007_p2)
}
   0x8   :  { %s17011_s22 = scalar_lea.vmem %s33_s30, 384  ;;  %p17016_p4 = scmp.lt.s32.totalorder %s33_s30, %s33_s30 }
   0x9   :  { %p17012_p3 = scmp.ne.s32.totalorder %s33_s30, %s17011_s22  ;;  %p17017_p5 = scmp.lt.s32.totalorder %s17011_s22, %s17011_s22 }
   0xb   :  { %p17018_p6 = por %p17017_p5, %p17016_p4 }
   0xd   :  { %p17019_p7 = pnand %p17018_p6, %p17012_p3 }
   0xf   :  { %17022 = shalt.err (!%p17019_p7)
}
  0x10   :  { %s17050_s23 = smov 128   ;;  %s17051_s24 = smov 8  }
  0x11   :  { %38 = dma.hbm_to_vmem [thread:$0]  %s18835_s3, 384, %s33_s30, [#allocation4], %s17050_s23, %s17050_s23, %s17051_s24  }
  0x12   :  { %17045 = dma.done.wait [#allocation4], 384  }
  0x13   :  { %17046 = vsyncadd [#allocation4], 4294966912  ;;  %v17052_v0 = vmov 0.0|0.0   ;;  %vm17053_vm0 = vmmov 0   ;;  %v17054_v1 = vmov 0.0   ;;  %vm76_vm1 = vcmask 195584  }
  0x14   :  { %15696 = vmatprep.subr.bf16.mxu1 %v17052_v0  ;;  %14101 = vmatprep.mubr.msk.f32.mxu1 %vm17053_vm0, %v17054_v1  ;;  %v66_v2 = vld [vmem:[#allocation3] sm:$0xff]  ;;  %v67_v3 = vld [vmem:[#allocation3 + $0x8] sm:$0xff]  ;;  %v68_v4 = vld [vmem:[#allocation3 + $0x10] sm:$0xff]  ;;  %s17057_s28 = smov 32   ;;  %s17058_s3 = smov 96   ;;  %vm718_vm7 = vcmask 261120  }
  0x15   :  { %v90_v5 = vand.u32 4294901760, %v66_v2  ;;  %v93_v6 = vand.u32 4294901760, %v67_v3  ;;  %v62_v7 = vld [vmem:[%s18832_s0] sm:$0xff]  ;;  %v63_v8 = vld [vmem:[%s18832_s0 + $0x8] sm:$0xff]  ;;  %v17165_v10 = vand.u32 4294901760, %v68_v4  ;;  %v64_v15 = vld [vmem:[%s18832_s0 + $0x10] sm:$0xff] }
  0x16   :  { %v17163_v9 = vld [vmem:[%s18837_s5] sm:$0xff]  ;;  %v78_v11 = vsel %vm76_vm1, %v62_v7, 0  ;;  %v81_v12 = vsel %vm76_vm1, %v63_v8, 0  ;;  %v17172_v13 = vld [vmem:[%s18837_s5 + $0x8] sm:$0xff]  ;;  %v84_v23 = vsel %vm76_vm1, %v64_v15, 0  ;;  %v65_v28 = vld [vmem:[%s18832_s0 + $0x18] sm:$0xff] }
  0x17   :  { %v723_v14 = vand.u32 4294901760, %v17163_v9  ;;  %v17178_v16 = vpack.c.bf16 %v93_v6, %v90_v5  ;;  %v17180_v17 = vand.u32 4294901760, %v78_v11  ;;  %v17182_v18 = vand.u32 4294901760, %v81_v12  ;;  %v17243_v44 = vld [vmem:[%s18837_s5 + $0x10] sm:$0xff]  ;;  %v17254_v49 = vld [vmem:[%s18837_s5 + $0x18] sm:$0xff] }
  0x18   :  { %v17184_v19 = vsub.f32 %v66_v2, %v90_v5  ;;  %v17186_v20 = vsub.f32 %v67_v3, %v93_v6  ;;  %v726_v21 = vand.u32 4294901760, %v17172_v13  ;;  %v17203_v27 = vand.u32 4294901760, %v84_v23 }
  0x19   :  { %v17192_v22 = vsub.f32 %v17163_v9, %v723_v14  ;;  %15667 = vmatprep.subr.bf16.mxu0 %v17178_v16  ;;  %v17197_v24 = vsub.f32 %v78_v11, %v17180_v17  ;;  %v17200_v25 = vsub.f32 %v81_v12, %v17182_v18  ;;  %v87_v39 = vsel %vm76_vm1, %v65_v28, 0 }
  0x1a   :  { %v200_v26 = vand.u32 4294901760, %v17184_v19  ;;  %15669 = vmatpush3.bf16.msra.mxu0 %v17178_v16  ;;  %v207_v29 = vand.u32 4294901760, %v17186_v20  ;;  %v17214_v31 = vsub.f32 %v17172_v13, %v726_v21  ;;  %v17223_v35 = vsub.f32 %v84_v23, %v17203_v27 }
  0x1b   :  { %v804_v30 = vand.u32 4294901760, %v17192_v22  ;;  %14014 = vmatprep.subr.mxu0 %v17165_v10  ;;  %v159_v32 = vand.u32 4294901760, %v17197_v24  ;;  %v169_v33 = vand.u32 4294901760, %v17200_v25  ;;  %v17249_v48 = vand.u32 4294901760, %v87_v39 }
  0x1c   :  { %v201_v34 = vsub.f32 %v17184_v19, %v200_v26  ;;  %v208_v36 = vsub.f32 %v17186_v20, %v207_v29  ;;  %v811_v38 = vand.u32 4294901760, %v17214_v31  ;;  %v179_v43 = vand.u32 4294901760, %v17223_v35 }
  0x1d   :  { %v805_v37 = vsub.f32 %v17192_v22, %v804_v30  ;;  %v160_v40 = vsub.f32 %v17197_v24, %v159_v32  ;;  %v170_v41 = vsub.f32 %v17200_v25, %v169_v33  ;;  %v213_v53 = vsub.f32 %v68_v4, %v17165_v10 }
  0x1e   :  { %v202_v42 = vand.u32 4294901760, %v201_v34  ;;  %14015 = vmatpush3.msra.mxu0 %v17165_v10  ;;  %v209_v45 = vand.u32 4294901760, %v208_v36  ;;  %v812_v47 = vsub.f32 %v17214_v31, %v811_v38  ;;  %v180_v52 = vsub.f32 %v17223_v35, %v179_v43 }
  0x1f   :  { %v806_v46 = vand.u32 4294901760, %v805_v37  ;;  %v161_v50 = vand.u32 4294901760, %v160_v40  ;;  %v171_v51 = vand.u32 4294901760, %v170_v41  ;;  %v17261_v56 = vsub.f32 %v87_v39, %v17249_v48 }
  0x20   :  { %v15670_v54 = vpack.c.bf16 %v209_v45, %v202_v42  ;;  %v813_v55 = vand.u32 4294901760, %v812_v47  ;;  %v729_v57 = vand.u32 4294901760, %v17243_v44  ;;  %v181_v58 = vand.u32 4294901760, %v180_v52 }
  0x21   :  { %14016 = vmatprep.mubr.f32.mxu0 %v161_v50  ;;  %v17264_v59 = vand.u32 4294901760, %v213_v53  ;;  %v732_v60 = vand.u32 4294901760, %v17254_v49  ;;  %v189_v62 = vand.u32 4294901760, %v17261_v56  ;;  %v15674_v12 = vpack.c.bf16 %v17186_v20, %v17184_v19 }
  0x22   :  { %14017 = vmatmul.mubr.f32.vlgmr.msra.gmra.mrb[0].mxu0 %v171_v51  ;;  %15671 = vmatprep.subr.bf16.mxu0 %v15670_v54  ;;  %v17267_v61 = vpack.c.bf16 %v813_v55, %v806_v46  ;;  %v17271_v63 = vsub.f32 %v17243_v44, %v729_v57  ;;  %v17295_v36 = vpack.c.bf16 %v17214_v31, %v17192_v22  ;;  %v17055_v55 = vmov 0.5  }
  0x23   :  { %15673 = vmatpush3.bf16.msra.mxu0 %v15670_v54  ;;  %14019 = vmatprep.mubr.f32.mxu0 %v181_v58  ;;  %v215_v2 = vsub.f32 %v213_v53, %v17264_v59  ;;  %v17275_v3 = vsub.f32 %v17254_v49, %v732_v60  ;;  %v190_v4 = vsub.f32 %v17261_v56, %v189_v62  ;;  %vm1235_vm8 = vcmask 123904  }
  0x24   :  { %15698 = vmatpush3.bf16.msra.mxu1 %v17267_v61  ;;  %v818_v5 = vand.u32 4294901760, %v17271_v63  ;;  %v17316_v39 = vpack.c.bf16 %v726_v21, %v723_v14  ;;  %v15682_v40 = vpack.c.bf16 %v207_v29, %v200_v26  ;;  %v17329_v9 = vpack.c.bf16 %v732_v60, %v729_v57 }
  0x25   :  { %15699 = vmatprep.subr.bf16.mxu1 %v17052_v0  ;;  %v216_v6 = vand.u32 4294901760, %v215_v2  ;;  %v825_v7 = vand.u32 4294901760, %v17275_v3  ;;  %v191_v8 = vand.u32 4294901760, %v190_v4  ;;  %v17304_v37 = vpack.c.bf16 %v17275_v3, %v17271_v63 }
  0x26   :  { %v819_v11 = vsub.f32 %v17271_v63, %v818_v5  ;;  %v17345_v13 = vpack.c.bf16 %v811_v38, %v804_v30  ;;  %vm1237_vm9 = vcmask 255104  }
  0x27   :  { %14026 = vmatprep.subr.mxu0 %v216_v6  ;;  %v826_v15 = vsub.f32 %v17275_v3, %v825_v7  ;;  %14020 = vmatmul.mubr.f32.gmra.mrb[2].mxu0 %v191_v8  ;;  %v17355_v14 = vpack.c.bf16 %v825_v7, %v818_v5 }
  0x28   :  { %v820_v23 = vand.u32 4294901760, %v819_v11  ;;  %14027 = vmatpush3.msra.mxu0 %v216_v6  ;;  %14028 = vmatprep.mubr.f32.mxu0 %v17180_v17 }
  0x29   :  { %v827_v28 = vand.u32 4294901760, %v826_v15  ;;  %15675 = vmatprep.subr.bf16.mxu0 %v15674_v12 }
  0x2b   :  { %v17289_v34 = vpack.c.bf16 %v827_v28, %v820_v23  ;;  %14029 = vmatmul.mubr.f32.vlgmr.msra.gmra.mrb[0].mxu0 %v17182_v18 }
  0x2c   :  { %15677 = vmatpush3.bf16.msra.mxu0 %v15674_v12  ;;  %14031 = vmatprep.mubr.f32.mxu0 %v17203_v27  ;;  %v1228_v12 = vld [vmem:[%s18833_s1] sm:$0x3] }
  0x2d   :  { %15701 = vmatpush3.bf16.msra.mxu1 %v17289_v34  ;;  %14038 = vmatprep.subr.mxu0 %v213_v53  ;;  %vm1229_vm6 = vcmp.gt.f32.partialorder %v1228_v12, 0.0 }
  0x2e   :  { %15702 = vmatprep.subr.bf16.mxu1 %v17052_v0 }
  0x2f   :  { %14032 = vmatmul.mubr.f32.gmra.mrb[2].mxu0 %v17249_v48 }
  0x30   :  { %14102 = vmatmul.mubr.f32.vlgmr.msra.gmra.mrb[0].mxu1 %v17054_v1  ;;  %14039 = vmatpush3.msra.mxu0 %v213_v53 }
  0x31   :  { %15704 = vmatpush3.bf16.msra.mxu1 %v17295_v36  ;;  %14112 = vmatprep.mubr.msk.f32.mxu1 %vm17053_vm0, %v17054_v1 }
  0x32   :  { %15705 = vmatprep.subr.bf16.mxu1 %v17052_v0  ;;  %14040 = vmatprep.mubr.f32.mxu0 %v17197_v24 }
  0x33   :  { %15679 = vmatprep.subr.bf16.mxu0 %v17178_v16  ;;  %14041 = vmatmul.mubr.f32.vlgmr.msra.gmra.mrb[0].mxu0 %v17200_v25 }
  0x34   :  { %15681 = vmatpush3.bf16.msra.mxu0 %v17178_v16  ;;  %14043 = vmatprep.mubr.f32.mxu0 %v17223_v35 }
  0x35   :  { %15707 = vmatpush3.bf16.msra.mxu1 %v17304_v37  ;;  %14050 = vmatprep.subr.mxu0 %v17165_v10 }
  0x36   :  { %15708 = vmatprep.subr.bf16.mxu1 %v17052_v0 }
  0x37   :  { %14044 = vmatmul.mubr.f32.gmra.mrb[2].mxu0 %v17261_v56 }
  0x38   :  { %14113 = vmatmul.mubr.f32.vlgmr.msra.gmra.mrb[0].mxu1 %v17054_v1  ;;  %14051 = vmatpush3.msra.mxu0 %v17165_v10 }
  0x39   :  { %15710 = vmatpush3.bf16.msra.mxu1 %v17316_v39  ;;  %14123 = vmatprep.mubr.msk.f32.mxu1 %vm17053_vm0, %v17054_v1 }
  0x3a   :  { %15711 = vmatprep.subr.bf16.mxu1 %v17052_v0  ;;  %14052 = vmatprep.mubr.f32.mxu0 %v159_v32 }
  0x3b   :  { %15683 = vmatprep.subr.bf16.mxu0 %v15682_v40  ;;  %14053 = vmatmul.mubr.f32.vlgmr.msra.gmra.mrb[0].mxu0 %v169_v33 }
  0x3c   :  { %15685 = vmatpush3.bf16.msra.mxu0 %v15682_v40  ;;  %14055 = vmatprep.mubr.f32.mxu0 %v179_v43 }
  0x3d   :  { %15713 = vmatpush3.bf16.msra.mxu1 %v17329_v9  ;;  %14062 = vmatprep.subr.mxu0 %v17264_v59 }
  0x3e   :  { %15714 = vmatprep.subr.bf16.mxu1 %v17052_v0 }
  0x3f   :  { %14056 = vmatmul.mubr.f32.gmra.mrb[2].mxu0 %v189_v62 }
  0x40   :  { %14124 = vmatmul.mubr.f32.vlgmr.msra.gmra.mrb[0].mxu1 %v17054_v1  ;;  %14063 = vmatpush3.msra.mxu0 %v17264_v59 }
  0x41   :  { %15716 = vmatpush3.bf16.msra.mxu1 %v17345_v13  ;;  %14134 = vmatprep.mubr.msk.f32.mxu1 %vm17053_vm0, %v17054_v1 }
  0x42   :  { %15717 = vmatprep.subr.bf16.mxu1 %v17052_v0  ;;  %14064 = vmatprep.mubr.f32.mxu0 %v17180_v17 }
  0x43   :  { %15687 = vmatprep.subr.bf16.mxu0 %v17178_v16  ;;  %14065 = vmatmul.mubr.f32.vlgmr.msra.gmra.mrb[0].mxu0 %v17182_v18 }
  0x44   :  { %15689 = vmatpush3.bf16.msra.mxu0 %v17178_v16  ;;  %14067 = vmatprep.mubr.f32.mxu0 %v17203_v27 }
  0x45   :  { %15719 = vmatpush3.bf16.msra.mxu1 %v17355_v14  ;;  %14074 = vmatprep.subr.mxu0 %v17165_v10 }
  0x46   :  { %15720 = vmatprep.subr.bf16.mxu1 %v17052_v0 }
  0x47   :  { %14068 = vmatmul.mubr.f32.gmra.mrb[2].mxu0 %v17249_v48 }
  0x48   :  { %14135 = vmatmul.mubr.f32.vlgmr.msra.gmra.mrb[0].mxu1 %v17054_v1  ;;  %14075 = vmatpush3.msra.mxu0 %v17165_v10  ;;  %v694_v10 = vlaneseq }
  0x49   :  { %15722 = vmatpush3.bf16.msra.mxu1 %v17316_v39  ;;  %14145 = vmatprep.mubr.msk.f32.mxu1 %vm17053_vm0, %v17054_v1 }
  0x4a   :  { %15723 = vmatprep.subr.bf16.mxu1 %v17052_v0  ;;  %14076 = vmatprep.mubr.f32.mxu0 %v17180_v17  ;;  %v695_v16 = vand.u32 127, %v694_v10  ;;  %v13168_v17 = vld [vmem:[%s18836_s4] ss:$0 sm:$0xff]  ;;  %s17056_s4 = smov 64  }
  0x4b   :  { %15690 = vmatprep.subr.bf16.mxu0 %v17052_v0  ;;  %14077 = vmatmul.mubr.f32.vlgmr.msra.gmra.mrb[0].mxu0 %v17182_v18 }
  0x4c   :  { %15692 = vmatpush3.bf16.msra.mxu0 %v17316_v39  ;;  %14079 = vmatprep.mubr.f32.mxu0 %v17203_v27  ;;  %v700_v19 = vand.u32 31, %v695_v16  ;;  %vm709_vm3 = vcmp.ge.s32.totalorder %v695_v16, 64  ;;  %vm710_vm4 = vcmp.lt.s32.totalorder %v695_v16, 96 }
  0x4d   :  { %15725 = vmatpush3.bf16.msra.mxu1 %v17329_v9  ;;  %15693 = vmatprep.subr.bf16.mxu0 %v17052_v0  ;;  %vm17418_vm5 = vmand %vm709_vm3, %vm710_vm4 }
  0x4e   :  { %15762 = vmatprep.subr.bf16.mxu1 %v17052_v0  ;;  %vm17406_vm2 = vcmp.lt.s32.totalorder %v700_v19, 16  ;;  %v17441_v56 = vsel %vm17418_vm5, 1.0, %v17055_v55  ;;  %v17454_v63 = vsel %vm17418_vm5, 0.0, %v17055_v55 }
  0x4f   :  { %14080 = vmatmul.mubr.f32.gmra.mrb[2].mxu0 %v17249_v48 }
  0x50   :  { %14146 = vmatmul.mubr.f32.vlgmr.msra.gmra.mrb[0].mxu1 %v17054_v1  ;;  %15695 = vmatpush3.bf16.msra.mxu0 %v17329_v9 }
  0x51   :  { %14090 = vmatprep.mubr.msk.f32.mxu0 %vm17053_vm0, %v17054_v1  ;;  %15726 = vmatprep.subr.bf16.mxu0 %v17052_v0 }
  0x52   :  { %15764 = vmatpush3.bf16.msra.mxu1 %v17316_v39  ;;  %14222 = vmatprep.mubr.msk.f32.mxu1 %vm17053_vm0, %v17054_v1 }
  0x53   :  { %15765 = vmatprep.subr.bf16.mxu1 %v17052_v0  ;;  %14091 = vmatmul.mubr.f32.vlgmr.msra.gmra.mrb[4].mxu0 %v17054_v1 }
  0x54   :  { %15728 = vmatpush3.bf16.msra.mxu0 %v17316_v39  ;;  %14156 = vmatprep.mubr.msk.f32.mxu0 %vm17053_vm0, %v17054_v1 }
  0x55   :  { %15729 = vmatprep.subr.bf16.mxu0 %v17052_v0 }
  0x56   :  { %15767 = vmatpush3.bf16.msra.mxu1 %v17329_v9 }
  0x57   :  { %15768 = vmatprep.subr.bf16.mxu1 %v17052_v0 }
  0x58   :  { %15731 = vmatpush3.bf16.msra.mxu0 %v17329_v9 }
  0x59   :  { %15732 = vmatprep.subr.bf16.mxu0 %v17052_v0 }
 0x11e   :  { %v14078_v18 = vpop.f32.mrb[0].mxu0 }
 0x11f   :  { %v16582_v20 = vadd.f32 %v14078_v18, %v13168_v17  ;;  %v668_v21 = vpop.f32.mrb[1].mxu0 }
 0x120   :  { %v16583_v22 = vadd.f32 %v13168_v17, %v668_v21 }
 0x121   :  { %v4974_v35 = vrot.slane %v16582_v20, 6  ;;  %v5506_v38 = vrot.slane %v16582_v20, 2 }
 0x122   :  { %v14081_v25 = vpop.f32.mrb[2].mxu0  ;;  %v7105_v27 = vrot.slane %v16583_v22, 6  ;;  %v7637_v29 = vrot.slane %v16583_v22, 2 }
 0x123   :  { %v1203_v24 = vpop.f32.mrb[0].mxu1  ;;  %v16584_v31 = vadd.f32 %v14081_v25, %v13168_v17  ;;  %v680_v32 = vpop.f32.mrb[3].mxu0 }
 0x124   :  { %v14147_v30 = vpop.f32.mrb[1].mxu1  ;;  %v16585_v33 = vadd.f32 %v13168_v17, %v680_v32 }
 0x125   :  { %v715_v41 = vrot.slane %v16584_v31, 6  ;;  %v1244_v42 = vrot.slane %v16584_v31, 2  ;;  %v17412_v43 = vsel %vm17406_vm2, %v16584_v31, %v7105_v27  ;;  %v17416_v44 = vsel %vm17406_vm2, %v16584_v31, %v7637_v29 }
 0x126   :  { %v797_v46 = vpop.f32.mrb[4].mxu0  ;;  %v2843_v47 = vrot.slane %v16585_v33, 6  ;;  %v3375_v48 = vrot.slane %v16585_v33, 2  ;;  %v17424_v49 = vsel %vm17406_vm2, %v16585_v33, %v4974_v35  ;;  %v17428_v50 = vsel %vm17406_vm2, %v16585_v33, %v5506_v38 }
 0x127   :  { %v17432_v51 = vsel %vm17406_vm2, %v16583_v22, %v715_v41  ;;  %v14092_v52 = vpop.f32.mrb[5].mxu0  ;;  %v17436_v53 = vsel %vm17406_vm2, %v16583_v22, %v1244_v42 }
 0x128   :  { %v798_v54 = vadd.f32 %v797_v46, %v17432_v51  ;;  %v17445_v57 = vsel %vm17406_vm2, %v16582_v20, %v2843_v47  ;;  %v17449_v58 = vsel %vm17406_vm2, %v16582_v20, %v3375_v48  ;;  %v13169_v47 = vld [vmem:[%s18833_s1 + $0x2] sm:$0x3] }
 0x129   :  { %vm1765_vm10 = vcmp.gt.f32.partialorder %v13169_v47, 0.0 }
 0x12a   :  { %v16587_v59 = vadd.f32 %v1203_v24, %v798_v54  ;;  %v1248_v24 = vrot.slane %v17436_v53, 2 }
 0x12c   :  { %v1207_v60 = vmul.f32 %v16587_v59, %v17441_v56 }
 0x12e   :  { %16929 = vtanh.f32 %v1207_v60 }
 0x138   :  { %v16930_v62 = vpop.eup %16929 }
 0x139   :  { %v1209_v2 = vmul.f32 %v16930_v62, %v17441_v56 }
 0x13b   :  { %v1210_v3 = vadd.f32 %v1209_v2, %v17454_v63 }
 0x13d   :  { %1213 = vrot.lane.b32.xlu0 %v1210_v3, %s17056_s4  ;;  %v1211_v6 = vmul.f32 0.0, %v1210_v3 }
 0x1af   :  { %v1214_v4 = vpop.permute.xlu0 %1213 }
 0x1b0   :  { %v1216_v5 = vmul.f32 %v1214_v4, %v1210_v3 }
 0x1b2   :  { %1218 = vrot.lane.b32.xlu0 %v1216_v5, %s17057_s28 }
 0x224   :  { %v1219_v7 = vpop.permute.xlu0 %1218 }
 0x225   :  { %v1221_v8 = vadd.f32 %v1219_v7, %v1211_v6 }
 0x227   :  { %16931 = vtanh.f32 %v1221_v8  ;;  %1240 = vrot.lane.b32.xlu0 %v1221_v8, %s17058_s3  ;;  %v1780_v8 = vrot.slane %v17432_v51, 4 }
 0x231   :  { %v16932_v11 = vpop.eup %16931 }
 0x232   :  { %1224 = vrot.lane.b32.xlu1 %v16932_v11, %s17056_s4 }
 0x299   :  { %v1241_v15 = vpop.permute.xlu0 %1240 }
 0x29a   :  { %v17465_v23 = vsel %vm1229_vm6, %v1241_v15, 0.0 }
 0x29b   :  { %1743 = vrot.lane.b32.xlu0 %v17465_v23, %s17057_s28 }
 0x2a4   :  { %v1225_v28 = vpop.permute.xlu1 %1224 }
 0x2a5   :  { %v1227_v40 = vmul.f32 %v1225_v28, %v1210_v3 }
 0x2a7   :  { %1231 = vrot.lane.b32.xlu1 %v1227_v40, %s17057_s28 }
 0x30d   :  { %v1744_v38 = vpop.permute.xlu0 %1743 }
 0x319   :  { %v1232_v10 = vpop.permute.xlu1 %1231 }
 0x31a   :  { %v17470_v16 = vsel %vm1229_vm6, %v1232_v10, 0.0 }
 0x31b   :  { %1236 = vst.msk [vmem:[#allocation2] sm:$0x3] %vm1235_vm8, %v17470_v16  ;;  %v1251_v17 = vsel %vm718_vm7, %v17470_v16, 0 }
 0x31c   :  { %1238 = vst.msk [vmem:[#allocation2 + $0x1e] sm:$0x3] %vm1237_vm9, %v17470_v16  ;;  %v1322_v18 = vand.u32 4294901760, %v1251_v17 }
 0x31e   :  { %v1323_v19 = vsub.f32 %v1251_v17, %v1322_v18 }
 0x320   :  { %v1324_v20 = vand.u32 4294901760, %v1323_v19 }
 0x322   :  { %v1325_v21 = vsub.f32 %v1323_v19, %v1324_v20 }
 0x324   :  { %v1326_v22 = vand.u32 4294901760, %v1325_v21 }
 0x326   :  { %14157 = vmatmul.mubr.f32.vlgmr.msra.gmra.mrb[6].mxu0 %v1326_v22  ;;  %v13170_v22 = vld [vmem:[%s18833_s1 + $0x4] sm:$0x3] }
 0x327   :  { %15734 = vmatpush3.bf16.msra.mxu0 %v17267_v61  ;;  %14167 = vmatprep.mubr.msk.f32.mxu0 %vm17053_vm0, %v17054_v1  ;;  %vm2297_vm11 = vcmp.gt.f32.partialorder %v13170_v22, 0.0 }
 0x328   :  { %15735 = vmatprep.subr.bf16.mxu0 %v17052_v0 }
 0x32b   :  { %15737 = vmatpush3.bf16.msra.mxu0 %v17289_v34 }
 0x32c   :  { %15738 = vmatprep.subr.bf16.mxu0 %v17052_v0 }
 0x32e   :  { %14168 = vmatmul.mubr.f32.vlgmr.msra.gmra.mrb[6].mxu0 %v1322_v18 }
 0x32f   :  { %15740 = vmatpush3.bf16.msra.mxu0 %v17295_v36  ;;  %14178 = vmatprep.mubr.msk.f32.mxu0 %vm17053_vm0, %v17054_v1 }
 0x330   :  { %15741 = vmatprep.subr.bf16.mxu0 %v17052_v0 }
 0x333   :  { %15743 = vmatpush3.bf16.msra.mxu0 %v17304_v37 }
 0x334   :  { %15744 = vmatprep.subr.bf16.mxu0 %v17052_v0 }
 0x336   :  { %14179 = vmatmul.mubr.f32.vlgmr.msra.gmra.mrb[6].mxu0 %v1323_v19 }
 0x337   :  { %15746 = vmatpush3.bf16.msra.mxu0 %v17316_v39  ;;  %14189 = vmatprep.mubr.msk.f32.mxu0 %vm17053_vm0, %v17054_v1 }
 0x338   :  { %15747 = vmatprep.subr.bf16.mxu0 %v17052_v0 }
 0x33b   :  { %15749 = vmatpush3.bf16.msra.mxu0 %v17329_v9 }
 0x33c   :  { %15750 = vmatprep.subr.bf16.mxu0 %v17052_v0 }
 0x33e   :  { %14190 = vmatmul.mubr.f32.vlgmr.msra.gmra.mrb[6].mxu0 %v1324_v20 }
 0x33f   :  { %15752 = vmatpush3.bf16.msra.mxu0 %v17345_v13  ;;  %14200 = vmatprep.mubr.msk.f32.mxu0 %vm17053_vm0, %v17054_v1 }
 0x340   :  { %15753 = vmatprep.subr.bf16.mxu0 %v17052_v0 }
 0x343   :  { %15755 = vmatpush3.bf16.msra.mxu0 %v17355_v14 }
 0x344   :  { %15756 = vmatprep.subr.bf16.mxu0 %v17052_v0 }
 0x346   :  { %14201 = vmatmul.mubr.f32.vlgmr.msra.gmra.mrb[6].mxu0 %v1322_v18 }
 0x347   :  { %15758 = vmatpush3.bf16.msra.mxu0 %v17316_v39  ;;  %14211 = vmatprep.mubr.msk.f32.mxu0 %vm17053_vm0, %v17054_v1 }
 0x348   :  { %15759 = vmatprep.subr.bf16.mxu0 %v17052_v0 }
 0x34b   :  { %15761 = vmatpush3.bf16.msra.mxu0 %v17329_v9 }
 0x34c   :  { %15798 = vmatprep.subr.bf16.mxu0 %v17052_v0 }
 0x34e   :  { %14212 = vmatmul.mubr.f32.vlgmr.msra.gmra.mrb[6].mxu0 %v1322_v18 }
 0x34f   :  { %15800 = vmatpush3.bf16.msra.mxu0 %v17316_v39  ;;  %14288 = vmatprep.mubr.msk.f32.mxu0 %vm17053_vm0, %v17054_v1 }
 0x350   :  { %15801 = vmatprep.subr.bf16.mxu0 %v17052_v0 }
 0x353   :  { %15803 = vmatpush3.bf16.msra.mxu0 %v17329_v9 }
 0x354   :  { %15804 = vmatprep.subr.bf16.mxu0 %v17052_v0 }
 0x421   :  { %v1734_v25 = vpop.f32.mrb[6].mxu0 }
 0x422   :  { %v16588_v26 = vadd.f32 %v1734_v25, %v1248_v24  ;;  %v14213_v27 = vpop.f32.mrb[7].mxu0 }
 0x424   :  { %v1738_v29 = vmul.f32 %v16588_v26, %v17441_v56 }
 0x426   :  { %16933 = vtanh.f32 %v1738_v29 }
 0x430   :  { %v16934_v30 = vpop.eup %16933 }
 0x431   :  { %v1740_v31 = vmul.f32 %v16934_v30, %v17441_v56 }
 0x433   :  { %v1741_v32 = vadd.f32 %v1740_v31, %v17454_v63 }
 0x435   :  { %1748 = vrot.lane.b32.xlu1 %v1741_v32, %s17056_s4  ;;  %v1746_v41 = vmul.f32 %v1744_v38, %v1741_v32 }
 0x4a7   :  { %v1749_v33 = vpop.permute.xlu1 %1748 }
 0x4a8   :  { %v1751_v35 = vmul.f32 %v1749_v33, %v1741_v32 }
 0x4aa   :  { %1753 = vrot.lane.b32.xlu1 %v1751_v35, %s17057_s28 }
 0x51c   :  { %v1754_v42 = vpop.permute.xlu1 %1753 }
 0x51d   :  { %v1756_v45 = vadd.f32 %v1754_v42, %v1746_v41 }
 0x51f   :  { %16935 = vtanh.f32 %v1756_v45 }
 0x529   :  { %v16936_v46 = vpop.eup %16935 }
 0x52a   :  { %1759 = vrot.lane.b32.xlu0 %v16936_v46, %s17056_s4 }
 0x52e   :  { %1775 = vrot.lane.b32.xlu0 %v1756_v45, %s17058_s3  ;;  %v2311_v45 = vrot.slane %v17436_v53, 6 }
 0x59c   :  { %v1760_v48 = vpop.permute.xlu0 %1759 }
 0x59d   :  { %v1762_v52 = vmul.f32 %v1760_v48, %v1741_v32 }
 0x59f   :  { %1767 = vrot.lane.b32.xlu1 %v1762_v52, %s17057_s28 }
 0x5a0   :  { %v1776_v54 = vpop.permute.xlu0 %1775 }
 0x5a1   :  { %v17527_v55 = vsel %vm1765_vm10, %v1776_v54, %v17465_v23 }
 0x5a2   :  { %2275 = vrot.lane.b32.xlu0 %v17527_v55, %s17057_s28 }
 0x611   :  { %v1768_v59 = vpop.permute.xlu1 %1767 }
 0x612   :  { %v1770_v60 = vsel %vm1765_vm10, %v1768_v59, 0.0  ;;  %v17532_v62 = vsel %vm1765_vm10, %v1768_v59, %v17470_v16 }
 0x613   :  { %1771 = vst.msk [vmem:[#allocation2 + $0x2] sm:$0x3] %vm1235_vm8, %v1770_v60  ;;  %v1783_v2 = vsel %vm718_vm7, %v17532_v62, 0 }
 0x614   :  { %1772 = vst.msk [vmem:[#allocation2 + $0x1c] sm:$0x3] %vm1237_vm9, %v1770_v60  ;;  %v1854_v3 = vand.u32 4294901760, %v1783_v2  ;;  %v2276_v18 = vpop.permute.xlu0 %2275 }
 0x616   :  { %v1855_v4 = vsub.f32 %v1783_v2, %v1854_v3 }
 0x618   :  { %v1856_v5 = vand.u32 4294901760, %v1855_v4 }
 0x61a   :  { %v1857_v6 = vsub.f32 %v1855_v4, %v1856_v5 }
 0x61c   :  { %v1858_v7 = vand.u32 4294901760, %v1857_v6  ;;  %v13171_v6 = vld [vmem:[%s18833_s1 + $0x6] sm:$0x3] }
 0x61d   :  { %vm2828_vm12 = vcmp.gt.f32.partialorder %v13171_v6, 0.0 }
 0x61e   :  { %14223 = vmatmul.mubr.f32.vlgmr.msra.gmra.mrb[2].mxu1 %v1858_v7 }
 0x61f   :  { %15770 = vmatpush3.bf16.msra.mxu1 %v17267_v61  ;;  %14233 = vmatprep.mubr.msk.f32.mxu1 %vm17053_vm0, %v17054_v1 }
 0x620   :  { %15771 = vmatprep.subr.bf16.mxu1 %v17052_v0 }
 0x623   :  { %15773 = vmatpush3.bf16.msra.mxu1 %v17289_v34 }
 0x624   :  { %15774 = vmatprep.subr.bf16.mxu1 %v17052_v0 }
 0x626   :  { %14234 = vmatmul.mubr.f32.vlgmr.msra.gmra.mrb[2].mxu1 %v1854_v3 }
 0x627   :  { %15776 = vmatpush3.bf16.msra.mxu1 %v17295_v36  ;;  %14244 = vmatprep.mubr.msk.f32.mxu1 %vm17053_vm0, %v17054_v1 }
 0x628   :  { %15777 = vmatprep.subr.bf16.mxu1 %v17052_v0 }
 0x62b   :  { %15779 = vmatpush3.bf16.msra.mxu1 %v17304_v37 }
 0x62c   :  { %15780 = vmatprep.subr.bf16.mxu1 %v17052_v0 }
 0x62e   :  { %14245 = vmatmul.mubr.f32.vlgmr.msra.gmra.mrb[2].mxu1 %v1855_v4 }
 0x62f   :  { %15782 = vmatpush3.bf16.msra.mxu1 %v17316_v39  ;;  %14255 = vmatprep.mubr.msk.f32.mxu1 %vm17053_vm0, %v17054_v1 }
 0x630   :  { %15783 = vmatprep.subr.bf16.mxu1 %v17052_v0 }
 0x633   :  { %15785 = vmatpush3.bf16.msra.mxu1 %v17329_v9 }
 0x634   :  { %15786 = vmatprep.subr.bf16.mxu1 %v17052_v0 }
 0x636   :  { %14256 = vmatmul.mubr.f32.vlgmr.msra.gmra.mrb[2].mxu1 %v1856_v5 }
 0x637   :  { %15788 = vmatpush3.bf16.msra.mxu1 %v17345_v13  ;;  %14266 = vmatprep.mubr.msk.f32.mxu1 %vm17053_vm0, %v17054_v1 }
 0x638   :  { %15789 = vmatprep.subr.bf16.mxu1 %v17052_v0 }
 0x63b   :  { %15791 = vmatpush3.bf16.msra.mxu1 %v17355_v14 }
 0x63c   :  { %15792 = vmatprep.subr.bf16.mxu1 %v17052_v0 }
 0x63e   :  { %14267 = vmatmul.mubr.f32.vlgmr.msra.gmra.mrb[2].mxu1 %v1854_v3 }
 0x63f   :  { %15794 = vmatpush3.bf16.msra.mxu1 %v17316_v39  ;;  %14277 = vmatprep.mubr.msk.f32.mxu1 %vm17053_vm0, %v17054_v1 }
 0x640   :  { %15795 = vmatprep.subr.bf16.mxu1 %v17052_v0 }
 0x643   :  { %15797 = vmatpush3.bf16.msra.mxu1 %v17329_v9 }
 0x644   :  { %15834 = vmatprep.subr.bf16.mxu1 %v17052_v0 }
 0x646   :  { %14278 = vmatmul.mubr.f32.vlgmr.msra.gmra.mrb[2].mxu1 %v1854_v3 }
 0x647   :  { %15836 = vmatpush3.bf16.msra.mxu1 %v17316_v39  ;;  %14354 = vmatprep.mubr.msk.f32.mxu1 %vm17053_vm0, %v17054_v1 }
 0x648   :  { %15837 = vmatprep.subr.bf16.mxu1 %v17052_v0 }
 0x64b   :  { %15839 = vmatpush3.bf16.msra.mxu1 %v17329_v9 }
 0x64c   :  { %15840 = vmatprep.subr.bf16.mxu1 %v17052_v0 }
 0x719   :  { %v2266_v11 = vpop.f32.mrb[2].mxu1 }
 0x71a   :  { %v16589_v12 = vadd.f32 %v2266_v11, %v1780_v8  ;;  %v14279_v15 = vpop.f32.mrb[3].mxu1 }
 0x71c   :  { %v2270_v23 = vmul.f32 %v16589_v12, %v17441_v56 }
 0x71e   :  { %16937 = vtanh.f32 %v2270_v23 }
 0x728   :  { %v16938_v28 = vpop.eup %16937 }
 0x729   :  { %v2272_v40 = vmul.f32 %v16938_v28, %v17441_v56 }
 0x72b   :  { %v2273_v10 = vadd.f32 %v2272_v40, %v17454_v63 }
 0x72d   :  { %2280 = vrot.lane.b32.xlu1 %v2273_v10, %s17056_s4  ;;  %v2278_v19 = vmul.f32 %v2276_v18, %v2273_v10 }
 0x79f   :  { %v2281_v16 = vpop.permute.xlu1 %2280 }
 0x7a0   :  { %v2283_v17 = vmul.f32 %v2281_v16, %v2273_v10 }
 0x7a2   :  { %2285 = vrot.lane.b32.xlu1 %v2283_v17, %s17057_s28 }
 0x814   :  { %v2286_v51 = vpop.permute.xlu1 %2285 }
 0x815   :  { %v2288_v20 = vadd.f32 %v2286_v51, %v2278_v19 }
 0x817   :  { %16939 = vtanh.f32 %v2288_v20 }
 0x821   :  { %v16940_v21 = vpop.eup %16939 }
 0x822   :  { %2291 = vrot.lane.b32.xlu0 %v16940_v21, %s17056_s4 }
 0x826   :  { %2307 = vrot.lane.b32.xlu0 %v2288_v20, %s17058_s3 }
 0x894   :  { %v2292_v24 = vpop.permute.xlu0 %2291 }
 0x895   :  { %v2294_v25 = vmul.f32 %v2292_v24, %v2273_v10 }
 0x897   :  { %2299 = vrot.lane.b32.xlu1 %v2294_v25, %s17057_s28 }
 0x898   :  { %v2308_v26 = vpop.permute.xlu0 %2307 }
 0x899   :  { %v17587_v27 = vsel %vm2297_vm11, %v2308_v26, %v17527_v55 }
 0x89a   :  { %2806 = vrot.lane.b32.xlu0 %v17587_v27, %s17057_s28 }
 0x909   :  { %v2300_v29 = vpop.permute.xlu1 %2299 }
 0x90a   :  { %v2302_v30 = vsel %vm2297_vm11, %v2300_v29, 0.0  ;;  %v17592_v31 = vsel %vm2297_vm11, %v2300_v29, %v17532_v62 }
 0x90b   :  { %2303 = vst.msk [vmem:[#allocation2 + $0x4] sm:$0x3] %vm1235_vm8, %v2302_v30  ;;  %v2314_v32 = vsel %vm718_vm7, %v17592_v31, 0 }
 0x90c   :  { %2304 = vst.msk [vmem:[#allocation2 + $0x1a] sm:$0x3] %vm1237_vm9, %v2302_v30  ;;  %v2385_v33 = vand.u32 4294901760, %v2314_v32  ;;  %v2807_v2 = vpop.permute.xlu0 %2806 }
 0x90e   :  { %v2386_v35 = vsub.f32 %v2314_v32, %v2385_v33 }
 0x910   :  { %v2387_v38 = vand.u32 4294901760, %v2386_v35 }
 0x912   :  { %v2388_v41 = vsub.f32 %v2386_v35, %v2387_v38 }
 0x914   :  { %v2389_v42 = vand.u32 4294901760, %v2388_v41 }
 0x916   :  { %14289 = vmatmul.mubr.f32.vlgmr.msra.gmra.mrb[8].mxu0 %v2389_v42 }
 0x917   :  { %15806 = vmatpush3.bf16.msra.mxu0 %v17267_v61  ;;  %14299 = vmatprep.mubr.msk.f32.mxu0 %vm17053_vm0, %v17054_v1 }
 0x918   :  { %15807 = vmatprep.subr.bf16.mxu0 %v17052_v0 }
 0x91b   :  { %15809 = vmatpush3.bf16.msra.mxu0 %v17289_v34 }
 0x91c   :  { %15810 = vmatprep.subr.bf16.mxu0 %v17052_v0 }
 0x91e   :  { %14300 = vmatmul.mubr.f32.vlgmr.msra.gmra.mrb[8].mxu0 %v2385_v33 }
 0x91f   :  { %15812 = vmatpush3.bf16.msra.mxu0 %v17295_v36  ;;  %14310 = vmatprep.mubr.msk.f32.mxu0 %vm17053_vm0, %v17054_v1 }
 0x920   :  { %15813 = vmatprep.subr.bf16.mxu0 %v17052_v0 }
 0x923   :  { %15815 = vmatpush3.bf16.msra.mxu0 %v17304_v37 }
 0x924   :  { %15816 = vmatprep.subr.bf16.mxu0 %v17052_v0 }
 0x926   :  { %14311 = vmatmul.mubr.f32.vlgmr.msra.gmra.mrb[8].mxu0 %v2386_v35 }
 0x927   :  { %15818 = vmatpush3.bf16.msra.mxu0 %v17316_v39  ;;  %14321 = vmatprep.mubr.msk.f32.mxu0 %vm17053_vm0, %v17054_v1 }
 0x928   :  { %15819 = vmatprep.subr.bf16.mxu0 %v17052_v0 }
 0x92b   :  { %15821 = vmatpush3.bf16.msra.mxu0 %v17329_v9 }
 0x92c   :  { %15822 = vmatprep.subr.bf16.mxu0 %v17052_v0 }
 0x92e   :  { %14322 = vmatmul.mubr.f32.vlgmr.msra.gmra.mrb[8].mxu0 %v2387_v38  ;;  %v13172_v38 = vld [vmem:[%s18833_s1 + $0x8] sm:$0x3] }
 0x92f   :  { %15824 = vmatpush3.bf16.msra.mxu0 %v17345_v13  ;;  %14332 = vmatprep.mubr.msk.f32.mxu0 %vm17053_vm0, %v17054_v1  ;;  %vm3361_vm13 = vcmp.gt.f32.partialorder %v13172_v38, 0.0 }
 0x930   :  { %15825 = vmatprep.subr.bf16.mxu0 %v17052_v0 }
 0x933   :  { %15827 = vmatpush3.bf16.msra.mxu0 %v17355_v14 }
 0x934   :  { %15828 = vmatprep.subr.bf16.mxu0 %v17052_v0 }
 0x936   :  { %14333 = vmatmul.mubr.f32.vlgmr.msra.gmra.mrb[8].mxu0 %v2385_v33 }
 0x937   :  { %15830 = vmatpush3.bf16.msra.mxu0 %v17316_v39  ;;  %14343 = vmatprep.mubr.msk.f32.mxu0 %vm17053_vm0, %v17054_v1 }
 0x938   :  { %15831 = vmatprep.subr.bf16.mxu0 %v17052_v0 }
 0x93b   :  { %15833 = vmatpush3.bf16.msra.mxu0 %v17329_v9 }
 0x93c   :  { %15870 = vmatprep.subr.bf16.mxu0 %v17052_v0 }
 0x93e   :  { %14344 = vmatmul.mubr.f32.vlgmr.msra.gmra.mrb[8].mxu0 %v2385_v33 }
 0x93f   :  { %15872 = vmatpush3.bf16.msra.mxu0 %v17316_v39  ;;  %14420 = vmatprep.mubr.msk.f32.mxu0 %vm17053_vm0, %v17054_v1 }
 0x940   :  { %15873 = vmatprep.subr.bf16.mxu0 %v17052_v0 }
 0x943   :  { %15875 = vmatpush3.bf16.msra.mxu0 %v17329_v9 }
 0x944   :  { %15876 = vmatprep.subr.bf16.mxu0 %v17052_v0 }
 0xa11   :  { %v2797_v46 = vpop.f32.mrb[8].mxu0 }
 0xa12   :  { %v16590_v47 = vadd.f32 %v2797_v46, %v2311_v45  ;;  %v14345_v48 = vpop.f32.mrb[9].mxu0 }
 0xa14   :  { %v2801_v52 = vmul.f32 %v16590_v47, %v17441_v56 }
 0xa16   :  { %16941 = vtanh.f32 %v2801_v52 }
 0xa20   :  { %v16942_v54 = vpop.eup %16941 }
 0xa21   :  { %v2803_v55 = vmul.f32 %v16942_v54, %v17441_v56 }
 0xa23   :  { %v2804_v59 = vadd.f32 %v2803_v55, %v17454_v63 }
 0xa25   :  { %2811 = vrot.lane.b32.xlu1 %v2804_v59, %s17056_s4  ;;  %v2809_v3 = vmul.f32 %v2807_v2, %v2804_v59 }
 0xa97   :  { %v2812_v60 = vpop.permute.xlu1 %2811 }
 0xa98   :  { %v2814_v62 = vmul.f32 %v2812_v60, %v2804_v59 }
 0xa9a   :  { %2816 = vrot.lane.b32.xlu1 %v2814_v62, %s17057_s28 }
 0xb0c   :  { %v2817_v53 = vpop.permute.xlu1 %2816 }
 0xb0d   :  { %v2819_v4 = vadd.f32 %v2817_v53, %v2809_v3  ;;  %v3379_v3 = vrot.slane %v17449_v58, 2 }
 0xb0f   :  { %16943 = vtanh.f32 %v2819_v4 }
 0xb19   :  { %v16944_v5 = vpop.eup %16943 }
 0xb1a   :  { %2822 = vrot.lane.b32.xlu0 %v16944_v5, %s17056_s4 }
 0xb1e   :  { %2838 = vrot.lane.b32.xlu0 %v2819_v4, %s17058_s3 }
 0xb8c   :  { %v2823_v7 = vpop.permute.xlu0 %2822 }
 0xb8d   :  { %v2825_v8 = vmul.f32 %v2823_v7, %v2804_v59 }
 0xb8f   :  { %2830 = vrot.lane.b32.xlu1 %v2825_v8, %s17057_s28 }
 0xb90   :  { %v2839_v11 = vpop.permute.xlu0 %2838 }
 0xb91   :  { %v17647_v12 = vsel %vm2828_vm12, %v2839_v11, %v17587_v27 }
 0xb92   :  { %3339 = vrot.lane.b32.xlu0 %v17647_v12, %s17057_s28 }
 0xc01   :  { %v2831_v15 = vpop.permute.xlu1 %2830 }
 0xc02   :  { %v2833_v23 = vsel %vm2828_vm12, %v2831_v15, 0.0  ;;  %v17652_v28 = vsel %vm2828_vm12, %v2831_v15, %v17592_v31 }
 0xc03   :  { %2834 = vst.msk [vmem:[#allocation2 + $0x6] sm:$0x3] %vm1235_vm8, %v2833_v23  ;;  %v2847_v40 = vsel %vm718_vm7, %v17652_v28, 0 }
 0xc04   :  { %2835 = vst.msk [vmem:[#allocation2 + $0x18] sm:$0x3] %vm1237_vm9, %v2833_v23  ;;  %v2918_v10 = vand.u32 4294901760, %v2847_v40  ;;  %v3340_v30 = vpop.permute.xlu0 %3339 }
 0xc06   :  { %v2919_v16 = vsub.f32 %v2847_v40, %v2918_v10 }
 0xc08   :  { %v2920_v17 = vand.u32 4294901760, %v2919_v16 }
 0xc0a   :  { %v2921_v18 = vsub.f32 %v2919_v16, %v2920_v17 }
 0xc0c   :  { %v2922_v19 = vand.u32 4294901760, %v2921_v18 }
 0xc0e   :  { %14355 = vmatmul.mubr.f32.vlgmr.msra.gmra.mrb[4].mxu1 %v2922_v19 }
 0xc0f   :  { %15842 = vmatpush3.bf16.msra.mxu1 %v17267_v61  ;;  %14365 = vmatprep.mubr.msk.f32.mxu1 %vm17053_vm0, %v17054_v1 }
 0xc10   :  { %15843 = vmatprep.subr.bf16.mxu1 %v17052_v0 }
 0xc13   :  { %15845 = vmatpush3.bf16.msra.mxu1 %v17289_v34 }
 0xc14   :  { %15846 = vmatprep.subr.bf16.mxu1 %v17052_v0 }
 0xc16   :  { %14366 = vmatmul.mubr.f32.vlgmr.msra.gmra.mrb[4].mxu1 %v2918_v10 }
 0xc17   :  { %15848 = vmatpush3.bf16.msra.mxu1 %v17295_v36  ;;  %14376 = vmatprep.mubr.msk.f32.mxu1 %vm17053_vm0, %v17054_v1 }
 0xc18   :  { %15849 = vmatprep.subr.bf16.mxu1 %v17052_v0 }
 0xc1b   :  { %15851 = vmatpush3.bf16.msra.mxu1 %v17304_v37 }
 0xc1c   :  { %15852 = vmatprep.subr.bf16.mxu1 %v17052_v0 }
 0xc1e   :  { %14377 = vmatmul.mubr.f32.vlgmr.msra.gmra.mrb[4].mxu1 %v2919_v16 }
 0xc1f   :  { %15854 = vmatpush3.bf16.msra.mxu1 %v17316_v39  ;;  %14387 = vmatprep.mubr.msk.f32.mxu1 %vm17053_vm0, %v17054_v1 }
 0xc20   :  { %15855 = vmatprep.subr.bf16.mxu1 %v17052_v0 }
 0xc23   :  { %15857 = vmatpush3.bf16.msra.mxu1 %v17329_v9 }
 0xc24   :  { %15858 = vmatprep.subr.bf16.mxu1 %v17052_v0 }
 0xc26   :  { %14388 = vmatmul.mubr.f32.vlgmr.msra.gmra.mrb[4].mxu1 %v2920_v17  ;;  %v13173_v17 = vld [vmem:[%s18833_s1 + $0xa] sm:$0x3] }
 0xc27   :  { %15860 = vmatpush3.bf16.msra.mxu1 %v17345_v13  ;;  %14398 = vmatprep.mubr.msk.f32.mxu1 %vm17053_vm0, %v17054_v1  ;;  %vm3896_vm14 = vcmp.gt.f32.partialorder %v13173_v17, 0.0 }
 0xc28   :  { %15861 = vmatprep.subr.bf16.mxu1 %v17052_v0 }
 0xc2b   :  { %15863 = vmatpush3.bf16.msra.mxu1 %v17355_v14 }
 0xc2c   :  { %15864 = vmatprep.subr.bf16.mxu1 %v17052_v0 }
 0xc2e   :  { %14399 = vmatmul.mubr.f32.vlgmr.msra.gmra.mrb[4].mxu1 %v2918_v10 }
 0xc2f   :  { %15866 = vmatpush3.bf16.msra.mxu1 %v17316_v39  ;;  %14409 = vmatprep.mubr.msk.f32.mxu1 %vm17053_vm0, %v17054_v1 }
 0xc30   :  { %15867 = vmatprep.subr.bf16.mxu1 %v17052_v0 }
 0xc33   :  { %15869 = vmatpush3.bf16.msra.mxu1 %v17329_v9 }
 0xc34   :  { %15906 = vmatprep.subr.bf16.mxu1 %v17052_v0 }
 0xc36   :  { %14410 = vmatmul.mubr.f32.vlgmr.msra.gmra.mrb[4].mxu1 %v2918_v10 }
 0xc37   :  { %15908 = vmatpush3.bf16.msra.mxu1 %v17316_v39  ;;  %14486 = vmatprep.mubr.msk.f32.mxu1 %vm17053_vm0, %v17054_v1 }
 0xc38   :  { %15909 = vmatprep.subr.bf16.mxu1 %v17052_v0 }
 0xc3b   :  { %15911 = vmatpush3.bf16.msra.mxu1 %v17329_v9 }
 0xc3c   :  { %15912 = vmatprep.subr.bf16.mxu1 %v17052_v0 }
 0xd09   :  { %v3330_v51 = vpop.f32.mrb[4].mxu1 }
 0xd0a   :  { %v16591_v20 = vadd.f32 %v3330_v51, %v17445_v57  ;;  %v14411_v21 = vpop.f32.mrb[5].mxu1 }
 0xd0c   :  { %v3334_v22 = vmul.f32 %v16591_v20, %v17441_v56 }
 0xd0e   :  { %16945 = vtanh.f32 %v3334_v22 }
 0xd18   :  { %v16946_v24 = vpop.eup %16945 }
 0xd19   :  { %v3336_v25 = vmul.f32 %v16946_v24, %v17441_v56 }
 0xd1b   :  { %v3337_v26 = vadd.f32 %v3336_v25, %v17454_v63 }
 0xd1d   :  { %3344 = vrot.lane.b32.xlu1 %v3337_v26, %s17056_s4  ;;  %v3342_v31 = vmul.f32 %v3340_v30, %v3337_v26 }
 0xd8f   :  { %v3345_v27 = vpop.permute.xlu1 %3344 }
 0xd90   :  { %v3347_v29 = vmul.f32 %v3345_v27, %v3337_v26 }
 0xd92   :  { %3349 = vrot.lane.b32.xlu1 %v3347_v29, %s17057_s28 }
 0xe04   :  { %v3350_v32 = vpop.permute.xlu1 %3349 }
 0xe05   :  { %v3352_v33 = vadd.f32 %v3350_v32, %v3342_v31  ;;  %v3911_v32 = vrot.slane %v17445_v57, 4 }
 0xe07   :  { %16947 = vtanh.f32 %v3352_v33 }
 0xe11   :  { %v16948_v35 = vpop.eup %16947 }
 0xe12   :  { %3355 = vrot.lane.b32.xlu0 %v16948_v35, %s17056_s4 }
 0xe16   :  { %3371 = vrot.lane.b32.xlu0 %v3352_v33, %s17058_s3 }
 0xe84   :  { %v3356_v41 = vpop.permute.xlu0 %3355 }
 0xe85   :  { %v3358_v42 = vmul.f32 %v3356_v41, %v3337_v26 }
 0xe87   :  { %3363 = vrot.lane.b32.xlu1 %v3358_v42, %s17057_s28 }
 0xe88   :  { %v3372_v45 = vpop.permute.xlu0 %3371 }
 0xe89   :  { %v17707_v46 = vsel %vm3361_vm13, %v3372_v45, %v17647_v12 }
 0xe8a   :  { %3874 = vrot.lane.b32.xlu0 %v17707_v46, %s17057_s28 }
 0xef9   :  { %v3364_v47 = vpop.permute.xlu1 %3363 }
 0xefa   :  { %v3366_v48 = vsel %vm3361_vm13, %v3364_v47, 0.0  ;;  %v17712_v52 = vsel %vm3361_vm13, %v3364_v47, %v17652_v28 }
 0xefb   :  { %3367 = vst.msk [vmem:[#allocation2 + $0x8] sm:$0x3] %vm1235_vm8, %v3366_v48  ;;  %v3382_v54 = vsel %vm718_vm7, %v17712_v52, 0 }
 0xefc   :  { %3368 = vst.msk [vmem:[#allocation2 + $0x16] sm:$0x3] %vm1237_vm9, %v3366_v48  ;;  %v3453_v55 = vand.u32 4294901760, %v3382_v54  ;;  %v3875_v23 = vpop.permute.xlu0 %3874 }
 0xefe   :  { %v3454_v59 = vsub.f32 %v3382_v54, %v3453_v55 }
 0xf00   :  { %v3455_v60 = vand.u32 4294901760, %v3454_v59 }
 0xf02   :  { %v3456_v62 = vsub.f32 %v3454_v59, %v3455_v60 }
 0xf04   :  { %v3457_v2 = vand.u32 4294901760, %v3456_v62 }
 0xf06   :  { %14421 = vmatmul.mubr.f32.vlgmr.msra.gmra.mrb[10].mxu0 %v3457_v2 }
 0xf07   :  { %15878 = vmatpush3.bf16.msra.mxu0 %v17267_v61  ;;  %14431 = vmatprep.mubr.msk.f32.mxu0 %vm17053_vm0, %v17054_v1 }
 0xf08   :  { %15879 = vmatprep.subr.bf16.mxu0 %v17052_v0 }
 0xf0b   :  { %15881 = vmatpush3.bf16.msra.mxu0 %v17289_v34 }
 0xf0c   :  { %15882 = vmatprep.subr.bf16.mxu0 %v17052_v0 }
 0xf0e   :  { %14432 = vmatmul.mubr.f32.vlgmr.msra.gmra.mrb[10].mxu0 %v3453_v55 }
 0xf0f   :  { %15884 = vmatpush3.bf16.msra.mxu0 %v17295_v36  ;;  %14442 = vmatprep.mubr.msk.f32.mxu0 %vm17053_vm0, %v17054_v1 }
 0xf10   :  { %15885 = vmatprep.subr.bf16.mxu0 %v17052_v0 }
 0xf13   :  { %15887 = vmatpush3.bf16.msra.mxu0 %v17304_v37 }
 0xf14   :  { %15888 = vmatprep.subr.bf16.mxu0 %v17052_v0 }
 0xf16   :  { %14443 = vmatmul.mubr.f32.vlgmr.msra.gmra.mrb[10].mxu0 %v3454_v59 }
 0xf17   :  { %15890 = vmatpush3.bf16.msra.mxu0 %v17316_v39  ;;  %14453 = vmatprep.mubr.msk.f32.mxu0 %vm17053_vm0, %v17054_v1 }
 0xf18   :  { %15891 = vmatprep.subr.bf16.mxu0 %v17052_v0 }
 0xf1b   :  { %15893 = vmatpush3.bf16.msra.mxu0 %v17329_v9 }
 0xf1c   :  { %15894 = vmatprep.subr.bf16.mxu0 %v17052_v0 }
 0xf1e   :  { %14454 = vmatmul.mubr.f32.vlgmr.msra.gmra.mrb[10].mxu0 %v3455_v60  ;;  %v13174_v60 = vld [vmem:[%s18833_s1 + $0xc] sm:$0x3] }
 0xf1f   :  { %15896 = vmatpush3.bf16.msra.mxu0 %v17345_v13  ;;  %14464 = vmatprep.mubr.msk.f32.mxu0 %vm17053_vm0, %v17054_v1  ;;  %vm4428_vm15 = vcmp.gt.f32.partialorder %v13174_v60, 0.0 }
 0xf20   :  { %15897 = vmatprep.subr.bf16.mxu0 %v17052_v0 }
 0xf23   :  { %15899 = vmatpush3.bf16.msra.mxu0 %v17355_v14 }
 0xf24   :  { %15900 = vmatprep.subr.bf16.mxu0 %v17052_v0 }
 0xf26   :  { %14465 = vmatmul.mubr.f32.vlgmr.msra.gmra.mrb[10].mxu0 %v3453_v55 }
 0xf27   :  { %15902 = vmatpush3.bf16.msra.mxu0 %v17316_v39  ;;  %14475 = vmatprep.mubr.msk.f32.mxu0 %vm17053_vm0, %v17054_v1 }
 0xf28   :  { %15903 = vmatprep.subr.bf16.mxu0 %v17052_v0 }
 0xf2b   :  { %15905 = vmatpush3.bf16.msra.mxu0 %v17329_v9 }
 0xf2c   :  { %15942 = vmatprep.subr.bf16.mxu0 %v17052_v0 }
 0xf2e   :  { %14476 = vmatmul.mubr.f32.vlgmr.msra.gmra.mrb[10].mxu0 %v3453_v55 }
 0xf2f   :  { %15944 = vmatpush3.bf16.msra.mxu0 %v17316_v39  ;;  %14552 = vmatprep.mubr.msk.f32.mxu0 %vm17053_vm0, %v17054_v1 }
 0xf30   :  { %15945 = vmatprep.subr.bf16.mxu0 %v17052_v0 }
 0xf33   :  { %15947 = vmatpush3.bf16.msra.mxu0 %v17329_v9 }
 0xf34   :  { %15948 = vmatprep.subr.bf16.mxu0 %v17052_v0 }
0x1001   :  { %v3865_v53 = vpop.f32.mrb[10].mxu0 }
0x1002   :  { %v16592_v4 = vadd.f32 %v3865_v53, %v3379_v3  ;;  %v14477_v5 = vpop.f32.mrb[11].mxu0 }
0x1004   :  { %v3869_v6 = vmul.f32 %v16592_v4, %v17441_v56 }
0x1006   :  { %16949 = vtanh.f32 %v3869_v6 }
0x1010   :  { %v16950_v7 = vpop.eup %16949 }
0x1011   :  { %v3871_v8 = vmul.f32 %v16950_v7, %v17441_v56 }
0x1013   :  { %v3872_v11 = vadd.f32 %v3871_v8, %v17454_v63 }
0x1015   :  { %3879 = vrot.lane.b32.xlu1 %v3872_v11, %s17056_s4  ;;  %v3877_v28 = vmul.f32 %v3875_v23, %v3872_v11 }
0x1087   :  { %v3880_v12 = vpop.permute.xlu1 %3879 }
0x1088   :  { %v3882_v15 = vmul.f32 %v3880_v12, %v3872_v11 }
0x108a   :  { %3884 = vrot.lane.b32.xlu1 %v3882_v15, %s17057_s28 }
0x10fc   :  { %v3885_v40 = vpop.permute.xlu1 %3884 }
0x10fd   :  { %v3887_v10 = vadd.f32 %v3885_v40, %v3877_v28  ;;  %v4442_v28 = vrot.slane %v17449_v58, 6 }
0x10ff   :  { %16951 = vtanh.f32 %v3887_v10 }
0x1109   :  { %v16952_v16 = vpop.eup %16951 }
0x110a   :  { %3890 = vrot.lane.b32.xlu0 %v16952_v16, %s17056_s4 }
0x110e   :  { %3906 = vrot.lane.b32.xlu0 %v3887_v10, %s17058_s3 }
0x117c   :  { %v3891_v18 = vpop.permute.xlu0 %3890 }
0x117d   :  { %v3893_v19 = vmul.f32 %v3891_v18, %v3872_v11 }
0x117f   :  { %3898 = vrot.lane.b32.xlu1 %v3893_v19, %s17057_s28 }
0x1180   :  { %v3907_v51 = vpop.permute.xlu0 %3906 }
0x1181   :  { %v17767_v20 = vsel %vm3896_vm14, %v3907_v51, %v17707_v46 }
0x1182   :  { %4406 = vrot.lane.b32.xlu0 %v17767_v20, %s17057_s28 }
0x11f1   :  { %v3899_v21 = vpop.permute.xlu1 %3898 }
0x11f2   :  { %v3901_v22 = vsel %vm3896_vm14, %v3899_v21, 0.0  ;;  %v17772_v24 = vsel %vm3896_vm14, %v3899_v21, %v17712_v52 }
0x11f3   :  { %3902 = vst.msk [vmem:[#allocation2 + $0xa] sm:$0x3] %vm1235_vm8, %v3901_v22  ;;  %v3914_v25 = vsel %vm718_vm7, %v17772_v24, 0 }
0x11f4   :  { %3903 = vst.msk [vmem:[#allocation2 + $0x14] sm:$0x3] %vm1237_vm9, %v3901_v22  ;;  %v3985_v26 = vand.u32 4294901760, %v3914_v25  ;;  %v4407_v52 = vpop.permute.xlu0 %4406 }
0x11f6   :  { %v3986_v27 = vsub.f32 %v3914_v25, %v3985_v26 }
0x11f8   :  { %v3987_v29 = vand.u32 4294901760, %v3986_v27 }
0x11fa   :  { %v3988_v30 = vsub.f32 %v3986_v27, %v3987_v29 }
0x11fc   :  { %v3989_v31 = vand.u32 4294901760, %v3988_v30 }
0x11fe   :  { %14487 = vmatmul.mubr.f32.vlgmr.msra.gmra.mrb[6].mxu1 %v3989_v31 }
0x11ff   :  { %15914 = vmatpush3.bf16.msra.mxu1 %v17267_v61  ;;  %14497 = vmatprep.mubr.msk.f32.mxu1 %vm17053_vm0, %v17054_v1 }
0x1200   :  { %15915 = vmatprep.subr.bf16.mxu1 %v17052_v0 }
0x1203   :  { %15917 = vmatpush3.bf16.msra.mxu1 %v17289_v34 }
0x1204   :  { %15918 = vmatprep.subr.bf16.mxu1 %v17052_v0 }
0x1206   :  { %14498 = vmatmul.mubr.f32.vlgmr.msra.gmra.mrb[6].mxu1 %v3985_v26 }
0x1207   :  { %15920 = vmatpush3.bf16.msra.mxu1 %v17295_v36  ;;  %14508 = vmatprep.mubr.msk.f32.mxu1 %vm17053_vm0, %v17054_v1 }
0x1208   :  { %15921 = vmatprep.subr.bf16.mxu1 %v17052_v0 }
0x120b   :  { %15923 = vmatpush3.bf16.msra.mxu1 %v17304_v37 }
0x120c   :  { %15924 = vmatprep.subr.bf16.mxu1 %v17052_v0 }
0x120e   :  { %14509 = vmatmul.mubr.f32.vlgmr.msra.gmra.mrb[6].mxu1 %v3986_v27  ;;  %v13175_v27 = vld [vmem:[%s18833_s1 + $0xe] sm:$0x3] }
0x120f   :  { %15926 = vmatpush3.bf16.msra.mxu1 %v17316_v39  ;;  %14519 = vmatprep.mubr.msk.f32.mxu1 %vm17053_vm0, %v17054_v1  ;;  %vm4959_vm1 = vcmp.gt.f32.partialorder %v13175_v27, 0.0 }
0x1210   :  { %15927 = vmatprep.subr.bf16.mxu1 %v17052_v0 }
0x1213   :  { %15929 = vmatpush3.bf16.msra.mxu1 %v17329_v9 }
0x1214   :  { %15930 = vmatprep.subr.bf16.mxu1 %v17052_v0 }
0x1216   :  { %14520 = vmatmul.mubr.f32.vlgmr.msra.gmra.mrb[6].mxu1 %v3987_v29 }
0x1217   :  { %15932 = vmatpush3.bf16.msra.mxu1 %v17345_v13  ;;  %14530 = vmatprep.mubr.msk.f32.mxu1 %vm17053_vm0, %v17054_v1 }
0x1218   :  { %15933 = vmatprep.subr.bf16.mxu1 %v17052_v0 }
0x121b   :  { %15935 = vmatpush3.bf16.msra.mxu1 %v17355_v14 }
0x121c   :  { %15936 = vmatprep.subr.bf16.mxu1 %v17052_v0 }
0x121e   :  { %14531 = vmatmul.mubr.f32.vlgmr.msra.gmra.mrb[6].mxu1 %v3985_v26 }
0x121f   :  { %15938 = vmatpush3.bf16.msra.mxu1 %v17316_v39  ;;  %14541 = vmatprep.mubr.msk.f32.mxu1 %vm17053_vm0, %v17054_v1 }
0x1220   :  { %15939 = vmatprep.subr.bf16.mxu1 %v17052_v0 }
0x1223   :  { %15941 = vmatpush3.bf16.msra.mxu1 %v17329_v9 }
0x1224   :  { %15978 = vmatprep.subr.bf16.mxu1 %v17052_v0 }
0x1226   :  { %14542 = vmatmul.mubr.f32.vlgmr.msra.gmra.mrb[6].mxu1 %v3985_v26 }
0x1227   :  { %15980 = vmatpush3.bf16.msra.mxu1 %v17316_v39  ;;  %14618 = vmatprep.mubr.msk.f32.mxu1 %vm17053_vm0, %v17054_v1 }
0x1228   :  { %15981 = vmatprep.subr.bf16.mxu1 %v17052_v0 }
0x122b   :  { %15983 = vmatpush3.bf16.msra.mxu1 %v17329_v9 }
0x122c   :  { %15984 = vmatprep.subr.bf16.mxu1 %v17052_v0 }
0x12f9   :  { %v4397_v33 = vpop.f32.mrb[6].mxu1 }
0x12fa   :  { %v16593_v35 = vadd.f32 %v4397_v33, %v3911_v32  ;;  %v14543_v38 = vpop.f32.mrb[7].mxu1 }
0x12fc   :  { %v4401_v41 = vmul.f32 %v16593_v35, %v17441_v56 }
0x12fe   :  { %16953 = vtanh.f32 %v4401_v41 }
0x1308   :  { %v16954_v42 = vpop.eup %16953 }
0x1309   :  { %v4403_v45 = vmul.f32 %v16954_v42, %v17441_v56 }
0x130b   :  { %v4404_v46 = vadd.f32 %v4403_v45, %v17454_v63 }
0x130d   :  { %4411 = vrot.lane.b32.xlu1 %v4404_v46, %s17056_s4  ;;  %v4409_v54 = vmul.f32 %v4407_v52, %v4404_v46 }
0x137f   :  { %v4412_v47 = vpop.permute.xlu1 %4411 }
0x1380   :  { %v4414_v48 = vmul.f32 %v4412_v47, %v4404_v46 }
0x1382   :  { %4416 = vrot.lane.b32.xlu1 %v4414_v48, %s17057_s28 }
0x13f4   :  { %v4417_v57 = vpop.permute.xlu1 %4416 }
0x13f5   :  { %v4419_v55 = vadd.f32 %v4417_v57, %v4409_v54 }
0x13f7   :  { %16955 = vtanh.f32 %v4419_v55 }
0x1401   :  { %v16956_v59 = vpop.eup %16955 }
0x1402   :  { %4422 = vrot.lane.b32.xlu0 %v16956_v59, %s17056_s4 }
0x1406   :  { %4438 = vrot.lane.b32.xlu0 %v4419_v55, %s17058_s3 }
0x1474   :  { %v4423_v62 = vpop.permute.xlu0 %4422 }
0x1475   :  { %v4425_v2 = vmul.f32 %v4423_v62, %v4404_v46 }
0x1477   :  { %4430 = vrot.lane.b32.xlu1 %v4425_v2, %s17057_s28 }
0x1478   :  { %v4439_v3 = vpop.permute.xlu0 %4438 }
0x1479   :  { %v17827_v53 = vsel %vm4428_vm15, %v4439_v3, %v17767_v20 }
0x147a   :  { %4937 = vrot.lane.b32.xlu0 %v17827_v53, %s17057_s28 }
0x14e9   :  { %v4431_v4 = vpop.permute.xlu1 %4430 }
0x14ea   :  { %v4433_v5 = vsel %vm4428_vm15, %v4431_v4, 0.0  ;;  %v17832_v6 = vsel %vm4428_vm15, %v4431_v4, %v17772_v24 }
0x14eb   :  { %4434 = vst.msk [vmem:[#allocation2 + $0xc] sm:$0x3] %vm1235_vm8, %v4433_v5  ;;  %v4445_v7 = vsel %vm718_vm7, %v17832_v6, 0 }
0x14ec   :  { %4435 = vst.msk [vmem:[#allocation2 + $0x12] sm:$0x3] %vm1237_vm9, %v4433_v5  ;;  %v4516_v8 = vand.u32 4294901760, %v4445_v7  ;;  %v4938_v22 = vpop.permute.xlu0 %4937 }
0x14ee   :  { %v4517_v11 = vsub.f32 %v4445_v7, %v4516_v8 }
0x14f0   :  { %v4518_v12 = vand.u32 4294901760, %v4517_v11 }
0x14f2   :  { %v4519_v15 = vsub.f32 %v4517_v11, %v4518_v12 }
0x14f4   :  { %v4520_v23 = vand.u32 4294901760, %v4519_v15 }
0x14f6   :  { %14553 = vmatmul.mubr.f32.vlgmr.msra.gmra.mrb[12].mxu0 %v4520_v23 }
0x14f7   :  { %15950 = vmatpush3.bf16.msra.mxu0 %v17267_v61  ;;  %14563 = vmatprep.mubr.msk.f32.mxu0 %vm17053_vm0, %v17054_v1 }
0x14f8   :  { %15951 = vmatprep.subr.bf16.mxu0 %v17052_v0 }
0x14fb   :  { %15953 = vmatpush3.bf16.msra.mxu0 %v17289_v34 }
0x14fc   :  { %15954 = vmatprep.subr.bf16.mxu0 %v17052_v0 }
0x14fe   :  { %14564 = vmatmul.mubr.f32.vlgmr.msra.gmra.mrb[12].mxu0 %v4516_v8 }
0x14ff   :  { %15956 = vmatpush3.bf16.msra.mxu0 %v17295_v36  ;;  %14574 = vmatprep.mubr.msk.f32.mxu0 %vm17053_vm0, %v17054_v1 }
0x1500   :  { %15957 = vmatprep.subr.bf16.mxu0 %v17052_v0 }
0x1503   :  { %15959 = vmatpush3.bf16.msra.mxu0 %v17304_v37 }
0x1504   :  { %15960 = vmatprep.subr.bf16.mxu0 %v17052_v0 }
0x1506   :  { %14575 = vmatmul.mubr.f32.vlgmr.msra.gmra.mrb[12].mxu0 %v4517_v11 }
0x1507   :  { %15962 = vmatpush3.bf16.msra.mxu0 %v17316_v39  ;;  %14585 = vmatprep.mubr.msk.f32.mxu0 %vm17053_vm0, %v17054_v1 }
0x1508   :  { %15963 = vmatprep.subr.bf16.mxu0 %v17052_v0 }
0x150b   :  { %15965 = vmatpush3.bf16.msra.mxu0 %v17329_v9 }
0x150c   :  { %15966 = vmatprep.subr.bf16.mxu0 %v17052_v0 }
0x150e   :  { %14586 = vmatmul.mubr.f32.vlgmr.msra.gmra.mrb[12].mxu0 %v4518_v12 }
0x150f   :  { %15968 = vmatpush3.bf16.msra.mxu0 %v17345_v13  ;;  %14596 = vmatprep.mubr.msk.f32.mxu0 %vm17053_vm0, %v17054_v1 }
0x1510   :  { %15969 = vmatprep.subr.bf16.mxu0 %v17052_v0 }
0x1513   :  { %15971 = vmatpush3.bf16.msra.mxu0 %v17355_v14 }
0x1514   :  { %15972 = vmatprep.subr.bf16.mxu0 %v17052_v0 }
0x1516   :  { %14597 = vmatmul.mubr.f32.vlgmr.msra.gmra.mrb[12].mxu0 %v4516_v8 }
0x1517   :  { %15974 = vmatpush3.bf16.msra.mxu0 %v17316_v39  ;;  %14607 = vmatprep.mubr.msk.f32.mxu0 %vm17053_vm0, %v17054_v1 }
0x1518   :  { %15975 = vmatprep.subr.bf16.mxu0 %v17052_v0 }
0x151b   :  { %15977 = vmatpush3.bf16.msra.mxu0 %v17329_v9 }
0x151c   :  { %16014 = vmatprep.subr.bf16.mxu0 %v17052_v0 }
0x151e   :  { %14608 = vmatmul.mubr.f32.vlgmr.msra.gmra.mrb[12].mxu0 %v4516_v8  ;;  %v13176_v8 = vld [vmem:[%s18833_s1 + $0x10] sm:$0x3] }
0x151f   :  { %16016 = vmatpush3.bf16.msra.mxu0 %v17316_v39  ;;  %14684 = vmatprep.mubr.msk.f32.mxu0 %vm17053_vm0, %v17054_v1  ;;  %vm5492_vm2 = vcmp.gt.f32.partialorder %v13176_v8, 0.0 }
0x1520   :  { %16017 = vmatprep.subr.bf16.mxu0 %v17052_v0 }
0x1523   :  { %16019 = vmatpush3.bf16.msra.mxu0 %v17329_v9 }
0x1524   :  { %16020 = vmatprep.subr.bf16.mxu0 %v17052_v0 }
0x15f1   :  { %v4928_v40 = vpop.f32.mrb[12].mxu0 }
0x15f2   :  { %v16594_v10 = vadd.f32 %v4928_v40, %v4442_v28  ;;  %v14609_v16 = vpop.f32.mrb[13].mxu0 }
0x15f4   :  { %v4932_v17 = vmul.f32 %v16594_v10, %v17441_v56 }
0x15f6   :  { %16957 = vtanh.f32 %v4932_v17 }
0x1600   :  { %v16958_v18 = vpop.eup %16957 }
0x1601   :  { %v4934_v19 = vmul.f32 %v16958_v18, %v17441_v56 }
0x1603   :  { %v4935_v51 = vadd.f32 %v4934_v19, %v17454_v63 }
0x1605   :  { %4942 = vrot.lane.b32.xlu1 %v4935_v51, %s17056_s4  ;;  %v4940_v24 = vmul.f32 %v4938_v22, %v4935_v51 }
0x1677   :  { %v4943_v20 = vpop.permute.xlu1 %4942 }
0x1678   :  { %v4945_v21 = vmul.f32 %v4943_v20, %v4935_v51 }
0x167a   :  { %4947 = vrot.lane.b32.xlu1 %v4945_v21, %s17057_s28  ;;  %v5510_v21 = vrot.slane %v17428_v50, 2 }
0x16ec   :  { %v4948_v58 = vpop.permute.xlu1 %4947 }
0x16ed   :  { %v4950_v25 = vadd.f32 %v4948_v58, %v4940_v24 }
0x16ef   :  { %16959 = vtanh.f32 %v4950_v25 }
0x16f9   :  { %v16960_v26 = vpop.eup %16959 }
0x16fa   :  { %4953 = vrot.lane.b32.xlu0 %v16960_v26, %s17056_s4 }
0x16fe   :  { %4969 = vrot.lane.b32.xlu0 %v4950_v25, %s17058_s3 }
0x176c   :  { %v4954_v29 = vpop.permute.xlu0 %4953 }
0x176d   :  { %v4956_v30 = vmul.f32 %v4954_v29, %v4935_v51 }
0x176f   :  { %4961 = vrot.lane.b32.xlu1 %v4956_v30, %s17057_s28 }
0x1770   :  { %v4970_v31 = vpop.permute.xlu0 %4969 }
0x1771   :  { %v17887_v32 = vsel %vm4959_vm1, %v4970_v31, %v17827_v53 }
0x1772   :  { %5470 = vrot.lane.b32.xlu0 %v17887_v32, %s17057_s28 }
0x17e1   :  { %v4962_v33 = vpop.permute.xlu1 %4961 }
0x17e2   :  { %v4964_v35 = vsel %vm4959_vm1, %v4962_v33, 0.0  ;;  %v17892_v38 = vsel %vm4959_vm1, %v4962_v33, %v17832_v6 }
0x17e3   :  { %4965 = vst.msk [vmem:[#allocation2 + $0xe] sm:$0x3] %vm1235_vm8, %v4964_v35  ;;  %v4978_v41 = vsel %vm718_vm7, %v17892_v38, 0 }
0x17e4   :  { %4966 = vst.msk [vmem:[#allocation2 + $0x10] sm:$0x3] %vm1237_vm9, %v4964_v35  ;;  %v5049_v42 = vand.u32 4294901760, %v4978_v41  ;;  %v5471_v53 = vpop.permute.xlu0 %5470 }
0x17e6   :  { %v5050_v45 = vsub.f32 %v4978_v41, %v5049_v42 }
0x17e8   :  { %v5051_v46 = vand.u32 4294901760, %v5050_v45 }
0x17ea   :  { %v5052_v47 = vsub.f32 %v5050_v45, %v5051_v46 }
0x17ec   :  { %v5053_v48 = vand.u32 4294901760, %v5052_v47 }
0x17ee   :  { %14619 = vmatmul.mubr.f32.vlgmr.msra.gmra.mrb[8].mxu1 %v5053_v48 }
0x17ef   :  { %15986 = vmatpush3.bf16.msra.mxu1 %v17267_v61  ;;  %14629 = vmatprep.mubr.msk.f32.mxu1 %vm17053_vm0, %v17054_v1 }
0x17f0   :  { %15987 = vmatprep.subr.bf16.mxu1 %v17052_v0 }
0x17f3   :  { %15989 = vmatpush3.bf16.msra.mxu1 %v17289_v34 }
0x17f4   :  { %15990 = vmatprep.subr.bf16.mxu1 %v17052_v0 }
0x17f6   :  { %14630 = vmatmul.mubr.f32.vlgmr.msra.gmra.mrb[8].mxu1 %v5049_v42 }
0x17f7   :  { %15992 = vmatpush3.bf16.msra.mxu1 %v17295_v36  ;;  %14640 = vmatprep.mubr.msk.f32.mxu1 %vm17053_vm0, %v17054_v1 }
0x17f8   :  { %15993 = vmatprep.subr.bf16.mxu1 %v17052_v0 }
0x17fb   :  { %15995 = vmatpush3.bf16.msra.mxu1 %v17304_v37 }
0x17fc   :  { %15996 = vmatprep.subr.bf16.mxu1 %v17052_v0 }
0x17fe   :  { %14641 = vmatmul.mubr.f32.vlgmr.msra.gmra.mrb[8].mxu1 %v5050_v45 }
0x17ff   :  { %15998 = vmatpush3.bf16.msra.mxu1 %v17316_v39  ;;  %14651 = vmatprep.mubr.msk.f32.mxu1 %vm17053_vm0, %v17054_v1 }
0x1800   :  { %15999 = vmatprep.subr.bf16.mxu1 %v17052_v0 }
0x1803   :  { %16001 = vmatpush3.bf16.msra.mxu1 %v17329_v9 }
0x1804   :  { %16002 = vmatprep.subr.bf16.mxu1 %v17052_v0 }
0x1806   :  { %14652 = vmatmul.mubr.f32.vlgmr.msra.gmra.mrb[8].mxu1 %v5051_v46 }
0x1807   :  { %16004 = vmatpush3.bf16.msra.mxu1 %v17345_v13  ;;  %14662 = vmatprep.mubr.msk.f32.mxu1 %vm17053_vm0, %v17054_v1 }
0x1808   :  { %16005 = vmatprep.subr.bf16.mxu1 %v17052_v0 }
0x180b   :  { %16007 = vmatpush3.bf16.msra.mxu1 %v17355_v14 }
0x180c   :  { %16008 = vmatprep.subr.bf16.mxu1 %v17052_v0 }
0x180e   :  { %14663 = vmatmul.mubr.f32.vlgmr.msra.gmra.mrb[8].mxu1 %v5049_v42 }
0x180f   :  { %16010 = vmatpush3.bf16.msra.mxu1 %v17316_v39  ;;  %14673 = vmatprep.mubr.msk.f32.mxu1 %vm17053_vm0, %v17054_v1 }
0x1810   :  { %16011 = vmatprep.subr.bf16.mxu1 %v17052_v0 }
0x1813   :  { %16013 = vmatpush3.bf16.msra.mxu1 %v17329_v9 }
0x1814   :  { %16050 = vmatprep.subr.bf16.mxu1 %v17052_v0 }
0x1816   :  { %14674 = vmatmul.mubr.f32.vlgmr.msra.gmra.mrb[8].mxu1 %v5049_v42  ;;  %v13177_v42 = vld [vmem:[%s18833_s1 + $0x12] sm:$0x3] }
0x1817   :  { %16052 = vmatpush3.bf16.msra.mxu1 %v17316_v39  ;;  %14750 = vmatprep.mubr.msk.f32.mxu1 %vm17053_vm0, %v17054_v1  ;;  %vm6027_vm3 = vcmp.gt.f32.partialorder %v13177_v42, 0.0 }
0x1818   :  { %16053 = vmatprep.subr.bf16.mxu1 %v17052_v0 }
0x181b   :  { %16055 = vmatpush3.bf16.msra.mxu1 %v17329_v9 }
0x181c   :  { %16056 = vmatprep.subr.bf16.mxu1 %v17052_v0 }
0x18e9   :  { %v5461_v52 = vpop.f32.mrb[8].mxu1 }
0x18ea   :  { %v16595_v54 = vadd.f32 %v5461_v52, %v17424_v49  ;;  %v14675_v57 = vpop.f32.mrb[9].mxu1 }
0x18ec   :  { %v5465_v55 = vmul.f32 %v16595_v54, %v17441_v56 }
0x18ee   :  { %16961 = vtanh.f32 %v5465_v55 }
0x18f8   :  { %v16962_v59 = vpop.eup %16961 }
0x18f9   :  { %v5467_v60 = vmul.f32 %v16962_v59, %v17441_v56 }
0x18fb   :  { %v5468_v62 = vadd.f32 %v5467_v60, %v17454_v63 }
0x18fd   :  { %5475 = vrot.lane.b32.xlu1 %v5468_v62, %s17056_s4  ;;  %v5473_v4 = vmul.f32 %v5471_v53, %v5468_v62  ;;  %v6042_v53 = vrot.slane %v17424_v49, 4 }
0x196f   :  { %v5476_v2 = vpop.permute.xlu1 %5475 }
0x1970   :  { %v5478_v3 = vmul.f32 %v5476_v2, %v5468_v62 }
0x1972   :  { %5480 = vrot.lane.b32.xlu1 %v5478_v3, %s17057_s28 }
0x19e4   :  { %v5481_v5 = vpop.permute.xlu1 %5480 }
0x19e5   :  { %v5483_v6 = vadd.f32 %v5481_v5, %v5473_v4 }
0x19e7   :  { %16963 = vtanh.f32 %v5483_v6 }
0x19f1   :  { %v16964_v7 = vpop.eup %16963 }
0x19f2   :  { %5486 = vrot.lane.b32.xlu0 %v16964_v7, %s17056_s4 }
0x19f6   :  { %5502 = vrot.lane.b32.xlu0 %v5483_v6, %s17058_s3 }
0x1a64   :  { %v5487_v11 = vpop.permute.xlu0 %5486 }
0x1a65   :  { %v5489_v12 = vmul.f32 %v5487_v11, %v5468_v62 }
0x1a67   :  { %5494 = vrot.lane.b32.xlu1 %v5489_v12, %s17057_s28 }
0x1a68   :  { %v5503_v15 = vpop.permute.xlu0 %5502 }
0x1a69   :  { %v17947_v23 = vsel %vm5492_vm2, %v5503_v15, %v17887_v32 }
0x1a6a   :  { %6005 = vrot.lane.b32.xlu0 %v17947_v23, %s17057_s28 }
0x1ad9   :  { %v5495_v28 = vpop.permute.xlu1 %5494 }
0x1ada   :  { %v5497_v40 = vsel %vm5492_vm2, %v5495_v28, 0.0  ;;  %v17952_v10 = vsel %vm5492_vm2, %v5495_v28, %v17892_v38 }
0x1adb   :  { %5498 = vst.msk [vmem:[#allocation2 + $0x10] sm:$0x3] %vm1235_vm8, %v5497_v40  ;;  %v5513_v16 = vsel %vm718_vm7, %v17952_v10, 0 }
0x1adc   :  { %5499 = vst.msk [vmem:[#allocation2 + $0xe] sm:$0x3] %vm1237_vm9, %v5497_v40  ;;  %v5584_v17 = vand.u32 4294901760, %v5513_v16  ;;  %v6006_v32 = vpop.permute.xlu0 %6005 }
0x1ade   :  { %v5585_v18 = vsub.f32 %v5513_v16, %v5584_v17 }
0x1ae0   :  { %v5586_v19 = vand.u32 4294901760, %v5585_v18 }
0x1ae2   :  { %v5587_v51 = vsub.f32 %v5585_v18, %v5586_v19 }
0x1ae4   :  { %v5588_v20 = vand.u32 4294901760, %v5587_v51 }
0x1ae6   :  { %14685 = vmatmul.mubr.f32.vlgmr.msra.gmra.mrb[14].mxu0 %v5588_v20 }
0x1ae7   :  { %16022 = vmatpush3.bf16.msra.mxu0 %v17267_v61  ;;  %14695 = vmatprep.mubr.msk.f32.mxu0 %vm17053_vm0, %v17054_v1 }
0x1ae8   :  { %16023 = vmatprep.subr.bf16.mxu0 %v17052_v0 }
0x1aeb   :  { %16025 = vmatpush3.bf16.msra.mxu0 %v17289_v34 }
0x1aec   :  { %16026 = vmatprep.subr.bf16.mxu0 %v17052_v0 }
0x1aee   :  { %14696 = vmatmul.mubr.f32.vlgmr.msra.gmra.mrb[14].mxu0 %v5584_v17 }
0x1aef   :  { %16028 = vmatpush3.bf16.msra.mxu0 %v17295_v36  ;;  %14706 = vmatprep.mubr.msk.f32.mxu0 %vm17053_vm0, %v17054_v1 }
0x1af0   :  { %16029 = vmatprep.subr.bf16.mxu0 %v17052_v0 }
0x1af3   :  { %16031 = vmatpush3.bf16.msra.mxu0 %v17304_v37 }
0x1af4   :  { %16032 = vmatprep.subr.bf16.mxu0 %v17052_v0 }
0x1af6   :  { %14707 = vmatmul.mubr.f32.vlgmr.msra.gmra.mrb[14].mxu0 %v5585_v18 }
0x1af7   :  { %16034 = vmatpush3.bf16.msra.mxu0 %v17316_v39  ;;  %14717 = vmatprep.mubr.msk.f32.mxu0 %vm17053_vm0, %v17054_v1 }
0x1af8   :  { %16035 = vmatprep.subr.bf16.mxu0 %v17052_v0 }
0x1afb   :  { %16037 = vmatpush3.bf16.msra.mxu0 %v17329_v9 }
0x1afc   :  { %16038 = vmatprep.subr.bf16.mxu0 %v17052_v0 }
0x1afe   :  { %14718 = vmatmul.mubr.f32.vlgmr.msra.gmra.mrb[14].mxu0 %v5586_v19 }
0x1aff   :  { %16040 = vmatpush3.bf16.msra.mxu0 %v17345_v13  ;;  %14728 = vmatprep.mubr.msk.f32.mxu0 %vm17053_vm0, %v17054_v1 }
0x1b00   :  { %16041 = vmatprep.subr.bf16.mxu0 %v17052_v0 }
0x1b03   :  { %16043 = vmatpush3.bf16.msra.mxu0 %v17355_v14 }
0x1b04   :  { %16044 = vmatprep.subr.bf16.mxu0 %v17052_v0 }
0x1b06   :  { %14729 = vmatmul.mubr.f32.vlgmr.msra.gmra.mrb[14].mxu0 %v5584_v17 }
0x1b07   :  { %16046 = vmatpush3.bf16.msra.mxu0 %v17316_v39  ;;  %14739 = vmatprep.mubr.msk.f32.mxu0 %vm17053_vm0, %v17054_v1 }
0x1b08   :  { %16047 = vmatprep.subr.bf16.mxu0 %v17052_v0 }
0x1b0b   :  { %16049 = vmatpush3.bf16.msra.mxu0 %v17329_v9 }
0x1b0c   :  { %16086 = vmatprep.subr.bf16.mxu0 %v17052_v0 }
0x1b0e   :  { %14740 = vmatmul.mubr.f32.vlgmr.msra.gmra.mrb[14].mxu0 %v5584_v17  ;;  %v13178_v17 = vld [vmem:[%s18833_s1 + $0x14] sm:$0x3] }
0x1b0f   :  { %16088 = vmatpush3.bf16.msra.mxu0 %v17316_v39  ;;  %14816 = vmatprep.mubr.msk.f32.mxu0 %vm17053_vm0, %v17054_v1  ;;  %vm6559_vm4 = vcmp.gt.f32.partialorder %v13178_v17, 0.0 }
0x1b10   :  { %16089 = vmatprep.subr.bf16.mxu0 %v17052_v0 }
0x1b13   :  { %16091 = vmatpush3.bf16.msra.mxu0 %v17329_v9 }
0x1b14   :  { %16092 = vmatprep.subr.bf16.mxu0 %v17052_v0 }
0x1be1   :  { %v5996_v22 = vpop.f32.mrb[14].mxu0 }
0x1be2   :  { %v16596_v24 = vadd.f32 %v5996_v22, %v5510_v21  ;;  %v14741_v58 = vpop.f32.mrb[15].mxu0 }
0x1be4   :  { %v6000_v25 = vmul.f32 %v16596_v24, %v17441_v56 }
0x1be6   :  { %16965 = vtanh.f32 %v6000_v25 }
0x1bf0   :  { %v16966_v26 = vpop.eup %16965 }
0x1bf1   :  { %v6002_v27 = vmul.f32 %v16966_v26, %v17441_v56 }
0x1bf3   :  { %v6003_v29 = vadd.f32 %v6002_v27, %v17454_v63 }
0x1bf5   :  { %6010 = vrot.lane.b32.xlu1 %v6003_v29, %s17056_s4  ;;  %v6008_v33 = vmul.f32 %v6006_v32, %v6003_v29 }
0x1c67   :  { %v6011_v30 = vpop.permute.xlu1 %6010 }
0x1c68   :  { %v6013_v31 = vmul.f32 %v6011_v30, %v6003_v29 }
0x1c6a   :  { %6015 = vrot.lane.b32.xlu1 %v6013_v31, %s17057_s28  ;;  %v6573_v31 = vrot.slane %v17428_v50, 6 }
0x1cdc   :  { %v6016_v35 = vpop.permute.xlu1 %6015 }
0x1cdd   :  { %v6018_v38 = vadd.f32 %v6016_v35, %v6008_v33 }
0x1cdf   :  { %16967 = vtanh.f32 %v6018_v38 }
0x1ce9   :  { %v16968_v41 = vpop.eup %16967 }
0x1cea   :  { %6021 = vrot.lane.b32.xlu0 %v16968_v41, %s17056_s4 }
0x1cee   :  { %6037 = vrot.lane.b32.xlu0 %v6018_v38, %s17058_s3 }
0x1d5c   :  { %v6022_v45 = vpop.permute.xlu0 %6021 }
0x1d5d   :  { %v6024_v46 = vmul.f32 %v6022_v45, %v6003_v29 }
0x1d5f   :  { %6029 = vrot.lane.b32.xlu1 %v6024_v46, %s17057_s28 }
0x1d60   :  { %v6038_v47 = vpop.permute.xlu0 %6037 }
0x1d61   :  { %v18007_v48 = vsel %vm6027_vm3, %v6038_v47, %v17947_v23 }
0x1d62   :  { %6537 = vrot.lane.b32.xlu0 %v18007_v48, %s17057_s28 }
0x1dd1   :  { %v6030_v52 = vpop.permute.xlu1 %6029 }
0x1dd2   :  { %v6032_v54 = vsel %vm6027_vm3, %v6030_v52, 0.0  ;;  %v18012_v57 = vsel %vm6027_vm3, %v6030_v52, %v17952_v10 }
0x1dd3   :  { %6033 = vst.msk [vmem:[#allocation2 + $0x12] sm:$0x3] %vm1235_vm8, %v6032_v54  ;;  %v6045_v55 = vsel %vm718_vm7, %v18012_v57, 0 }
0x1dd4   :  { %6034 = vst.msk [vmem:[#allocation2 + $0xc] sm:$0x3] %vm1237_vm9, %v6032_v54  ;;  %v6116_v59 = vand.u32 4294901760, %v6045_v55  ;;  %v6538_v28 = vpop.permute.xlu0 %6537 }
0x1dd6   :  { %v6117_v60 = vsub.f32 %v6045_v55, %v6116_v59  ;;  %v13179_v55 = vld [vmem:[%s18833_s1 + $0x16] sm:$0x3] }
0x1dd7   :  { %vm7090_vm5 = vcmp.gt.f32.partialorder %v13179_v55, 0.0 }
0x1dd8   :  { %v6118_v62 = vand.u32 4294901760, %v6117_v60 }
0x1dda   :  { %v6119_v2 = vsub.f32 %v6117_v60, %v6118_v62 }
0x1ddc   :  { %v6120_v3 = vand.u32 4294901760, %v6119_v2 }
0x1dde   :  { %14751 = vmatmul.mubr.f32.vlgmr.msra.gmra.mrb[10].mxu1 %v6120_v3 }
0x1ddf   :  { %16058 = vmatpush3.bf16.msra.mxu1 %v17267_v61  ;;  %14761 = vmatprep.mubr.msk.f32.mxu1 %vm17053_vm0, %v17054_v1 }
0x1de0   :  { %16059 = vmatprep.subr.bf16.mxu1 %v17052_v0 }
0x1de3   :  { %16061 = vmatpush3.bf16.msra.mxu1 %v17289_v34 }
0x1de4   :  { %16062 = vmatprep.subr.bf16.mxu1 %v17052_v0 }
0x1de6   :  { %14762 = vmatmul.mubr.f32.vlgmr.msra.gmra.mrb[10].mxu1 %v6116_v59 }
0x1de7   :  { %16064 = vmatpush3.bf16.msra.mxu1 %v17295_v36  ;;  %14772 = vmatprep.mubr.msk.f32.mxu1 %vm17053_vm0, %v17054_v1 }
0x1de8   :  { %16065 = vmatprep.subr.bf16.mxu1 %v17052_v0 }
0x1deb   :  { %16067 = vmatpush3.bf16.msra.mxu1 %v17304_v37 }
0x1dec   :  { %16068 = vmatprep.subr.bf16.mxu1 %v17052_v0 }
0x1dee   :  { %14773 = vmatmul.mubr.f32.vlgmr.msra.gmra.mrb[10].mxu1 %v6117_v60 }
0x1def   :  { %16070 = vmatpush3.bf16.msra.mxu1 %v17316_v39  ;;  %14783 = vmatprep.mubr.msk.f32.mxu1 %vm17053_vm0, %v17054_v1 }
0x1df0   :  { %16071 = vmatprep.subr.bf16.mxu1 %v17052_v0 }
0x1df3   :  { %16073 = vmatpush3.bf16.msra.mxu1 %v17329_v9 }
0x1df4   :  { %16074 = vmatprep.subr.bf16.mxu1 %v17052_v0 }
0x1df6   :  { %14784 = vmatmul.mubr.f32.vlgmr.msra.gmra.mrb[10].mxu1 %v6118_v62 }
0x1df7   :  { %16076 = vmatpush3.bf16.msra.mxu1 %v17345_v13  ;;  %14794 = vmatprep.mubr.msk.f32.mxu1 %vm17053_vm0, %v17054_v1 }
0x1df8   :  { %16077 = vmatprep.subr.bf16.mxu1 %v17052_v0 }
0x1dfb   :  { %16079 = vmatpush3.bf16.msra.mxu1 %v17355_v14 }
0x1dfc   :  { %16080 = vmatprep.subr.bf16.mxu1 %v17052_v0 }
0x1dfe   :  { %14795 = vmatmul.mubr.f32.vlgmr.msra.gmra.mrb[10].mxu1 %v6116_v59 }
0x1dff   :  { %16082 = vmatpush3.bf16.msra.mxu1 %v17316_v39  ;;  %14805 = vmatprep.mubr.msk.f32.mxu1 %vm17053_vm0, %v17054_v1 }
0x1e00   :  { %16083 = vmatprep.subr.bf16.mxu1 %v17052_v0 }
0x1e03   :  { %16085 = vmatpush3.bf16.msra.mxu1 %v17329_v9 }
0x1e04   :  { %16122 = vmatprep.subr.bf16.mxu1 %v17052_v0 }
0x1e06   :  { %14806 = vmatmul.mubr.f32.vlgmr.msra.gmra.mrb[10].mxu1 %v6116_v59 }
0x1e07   :  { %16124 = vmatpush3.bf16.msra.mxu1 %v17316_v39  ;;  %14882 = vmatprep.mubr.msk.f32.mxu1 %vm17053_vm0, %v17054_v1 }
0x1e08   :  { %16125 = vmatprep.subr.bf16.mxu1 %v17052_v0 }
0x1e0b   :  { %16127 = vmatpush3.bf16.msra.mxu1 %v17329_v9 }
0x1e0c   :  { %16128 = vmatprep.subr.bf16.mxu1 %v17052_v0 }
0x1ed9   :  { %v6528_v4 = vpop.f32.mrb[10].mxu1 }
0x1eda   :  { %v16597_v5 = vadd.f32 %v6528_v4, %v6042_v53  ;;  %v14807_v6 = vpop.f32.mrb[11].mxu1 }
0x1edc   :  { %v6532_v7 = vmul.f32 %v16597_v5, %v17441_v56 }
0x1ede   :  { %16969 = vtanh.f32 %v6532_v7 }
0x1ee8   :  { %v16970_v8 = vpop.eup %16969 }
0x1ee9   :  { %v6534_v11 = vmul.f32 %v16970_v8, %v17441_v56 }
0x1eeb   :  { %v6535_v12 = vadd.f32 %v6534_v11, %v17454_v63 }
0x1eed   :  { %6542 = vrot.lane.b32.xlu1 %v6535_v12, %s17056_s4  ;;  %v6540_v40 = vmul.f32 %v6538_v28, %v6535_v12 }
0x1f5f   :  { %v6543_v15 = vpop.permute.xlu1 %6542 }
0x1f60   :  { %v6545_v23 = vmul.f32 %v6543_v15, %v6535_v12 }
0x1f62   :  { %6547 = vrot.lane.b32.xlu1 %v6545_v23, %s17057_s28 }
0x1fd4   :  { %v6548_v49 = vpop.permute.xlu1 %6547 }
0x1fd5   :  { %v6550_v10 = vadd.f32 %v6548_v49, %v6540_v40 }
0x1fd7   :  { %16971 = vtanh.f32 %v6550_v10 }
0x1fe1   :  { %v16972_v16 = vpop.eup %16971 }
0x1fe2   :  { %6553 = vrot.lane.b32.xlu0 %v16972_v16, %s17056_s4 }
0x1fe6   :  { %6569 = vrot.lane.b32.xlu0 %v6550_v10, %s17058_s3 }
0x2054   :  { %v6554_v18 = vpop.permute.xlu0 %6553 }
0x2055   :  { %v6556_v19 = vmul.f32 %v6554_v18, %v6535_v12 }
0x2057   :  { %6561 = vrot.lane.b32.xlu1 %v6556_v19, %s17057_s28 }
0x2058   :  { %v6570_v51 = vpop.permute.xlu0 %6569 }
0x2059   :  { %v18067_v20 = vsel %vm6559_vm4, %v6570_v51, %v18007_v48 }
0x205a   :  { %7068 = vrot.lane.b32.xlu0 %v18067_v20, %s17057_s28 }
0x20c9   :  { %v6562_v21 = vpop.permute.xlu1 %6561 }
0x20ca   :  { %v6564_v22 = vsel %vm6559_vm4, %v6562_v21, 0.0  ;;  %v18072_v24 = vsel %vm6559_vm4, %v6562_v21, %v18012_v57 }
0x20cb   :  { %6565 = vst.msk [vmem:[#allocation2 + $0x14] sm:$0x3] %vm1235_vm8, %v6564_v22  ;;  %v6576_v58 = vsel %vm718_vm7, %v18072_v24, 0 }
0x20cc   :  { %6566 = vst.msk [vmem:[#allocation2 + $0xa] sm:$0x3] %vm1237_vm9, %v6564_v22  ;;  %v6647_v25 = vand.u32 4294901760, %v6576_v58  ;;  %v7069_v48 = vpop.permute.xlu0 %7068 }
0x20ce   :  { %v6648_v26 = vsub.f32 %v6576_v58, %v6647_v25 }
0x20d0   :  { %v6649_v27 = vand.u32 4294901760, %v6648_v26 }
0x20d2   :  { %v6650_v29 = vsub.f32 %v6648_v26, %v6649_v27 }
0x20d4   :  { %v6651_v30 = vand.u32 4294901760, %v6650_v29 }
0x20d6   :  { %14817 = vmatmul.mubr.f32.vlgmr.msra.gmra.mrb[16].mxu0 %v6651_v30 }
0x20d7   :  { %16094 = vmatpush3.bf16.msra.mxu0 %v17267_v61  ;;  %14827 = vmatprep.mubr.msk.f32.mxu0 %vm17053_vm0, %v17054_v1 }
0x20d8   :  { %16095 = vmatprep.subr.bf16.mxu0 %v17052_v0 }
0x20db   :  { %16097 = vmatpush3.bf16.msra.mxu0 %v17289_v34 }
0x20dc   :  { %16098 = vmatprep.subr.bf16.mxu0 %v17052_v0 }
0x20de   :  { %14828 = vmatmul.mubr.f32.vlgmr.msra.gmra.mrb[16].mxu0 %v6647_v25 }
0x20df   :  { %16100 = vmatpush3.bf16.msra.mxu0 %v17295_v36  ;;  %14838 = vmatprep.mubr.msk.f32.mxu0 %vm17053_vm0, %v17054_v1 }
0x20e0   :  { %16101 = vmatprep.subr.bf16.mxu0 %v17052_v0 }
0x20e3   :  { %16103 = vmatpush3.bf16.msra.mxu0 %v17304_v37 }
0x20e4   :  { %16104 = vmatprep.subr.bf16.mxu0 %v17052_v0 }
0x20e6   :  { %14839 = vmatmul.mubr.f32.vlgmr.msra.gmra.mrb[16].mxu0 %v6648_v26 }
0x20e7   :  { %16106 = vmatpush3.bf16.msra.mxu0 %v17316_v39  ;;  %14849 = vmatprep.mubr.msk.f32.mxu0 %vm17053_vm0, %v17054_v1 }
0x20e8   :  { %16107 = vmatprep.subr.bf16.mxu0 %v17052_v0 }
0x20eb   :  { %16109 = vmatpush3.bf16.msra.mxu0 %v17329_v9 }
0x20ec   :  { %16110 = vmatprep.subr.bf16.mxu0 %v17052_v0 }
0x20ee   :  { %14850 = vmatmul.mubr.f32.vlgmr.msra.gmra.mrb[16].mxu0 %v6649_v27 }
0x20ef   :  { %16112 = vmatpush3.bf16.msra.mxu0 %v17345_v13  ;;  %14860 = vmatprep.mubr.msk.f32.mxu0 %vm17053_vm0, %v17054_v1 }
0x20f0   :  { %16113 = vmatprep.subr.bf16.mxu0 %v17052_v0 }
0x20f3   :  { %16115 = vmatpush3.bf16.msra.mxu0 %v17355_v14 }
0x20f4   :  { %16116 = vmatprep.subr.bf16.mxu0 %v17052_v0 }
0x20f6   :  { %14861 = vmatmul.mubr.f32.vlgmr.msra.gmra.mrb[16].mxu0 %v6647_v25 }
0x20f7   :  { %16118 = vmatpush3.bf16.msra.mxu0 %v17316_v39  ;;  %14871 = vmatprep.mubr.msk.f32.mxu0 %vm17053_vm0, %v17054_v1 }
0x20f8   :  { %16119 = vmatprep.subr.bf16.mxu0 %v17052_v0 }
0x20fb   :  { %16121 = vmatpush3.bf16.msra.mxu0 %v17329_v9 }
0x20fc   :  { %16158 = vmatprep.subr.bf16.mxu0 %v17052_v0 }
0x20fe   :  { %14872 = vmatmul.mubr.f32.vlgmr.msra.gmra.mrb[16].mxu0 %v6647_v25 }
0x20ff   :  { %16160 = vmatpush3.bf16.msra.mxu0 %v17316_v39  ;;  %14948 = vmatprep.mubr.msk.f32.mxu0 %vm17053_vm0, %v17054_v1 }
0x2100   :  { %16161 = vmatprep.subr.bf16.mxu0 %v17052_v0 }
0x2103   :  { %16163 = vmatpush3.bf16.msra.mxu0 %v17329_v9 }
0x2104   :  { %16164 = vmatprep.subr.bf16.mxu0 %v17052_v0 }
0x21d1   :  { %v7059_v32 = vpop.f32.mrb[16].mxu0 }
0x21d2   :  { %v16598_v33 = vadd.f32 %v7059_v32, %v6573_v31  ;;  %v14873_v35 = vpop.f32.mrb[17].mxu0 }
0x21d4   :  { %v7063_v38 = vmul.f32 %v16598_v33, %v17441_v56 }
0x21d6   :  { %16973 = vtanh.f32 %v7063_v38 }
0x21e0   :  { %v16974_v41 = vpop.eup %16973 }
0x21e1   :  { %v7065_v42 = vmul.f32 %v16974_v41, %v17441_v56 }
0x21e3   :  { %v7066_v45 = vadd.f32 %v7065_v42, %v17454_v63 }
0x21e5   :  { %7073 = vrot.lane.b32.xlu1 %v7066_v45, %s17056_s4  ;;  %v7071_v52 = vmul.f32 %v7069_v48, %v7066_v45 }
0x2257   :  { %v7074_v46 = vpop.permute.xlu1 %7073 }
0x2258   :  { %v7076_v47 = vmul.f32 %v7074_v46, %v7066_v45 }
0x225a   :  { %7078 = vrot.lane.b32.xlu1 %v7076_v47, %s17057_s28 }
0x22cc   :  { %v7079_v50 = vpop.permute.xlu1 %7078 }
0x22cd   :  { %v7081_v54 = vadd.f32 %v7079_v50, %v7071_v52 }
0x22cf   :  { %16975 = vtanh.f32 %v7081_v54 }
0x22d9   :  { %v16976_v57 = vpop.eup %16975 }
0x22da   :  { %7084 = vrot.lane.b32.xlu0 %v16976_v57, %s17056_s4 }
0x22de   :  { %7100 = vrot.lane.b32.xlu0 %v7081_v54, %s17058_s3 }
0x234c   :  { %v7085_v59 = vpop.permute.xlu0 %7084 }
0x234d   :  { %v7087_v60 = vmul.f32 %v7085_v59, %v7066_v45  ;;  %v7641_v45 = vrot.slane %v17416_v44, 2 }
0x234f   :  { %7092 = vrot.lane.b32.xlu1 %v7087_v60, %s17057_s28 }
0x2350   :  { %v7101_v62 = vpop.permute.xlu0 %7100 }
0x2351   :  { %v18127_v2 = vsel %vm7090_vm5, %v7101_v62, %v18067_v20 }
0x2352   :  { %7601 = vrot.lane.b32.xlu0 %v18127_v2, %s17057_s28 }
0x23c1   :  { %v7093_v3 = vpop.permute.xlu1 %7092 }
0x23c2   :  { %v7095_v53 = vsel %vm7090_vm5, %v7093_v3, 0.0  ;;  %v18132_v4 = vsel %vm7090_vm5, %v7093_v3, %v18072_v24  ;;  %v13180_v24 = vld [vmem:[%s18833_s1 + $0x18] sm:$0x3] }
0x23c3   :  { %7096 = vst.msk [vmem:[#allocation2 + $0x16] sm:$0x3] %vm1235_vm8, %v7095_v53  ;;  %v7109_v5 = vsel %vm718_vm7, %v18132_v4, 0  ;;  %vm7623_vm6 = vcmp.gt.f32.partialorder %v13180_v24, 0.0 }
0x23c4   :  { %7097 = vst.msk [vmem:[#allocation2 + $0x8] sm:$0x3] %vm1237_vm9, %v7095_v53  ;;  %v7180_v6 = vand.u32 4294901760, %v7109_v5  ;;  %v7602_v19 = vpop.permute.xlu0 %7601 }
0x23c6   :  { %v7181_v7 = vsub.f32 %v7109_v5, %v7180_v6 }
0x23c8   :  { %v7182_v8 = vand.u32 4294901760, %v7181_v7 }
0x23ca   :  { %v7183_v11 = vsub.f32 %v7181_v7, %v7182_v8 }
0x23cc   :  { %v7184_v12 = vand.u32 4294901760, %v7183_v11 }
0x23ce   :  { %14883 = vmatmul.mubr.f32.vlgmr.msra.gmra.mrb[12].mxu1 %v7184_v12 }
0x23cf   :  { %16130 = vmatpush3.bf16.msra.mxu1 %v17267_v61  ;;  %14893 = vmatprep.mubr.msk.f32.mxu1 %vm17053_vm0, %v17054_v1 }
0x23d0   :  { %16131 = vmatprep.subr.bf16.mxu1 %v17052_v0 }
0x23d3   :  { %16133 = vmatpush3.bf16.msra.mxu1 %v17289_v34 }
0x23d4   :  { %16134 = vmatprep.subr.bf16.mxu1 %v17052_v0 }
0x23d6   :  { %14894 = vmatmul.mubr.f32.vlgmr.msra.gmra.mrb[12].mxu1 %v7180_v6 }
0x23d7   :  { %16136 = vmatpush3.bf16.msra.mxu1 %v17295_v36  ;;  %14904 = vmatprep.mubr.msk.f32.mxu1 %vm17053_vm0, %v17054_v1 }
0x23d8   :  { %16137 = vmatprep.subr.bf16.mxu1 %v17052_v0 }
0x23db   :  { %16139 = vmatpush3.bf16.msra.mxu1 %v17304_v37 }
0x23dc   :  { %16140 = vmatprep.subr.bf16.mxu1 %v17052_v0 }
0x23de   :  { %14905 = vmatmul.mubr.f32.vlgmr.msra.gmra.mrb[12].mxu1 %v7181_v7 }
0x23df   :  { %16142 = vmatpush3.bf16.msra.mxu1 %v17316_v39  ;;  %14915 = vmatprep.mubr.msk.f32.mxu1 %vm17053_vm0, %v17054_v1 }
0x23e0   :  { %16143 = vmatprep.subr.bf16.mxu1 %v17052_v0 }
0x23e3   :  { %16145 = vmatpush3.bf16.msra.mxu1 %v17329_v9 }
0x23e4   :  { %16146 = vmatprep.subr.bf16.mxu1 %v17052_v0 }
0x23e6   :  { %14916 = vmatmul.mubr.f32.vlgmr.msra.gmra.mrb[12].mxu1 %v7182_v8 }
0x23e7   :  { %16148 = vmatpush3.bf16.msra.mxu1 %v17345_v13  ;;  %14926 = vmatprep.mubr.msk.f32.mxu1 %vm17053_vm0, %v17054_v1 }
0x23e8   :  { %16149 = vmatprep.subr.bf16.mxu1 %v17052_v0 }
0x23eb   :  { %16151 = vmatpush3.bf16.msra.mxu1 %v17355_v14 }
0x23ec   :  { %16152 = vmatprep.subr.bf16.mxu1 %v17052_v0 }
0x23ee   :  { %14927 = vmatmul.mubr.f32.vlgmr.msra.gmra.mrb[12].mxu1 %v7180_v6 }
0x23ef   :  { %16154 = vmatpush3.bf16.msra.mxu1 %v17316_v39  ;;  %14937 = vmatprep.mubr.msk.f32.mxu1 %vm17053_vm0, %v17054_v1 }
0x23f0   :  { %16155 = vmatprep.subr.bf16.mxu1 %v17052_v0 }
0x23f3   :  { %16157 = vmatpush3.bf16.msra.mxu1 %v17329_v9 }
0x23f4   :  { %16194 = vmatprep.subr.bf16.mxu1 %v17052_v0 }
0x23f6   :  { %14938 = vmatmul.mubr.f32.vlgmr.msra.gmra.mrb[12].mxu1 %v7180_v6 }
0x23f7   :  { %16196 = vmatpush3.bf16.msra.mxu1 %v17316_v39  ;;  %15014 = vmatprep.mubr.msk.f32.mxu1 %vm17053_vm0, %v17054_v1 }
0x23f8   :  { %16197 = vmatprep.subr.bf16.mxu1 %v17052_v0 }
0x23fb   :  { %16199 = vmatpush3.bf16.msra.mxu1 %v17329_v9 }
0x23fc   :  { %16200 = vmatprep.subr.bf16.mxu1 %v17052_v0 }
0x24c9   :  { %v7592_v15 = vpop.f32.mrb[12].mxu1 }
0x24ca   :  { %v16599_v23 = vadd.f32 %v7592_v15, %v17412_v43  ;;  %v14939_v28 = vpop.f32.mrb[13].mxu1 }
0x24cc   :  { %v7596_v40 = vmul.f32 %v16599_v23, %v17441_v56 }
0x24ce   :  { %16977 = vtanh.f32 %v7596_v40 }
0x24d8   :  { %v16978_v49 = vpop.eup %16977 }
0x24d9   :  { %v7598_v10 = vmul.f32 %v16978_v49, %v17441_v56 }
0x24db   :  { %v7599_v16 = vadd.f32 %v7598_v10, %v17454_v63 }
0x24dd   :  { %7606 = vrot.lane.b32.xlu1 %v7599_v16, %s17056_s4  ;;  %v7604_v51 = vmul.f32 %v7602_v19, %v7599_v16 }
0x254f   :  { %v7607_v17 = vpop.permute.xlu1 %7606 }
0x2550   :  { %v7609_v18 = vmul.f32 %v7607_v17, %v7599_v16  ;;  %v8173_v17 = vrot.slane %v17412_v43, 4 }
0x2552   :  { %7611 = vrot.lane.b32.xlu1 %v7609_v18, %s17057_s28 }
0x25c4   :  { %v7612_v20 = vpop.permute.xlu1 %7611 }
0x25c5   :  { %v7614_v21 = vadd.f32 %v7612_v20, %v7604_v51 }
0x25c7   :  { %16979 = vtanh.f32 %v7614_v21 }
0x25d1   :  { %v16980_v22 = vpop.eup %16979 }
0x25d2   :  { %7617 = vrot.lane.b32.xlu0 %v16980_v22, %s17056_s4 }
0x25d6   :  { %7633 = vrot.lane.b32.xlu0 %v7614_v21, %s17058_s3 }
0x2644   :  { %v7618_v58 = vpop.permute.xlu0 %7617 }
0x2645   :  { %v7620_v25 = vmul.f32 %v7618_v58, %v7599_v16 }
0x2647   :  { %7625 = vrot.lane.b32.xlu1 %v7620_v25, %s17057_s28 }
0x2648   :  { %v7634_v26 = vpop.permute.xlu0 %7633 }
0x2649   :  { %v18187_v27 = vsel %vm7623_vm6, %v7634_v26, %v18127_v2 }
0x264a   :  { %8136 = vrot.lane.b32.xlu0 %v18187_v27, %s17057_s28 }
0x26b9   :  { %v7626_v29 = vpop.permute.xlu1 %7625 }
0x26ba   :  { %v7628_v30 = vsel %vm7623_vm6, %v7626_v29, 0.0  ;;  %v18192_v31 = vsel %vm7623_vm6, %v7626_v29, %v18132_v4  ;;  %v13181_v4 = vld [vmem:[%s18833_s1 + $0x1a] sm:$0x3] }
0x26bb   :  { %7629 = vst.msk [vmem:[#allocation2 + $0x18] sm:$0x3] %vm1235_vm8, %v7628_v30  ;;  %v7644_v32 = vsel %vm718_vm7, %v18192_v31, 0  ;;  %vm8158_vm10 = vcmp.gt.f32.partialorder %v13181_v4, 0.0 }
0x26bc   :  { %7630 = vst.msk [vmem:[#allocation2 + $0x6] sm:$0x3] %vm1237_vm9, %v7628_v30  ;;  %v7715_v33 = vand.u32 4294901760, %v7644_v32  ;;  %v8137_v60 = vpop.permute.xlu0 %8136 }
0x26be   :  { %v7716_v35 = vsub.f32 %v7644_v32, %v7715_v33 }
0x26c0   :  { %v7717_v38 = vand.u32 4294901760, %v7716_v35 }
0x26c2   :  { %v7718_v41 = vsub.f32 %v7716_v35, %v7717_v38 }
0x26c4   :  { %v7719_v42 = vand.u32 4294901760, %v7718_v41 }
0x26c6   :  { %14949 = vmatmul.mubr.f32.vlgmr.msra.gmra.mrb[18].mxu0 %v7719_v42 }
0x26c7   :  { %16166 = vmatpush3.bf16.msra.mxu0 %v17267_v61  ;;  %14959 = vmatprep.mubr.msk.f32.mxu0 %vm17053_vm0, %v17054_v1 }
0x26c8   :  { %16167 = vmatprep.subr.bf16.mxu0 %v17052_v0 }
0x26cb   :  { %16169 = vmatpush3.bf16.msra.mxu0 %v17289_v34 }
0x26cc   :  { %16170 = vmatprep.subr.bf16.mxu0 %v17052_v0 }
0x26ce   :  { %14960 = vmatmul.mubr.f32.vlgmr.msra.gmra.mrb[18].mxu0 %v7715_v33 }
0x26cf   :  { %16172 = vmatpush3.bf16.msra.mxu0 %v17295_v36  ;;  %14970 = vmatprep.mubr.msk.f32.mxu0 %vm17053_vm0, %v17054_v1 }
0x26d0   :  { %16173 = vmatprep.subr.bf16.mxu0 %v17052_v0 }
0x26d3   :  { %16175 = vmatpush3.bf16.msra.mxu0 %v17304_v37 }
0x26d4   :  { %16176 = vmatprep.subr.bf16.mxu0 %v17052_v0 }
0x26d6   :  { %14971 = vmatmul.mubr.f32.vlgmr.msra.gmra.mrb[18].mxu0 %v7716_v35 }
0x26d7   :  { %16178 = vmatpush3.bf16.msra.mxu0 %v17316_v39  ;;  %14981 = vmatprep.mubr.msk.f32.mxu0 %vm17053_vm0, %v17054_v1 }
0x26d8   :  { %16179 = vmatprep.subr.bf16.mxu0 %v17052_v0 }
0x26db   :  { %16181 = vmatpush3.bf16.msra.mxu0 %v17329_v9 }
0x26dc   :  { %16182 = vmatprep.subr.bf16.mxu0 %v17052_v0 }
0x26de   :  { %14982 = vmatmul.mubr.f32.vlgmr.msra.gmra.mrb[18].mxu0 %v7717_v38 }
0x26df   :  { %16184 = vmatpush3.bf16.msra.mxu0 %v17345_v13  ;;  %14992 = vmatprep.mubr.msk.f32.mxu0 %vm17053_vm0, %v17054_v1 }
0x26e0   :  { %16185 = vmatprep.subr.bf16.mxu0 %v17052_v0 }
0x26e3   :  { %16187 = vmatpush3.bf16.msra.mxu0 %v17355_v14 }
0x26e4   :  { %16188 = vmatprep.subr.bf16.mxu0 %v17052_v0 }
0x26e6   :  { %14993 = vmatmul.mubr.f32.vlgmr.msra.gmra.mrb[18].mxu0 %v7715_v33 }
0x26e7   :  { %16190 = vmatpush3.bf16.msra.mxu0 %v17316_v39  ;;  %15003 = vmatprep.mubr.msk.f32.mxu0 %vm17053_vm0, %v17054_v1 }
0x26e8   :  { %16191 = vmatprep.subr.bf16.mxu0 %v17052_v0 }
0x26eb   :  { %16193 = vmatpush3.bf16.msra.mxu0 %v17329_v9 }
0x26ec   :  { %16230 = vmatprep.subr.bf16.mxu0 %v17052_v0 }
0x26ee   :  { %15004 = vmatmul.mubr.f32.vlgmr.msra.gmra.mrb[18].mxu0 %v7715_v33 }
0x26ef   :  { %16232 = vmatpush3.bf16.msra.mxu0 %v17316_v39  ;;  %15080 = vmatprep.mubr.msk.f32.mxu0 %vm17053_vm0, %v17054_v1 }
0x26f0   :  { %16233 = vmatprep.subr.bf16.mxu0 %v17052_v0 }
0x26f3   :  { %16235 = vmatpush3.bf16.msra.mxu0 %v17329_v9 }
0x26f4   :  { %16236 = vmatprep.subr.bf16.mxu0 %v17052_v0 }
0x27c1   :  { %v8127_v46 = vpop.f32.mrb[18].mxu0 }
0x27c2   :  { %v16600_v47 = vadd.f32 %v8127_v46, %v7641_v45  ;;  %v15005_v48 = vpop.f32.mrb[19].mxu0 }
0x27c4   :  { %v8131_v52 = vmul.f32 %v16600_v47, %v17441_v56 }
0x27c6   :  { %16981 = vtanh.f32 %v8131_v52 }
0x27d0   :  { %v16982_v50 = vpop.eup %16981 }
0x27d1   :  { %v8133_v54 = vmul.f32 %v16982_v50, %v17441_v56 }
0x27d3   :  { %v8134_v57 = vadd.f32 %v8133_v54, %v17454_v63 }
0x27d5   :  { %8141 = vrot.lane.b32.xlu1 %v8134_v57, %s17056_s4  ;;  %v8139_v62 = vmul.f32 %v8137_v60, %v8134_v57 }
0x2847   :  { %v8142_v55 = vpop.permute.xlu1 %8141 }
0x2848   :  { %v8144_v59 = vmul.f32 %v8142_v55, %v8134_v57 }
0x284a   :  { %8146 = vrot.lane.b32.xlu1 %v8144_v59, %s17057_s28 }
0x28bc   :  { %v8147_v2 = vpop.permute.xlu1 %8146 }
0x28bd   :  { %v8149_v3 = vadd.f32 %v8147_v2, %v8139_v62  ;;  %v9235_v62 = vld [vmem:[%s18838_s6 + $0x10] sm:$0xff] }
0x28be   :  { %v9263_v4 = vand.u32 4294901760, %v9235_v62 }
0x28bf   :  { %16983 = vtanh.f32 %v8149_v3 }
0x28c9   :  { %v16984_v53 = vpop.eup %16983 }
0x28ca   :  { %8152 = vrot.lane.b32.xlu0 %v16984_v53, %s17056_s4  ;;  %v9236_v53 = vld [vmem:[%s18838_s6 + $0x18] sm:$0xff] }
0x28ce   :  { %8168 = vrot.lane.b32.xlu0 %v8149_v3, %s17058_s3 }
0x293c   :  { %v8153_v5 = vpop.permute.xlu0 %8152 }
0x293d   :  { %v8155_v6 = vmul.f32 %v8153_v5, %v8134_v57  ;;  %v9266_v5 = vand.u32 4294901760, %v9236_v53 }
0x293f   :  { %8160 = vrot.lane.b32.xlu1 %v8155_v6, %s17057_s28 }
0x2940   :  { %v8169_v7 = vpop.permute.xlu0 %8168 }
0x2941   :  { %v18247_v8 = vsel %vm8158_vm10, %v8169_v7, %v18187_v27  ;;  %v18355_v7 = vpack.c.bf16 %v9266_v5, %v9263_v4 }
0x2942   :  { %8668 = vrot.lane.b32.xlu0 %v18247_v8, %s17057_s28 }
0x29b1   :  { %v8161_v11 = vpop.permute.xlu1 %8160 }
0x29b2   :  { %v8163_v12 = vsel %vm8158_vm10, %v8161_v11, 0.0  ;;  %v18252_v15 = vsel %vm8158_vm10, %v8161_v11, %v18192_v31  ;;  %v13182_v31 = vld [vmem:[%s18833_s1 + $0x1c] sm:$0x3] }
0x29b3   :  { %8164 = vst.msk [vmem:[#allocation2 + $0x1a] sm:$0x3] %vm1235_vm8, %v8163_v12  ;;  %v8176_v23 = vsel %vm718_vm7, %v18252_v15, 0  ;;  %vm8690_vm11 = vcmp.gt.f32.partialorder %v13182_v31, 0.0  ;;  %v9230_v31 = vld [vmem:[#allocation2 + $0x8] sm:$0xff] }
0x29b4   :  { %8165 = vst.msk [vmem:[#allocation2 + $0x4] sm:$0x3] %vm1237_vm9, %v8163_v12  ;;  %v8247_v28 = vand.u32 4294901760, %v8176_v23  ;;  %v8669_v26 = vpop.permute.xlu0 %8668 }
0x29b6   :  { %v8248_v40 = vsub.f32 %v8176_v23, %v8247_v28 }
0x29b8   :  { %v8249_v49 = vand.u32 4294901760, %v8248_v40 }
0x29ba   :  { %v8250_v10 = vsub.f32 %v8248_v40, %v8249_v49 }
0x29bc   :  { %v8251_v16 = vand.u32 4294901760, %v8250_v10  ;;  %v9381_v10 = vsub.f32 %v9235_v62, %v9263_v4  ;;  %v9899_v62 = vld [vmem:[%s18840_s8 + $0x8] sm:$0xff]  ;;  %v9900_v4 = vld [vmem:[%s18840_s8 + $0x10] sm:$0xff] }
0x29be   :  { %15015 = vmatmul.mubr.f32.vlgmr.msra.gmra.mrb[14].mxu1 %v8251_v16  ;;  %v9388_v16 = vsub.f32 %v9236_v53, %v9266_v5  ;;  %v9901_v5 = vld [vmem:[%s18840_s8 + $0x18] sm:$0xff] }
0x29bf   :  { %16202 = vmatpush3.bf16.msra.mxu1 %v17267_v61  ;;  %15025 = vmatprep.mubr.msk.f32.mxu1 %vm17053_vm0, %v17054_v1 }
0x29c0   :  { %16203 = vmatprep.subr.bf16.mxu1 %v17052_v0 }
0x29c3   :  { %16205 = vmatpush3.bf16.msra.mxu1 %v17289_v34 }
0x29c4   :  { %16206 = vmatprep.subr.bf16.mxu1 %v17052_v0 }
0x29c6   :  { %15026 = vmatmul.mubr.f32.vlgmr.msra.gmra.mrb[14].mxu1 %v8247_v28 }
0x29c7   :  { %16208 = vmatpush3.bf16.msra.mxu1 %v17295_v36  ;;  %15036 = vmatprep.mubr.msk.f32.mxu1 %vm17053_vm0, %v17054_v1 }
0x29c8   :  { %16209 = vmatprep.subr.bf16.mxu1 %v17052_v0 }
0x29cb   :  { %16211 = vmatpush3.bf16.msra.mxu1 %v17304_v37 }
0x29cc   :  { %16212 = vmatprep.subr.bf16.mxu1 %v17052_v0 }
0x29ce   :  { %15037 = vmatmul.mubr.f32.vlgmr.msra.gmra.mrb[14].mxu1 %v8248_v40 }
0x29cf   :  { %16214 = vmatpush3.bf16.msra.mxu1 %v17316_v39  ;;  %15047 = vmatprep.mubr.msk.f32.mxu1 %vm17053_vm0, %v17054_v1 }
0x29d0   :  { %16215 = vmatprep.subr.bf16.mxu1 %v17052_v0 }
0x29d3   :  { %16217 = vmatpush3.bf16.msra.mxu1 %v17329_v9 }
0x29d4   :  { %16218 = vmatprep.subr.bf16.mxu1 %v17052_v0 }
0x29d6   :  { %15048 = vmatmul.mubr.f32.vlgmr.msra.gmra.mrb[14].mxu1 %v8249_v49 }
0x29d7   :  { %16220 = vmatpush3.bf16.msra.mxu1 %v17345_v13  ;;  %15058 = vmatprep.mubr.msk.f32.mxu1 %vm17053_vm0, %v17054_v1 }
0x29d8   :  { %16221 = vmatprep.subr.bf16.mxu1 %v17052_v0 }
0x29db   :  { %16223 = vmatpush3.bf16.msra.mxu1 %v17355_v14 }
0x29dc   :  { %16224 = vmatprep.subr.bf16.mxu1 %v17052_v0 }
0x29de   :  { %15059 = vmatmul.mubr.f32.vlgmr.msra.gmra.mrb[14].mxu1 %v8247_v28 }
0x29df   :  { %16226 = vmatpush3.bf16.msra.mxu1 %v17316_v39  ;;  %15069 = vmatprep.mubr.msk.f32.mxu1 %vm17053_vm0, %v17054_v1 }
0x29e0   :  { %16227 = vmatprep.subr.bf16.mxu1 %v17052_v0 }
0x29e3   :  { %16229 = vmatpush3.bf16.msra.mxu1 %v17329_v9 }
0x29e6   :  { %15070 = vmatmul.mubr.f32.vlgmr.msra.gmra.mrb[14].mxu1 %v8247_v28 }
0x2ab9   :  { %v8659_v18 = vpop.f32.mrb[14].mxu1 }
0x2aba   :  { %v16601_v19 = vadd.f32 %v8659_v18, %v8173_v17  ;;  %v15071_v51 = vpop.f32.mrb[15].mxu1 }
0x2abb   :  { %v9389_v51 = vand.u32 4294901760, %v9388_v16 }
0x2abc   :  { %v8663_v20 = vmul.f32 %v16601_v19, %v17441_v56  ;;  %v9382_v19 = vand.u32 4294901760, %v9381_v10 }
0x2abe   :  { %16985 = vtanh.f32 %v8663_v20 }
0x2ac8   :  { %v16986_v21 = vpop.eup %16985 }
0x2ac9   :  { %v8665_v22 = vmul.f32 %v16986_v21, %v17441_v56  ;;  %v9383_v21 = vsub.f32 %v9381_v10, %v9382_v19 }
0x2acb   :  { %v8666_v24 = vadd.f32 %v8665_v22, %v17454_v63  ;;  %v9390_v22 = vsub.f32 %v9388_v16, %v9389_v51 }
0x2acd   :  { %8673 = vrot.lane.b32.xlu1 %v8666_v24, %s17056_s4  ;;  %v8671_v27 = vmul.f32 %v8669_v26, %v8666_v24 }
0x2b3f   :  { %v8674_v58 = vpop.permute.xlu1 %8673 }
0x2b40   :  { %v8676_v25 = vmul.f32 %v8674_v58, %v8666_v24  ;;  %v9391_v58 = vand.u32 4294901760, %v9390_v22 }
0x2b42   :  { %8678 = vrot.lane.b32.xlu1 %v8676_v25, %s17057_s28 }
0x2bb4   :  { %v8679_v43 = vpop.permute.xlu1 %8678 }
0x2bb5   :  { %v8681_v29 = vadd.f32 %v8679_v43, %v8671_v27  ;;  %v16286_v27 = vpack.c.bf16 %v9388_v16, %v9381_v10 }
0x2bb7   :  { %16987 = vtanh.f32 %v8681_v29 }
0x2bc1   :  { %v16988_v30 = vpop.eup %16987 }
0x2bc2   :  { %8684 = vrot.lane.b32.xlu0 %v16988_v30, %s17056_s4  ;;  %v13183_v30 = vld [vmem:[%s18833_s1 + $0x1e] sm:$0x3] }
0x2bc6   :  { %8700 = vrot.lane.b32.xlu0 %v8681_v29, %s17058_s3  ;;  %v18362_v29 = vpack.c.bf16 %v9389_v51, %v9382_v19 }
0x2c34   :  { %v8685_v32 = vpop.permute.xlu0 %8684 }
0x2c35   :  { %v8687_v33 = vmul.f32 %v8685_v32, %v8666_v24  ;;  %v9384_v24 = vand.u32 4294901760, %v9383_v21  ;;  %v9231_v32 = vld [vmem:[#allocation2 + $0x10] sm:$0xff] }
0x2c37   :  { %8692 = vrot.lane.b32.xlu1 %v8687_v33, %s17057_s28  ;;  %v16278_v25 = vpack.c.bf16 %v9391_v58, %v9384_v24 }
0x2c38   :  { %v8701_v35 = vpop.permute.xlu0 %8700 }
0x2c39   :  { %v8703_v38 = vsel %vm8690_vm11, %v8701_v35, %v18247_v8 }
0x2c3a   :  { %9199 = vrot.lane.b32.xlu0 %v8703_v38, %s17057_s28  ;;  %v9248_v38 = vsel %vm718_vm7, %v9230_v31, 0 }
0x2ca9   :  { %v8693_v41 = vpop.permute.xlu1 %8692 }
0x2caa   :  { %v8695_v42 = vsel %vm8690_vm11, %v8693_v41, 0.0  ;;  %v8698_v45 = vsel %vm8690_vm11, %v8693_v41, %v18252_v15  ;;  %v9251_v41 = vsel %vm718_vm7, %v9231_v32, 0 }
0x2cab   :  { %8696 = vst.msk [vmem:[#allocation2 + $0x1c] sm:$0x3] %vm1235_vm8, %v8695_v42  ;;  %v8707_v46 = vsel %vm718_vm7, %v8698_v45, 0  ;;  %v18373_v45 = vand.u32 4294901760, %v9251_v41 }
0x2cac   :  { %8697 = vst.msk [vmem:[#allocation2 + $0x2] sm:$0x3] %vm1237_vm9, %v8695_v42  ;;  %v8778_v47 = vand.u32 4294901760, %v8707_v46  ;;  %v18371_v42 = vand.u32 4294901760, %v9248_v38 }
0x2cae   :  { %v8779_v48 = vsub.f32 %v8707_v46, %v8778_v47  ;;  %v9336_v46 = vsub.f32 %v9248_v38, %v18371_v42 }
0x2cb0   :  { %v8780_v52 = vand.u32 4294901760, %v8779_v48 }
0x2cb2   :  { %v8781_v50 = vsub.f32 %v8779_v48, %v8780_v52 }
0x2cb4   :  { %v8782_v54 = vand.u32 4294901760, %v8781_v50 }
0x2cb6   :  { %15081 = vmatmul.mubr.f32.vlgmr.msra.gmra.mrb[20].mxu0 %v8782_v54 }
0x2cb7   :  { %16238 = vmatpush3.bf16.msra.mxu0 %v17267_v61  ;;  %15091 = vmatprep.mubr.msk.f32.mxu0 %vm17053_vm0, %v17054_v1  ;;  %v8704_v61 = vrot.slane %v17416_v44, 6 }
0x2cb8   :  { %16239 = vmatprep.subr.bf16.mxu0 %v17052_v0 }
0x2cbb   :  { %16241 = vmatpush3.bf16.msra.mxu0 %v17289_v34 }
0x2cbc   :  { %16242 = vmatprep.subr.bf16.mxu0 %v17052_v0 }
0x2cbe   :  { %15092 = vmatmul.mubr.f32.vlgmr.msra.gmra.mrb[20].mxu0 %v8778_v47 }
0x2cbf   :  { %16244 = vmatpush3.bf16.msra.mxu0 %v17295_v36  ;;  %15102 = vmatprep.mubr.msk.f32.mxu0 %vm17053_vm0, %v17054_v1 }
0x2cc0   :  { %16245 = vmatprep.subr.bf16.mxu0 %v17052_v0 }
0x2cc3   :  { %16247 = vmatpush3.bf16.msra.mxu0 %v17304_v37 }
0x2cc4   :  { %16248 = vmatprep.subr.bf16.mxu0 %v17052_v0 }
0x2cc6   :  { %15103 = vmatmul.mubr.f32.vlgmr.msra.gmra.mrb[20].mxu0 %v8779_v48  ;;  %v9346_v48 = vsub.f32 %v9251_v41, %v18373_v45 }
0x2cc7   :  { %16250 = vmatpush3.bf16.msra.mxu0 %v17316_v39  ;;  %15113 = vmatprep.mubr.msk.f32.mxu0 %vm17053_vm0, %v17054_v1 }
0x2cc8   :  { %16251 = vmatprep.subr.bf16.mxu0 %v17052_v0 }
0x2ccb   :  { %16253 = vmatpush3.bf16.msra.mxu0 %v17329_v9 }
0x2ccc   :  { %16254 = vmatprep.subr.bf16.mxu0 %v17052_v0 }
0x2cce   :  { %15114 = vmatmul.mubr.f32.vlgmr.msra.gmra.mrb[20].mxu0 %v8780_v52 }
0x2ccf   :  { %16256 = vmatpush3.bf16.msra.mxu0 %v17345_v13  ;;  %15124 = vmatprep.mubr.msk.f32.mxu0 %vm17053_vm0, %v17054_v1 }
0x2cd0   :  { %16257 = vmatprep.subr.bf16.mxu0 %v17052_v0 }
0x2cd3   :  { %16259 = vmatpush3.bf16.msra.mxu0 %v17355_v14 }
0x2cd4   :  { %16260 = vmatprep.subr.bf16.mxu0 %v17052_v0 }
0x2cd6   :  { %15125 = vmatmul.mubr.f32.vlgmr.msra.gmra.mrb[20].mxu0 %v8778_v47 }
0x2cd7   :  { %16262 = vmatpush3.bf16.msra.mxu0 %v17316_v39  ;;  %15135 = vmatprep.mubr.msk.f32.mxu0 %vm17053_vm0, %v17054_v1  ;;  %vm9221_vm0 = vcmp.gt.f32.partialorder %v13183_v30, 0.0 }
0x2cd8   :  { %16263 = vmatprep.subr.bf16.mxu0 %v17052_v0 }
0x2cdb   :  { %16265 = vmatpush3.bf16.msra.mxu0 %v17329_v9  ;;  %v9200_v9 = vpop.permute.xlu0 %9199 }
0x2cde   :  { %15136 = vmatmul.mubr.f32.vlgmr.msra.gmra.mrb[20].mxu0 %v8778_v47 }
0x2db1   :  { %v9190_v34 = vpop.f32.mrb[20].mxu0 }
0x2db2   :  { %v16602_v36 = vadd.f32 %v9190_v34, %v8704_v61  ;;  %v15137_v37 = vpop.f32.mrb[21].mxu0 }
0x2db4   :  { %v9194_v13 = vmul.f32 %v16602_v36, %v17441_v56  ;;  %v9337_v36 = vand.u32 4294901760, %v9336_v46 }
0x2db6   :  { %16989 = vtanh.f32 %v9194_v13  ;;  %v9347_v13 = vand.u32 4294901760, %v9346_v48 }
0x2dc0   :  { %v16990_v14 = vpop.eup %16989 }
0x2dc1   :  { %v9196_v57 = vmul.f32 %v16990_v14, %v17441_v56  ;;  %v9233_v56 = vld [vmem:[%s18838_s6] sm:$0xff] }
0x2dc2   :  { %v9257_v2 = vand.u32 4294901760, %v9233_v56 }
0x2dc3   :  { %v9197_v39 = vadd.f32 %v9196_v57, %v17454_v63  ;;  %v9234_v63 = vld [vmem:[%s18838_s6 + $0x8] sm:$0xff] }
0x2dc4   :  { %v9260_v3 = vand.u32 4294901760, %v9234_v63  ;;  %v9367_v12 = vsub.f32 %v9233_v56, %v9257_v2 }
0x2dc5   :  { %9204 = vrot.lane.b32.xlu1 %v9197_v39, %s17056_s4  ;;  %v9202_v55 = vmul.f32 %v9200_v9, %v9197_v39  ;;  %v9348_v9 = vsub.f32 %v9346_v48, %v9347_v13 }
0x2dc6   :  { %v18353_v6 = vpack.c.bf16 %v9260_v3, %v9257_v2  ;;  %v9374_v15 = vsub.f32 %v9234_v63, %v9260_v3  ;;  %v9368_v23 = vand.u32 4294901760, %v9367_v12  ;;  %v9898_v63 = vld [vmem:[%s18840_s8] sm:$0xff]  ;;  %v9918_v3 = vand.u32 4294901760, %v9899_v62 }
0x2dc7   :  { %v9915_v2 = vand.u32 4294901760, %v9898_v63 }
0x2dc8   :  { %16267 = vmatprep.subr.bf16.mxu1 %v18353_v6  ;;  %v9375_v28 = vand.u32 4294901760, %v9374_v15  ;;  %v9369_v40 = vsub.f32 %v9367_v12, %v9368_v23  ;;  %v16282_v26 = vpack.c.bf16 %v9374_v15, %v9367_v12 }
0x2dc9   :  { %16269 = vmatpush3.bf16.msra.mxu1 %v18353_v6  ;;  %v18401_v53 = vpack.c.bf16 %v9918_v3, %v9915_v2 }
0x2dca   :  { %16271 = vmatprep.subr.bf16.mxu1 %v18355_v7  ;;  %v9376_v49 = vsub.f32 %v9374_v15, %v9375_v28  ;;  %v9370_v17 = vand.u32 4294901760, %v9369_v40  ;;  %v16298_v43 = vpack.c.bf16 %v9375_v28, %v9368_v23 }
0x2dcb   :  { %16315 = vmatprep.subr.bf16.mxu0 %v18401_v53 }
0x2dcc   :  { %v9377_v18 = vand.u32 4294901760, %v9376_v49  ;;  %16317 = vmatpush3.bf16.msra.mxu0 %v18401_v53 }
0x2dcd   :  { %16273 = vmatpush3.bf16.msra.mxu1 %v18355_v7 }
0x2dce   :  { %v16274_v20 = vpack.c.bf16 %v9377_v18, %v9370_v17 }
0x2dd0   :  { %16275 = vmatprep.subr.bf16.mxu1 %v16274_v20 }
0x2e37   :  { %v9205_v1 = vpop.permute.xlu1 %9204 }
0x2e38   :  { %v9207_v0 = vmul.f32 %v9205_v1, %v9197_v39 }
0x2e3a   :  { %9209 = vrot.lane.b32.xlu1 %v9207_v0, %s17057_s28 }
0x2eac   :  { %v9210_v44 = vpop.permute.xlu1 %9209 }
0x2ead   :  { %v9212_v59 = vadd.f32 %v9210_v44, %v9202_v55 }
0x2eaf   :  { %16991 = vtanh.f32 %v9212_v59 }
0x2eb9   :  { %v16992_v60 = vpop.eup %16991 }
0x2eba   :  { %9215 = vrot.lane.b32.xlu0 %v16992_v60, %s17056_s4  ;;  %v9349_v60 = vand.u32 4294901760, %v9348_v9 }
0x2f2c   :  { %v9216_v8 = vpop.permute.xlu0 %9215 }
0x2f2d   :  { %v9218_v11 = vmul.f32 %v9216_v8, %v9197_v39  ;;  %v9338_v39 = vsub.f32 %v9336_v46, %v9337_v36  ;;  %v9921_v8 = vand.u32 4294901760, %v9900_v4 }
0x2f2f   :  { %9223 = vrot.lane.b32.xlu1 %v9218_v11, %s17057_s28  ;;  %v9339_v44 = vand.u32 4294901760, %v9338_v39  ;;  %v9924_v11 = vand.u32 4294901760, %v9901_v5  ;;  %v10039_v49 = vsub.f32 %v9900_v4, %v9921_v8 }
0x2f31   :  { %v18411_v23 = vpack.c.bf16 %v9924_v11, %v9921_v8  ;;  %v10046_v10 = vsub.f32 %v9901_v5, %v9924_v11  ;;  %v10040_v18 = vand.u32 4294901760, %v10039_v49 }
0x2f33   :  { %16319 = vmatprep.subr.bf16.mxu0 %v18411_v23  ;;  %v10047_v19 = vand.u32 4294901760, %v10046_v10 }
0x2f34   :  { %16321 = vmatpush3.bf16.msra.mxu0 %v18411_v23 }
0x2f35   :  { %v10048_v21 = vsub.f32 %v10046_v10, %v10047_v19 }
0x2f37   :  { %v10049_v24 = vand.u32 4294901760, %v10048_v21 }
0x2fa1   :  { %v9224_v33 = vpop.permute.xlu1 %9223 }
0x2fa2   :  { %v9226_v35 = vsel %vm9221_vm0, %v9224_v33, 0.0 }
0x2fa3   :  { %9227 = vst.msk [vmem:[#allocation2 + $0x1e] sm:$0x3] %vm1235_vm8, %v9226_v35  ;;  %vm11199_vm8 = vcmask 392192  }
0x2fa4   :  { %9228 = vst.msk [vmem:[#allocation2] sm:$0x3] %vm1237_vm9, %v9226_v35  ;;  %vm12501_vm9 = vcmask 130048  }
0x2faa   :  { %v9232_v52 = vld [vmem:[#allocation2 + $0x18] sm:$0xff] }
0x2fab   :  { %v9229_v47 = vld [vmem:[#allocation2] sm:$0xff]  ;;  %v9254_v54 = vsel %vm718_vm7, %v9232_v52, 0 }
0x2fac   :  { %v9245_v50 = vsel %vm718_vm7, %v9229_v47, 0  ;;  %v9355_v34 = vand.u32 4294901760, %v9254_v54 }
0x2fad   :  { %v9325_v61 = vand.u32 4294901760, %v9245_v50 }
0x2fae   :  { %v9356_v14 = vsub.f32 %v9254_v54, %v9355_v34 }
0x2faf   :  { %v9326_v37 = vsub.f32 %v9245_v50, %v9325_v61 }
0x2fb0   :  { %v9357_v1 = vand.u32 4294901760, %v9356_v14 }
0x2fb1   :  { %v9327_v57 = vand.u32 4294901760, %v9326_v37 }
0x2fb2   :  { %v9358_v59 = vsub.f32 %v9356_v14, %v9357_v1 }
0x2fb3   :  { %v9328_v0 = vsub.f32 %v9326_v37, %v9327_v57 }
0x2fb4   :  { %v9359_v56 = vand.u32 4294901760, %v9358_v59 }
0x2fb5   :  { %v9329_v55 = vand.u32 4294901760, %v9328_v0 }
0x2fb7   :  { %15146 = vmatprep.mubr.f32.mxu1 %v9329_v55 }
0x2fb8   :  { %15147 = vmatmul.mubr.f32.vlgmr.msra.gmra.mrb[16].mxu1 %v9339_v44 }
0x2fb9   :  { %15149 = vmatprep.mubr.f32.mxu1 %v9349_v60  ;;  %16277 = vmatpush3.bf16.msra.mxu1 %v16274_v20  ;;  %v10041_v20 = vsub.f32 %v10039_v49, %v10040_v18 }
0x2fba   :  { %16279 = vmatprep.subr.bf16.mxu1 %v16278_v25 }
0x2fbb   :  { %v10042_v22 = vand.u32 4294901760, %v10041_v20 }
0x2fbc   :  { %15150 = vmatmul.mubr.f32.gmra.mrb[18].mxu1 %v9359_v56 }
0x2fbd   :  { %16281 = vmatpush3.bf16.msra.mxu1 %v16278_v25  ;;  %15160 = vmatprep.mubr.f32.mxu1 %v9325_v61  ;;  %v16326_v58 = vpack.c.bf16 %v10049_v24, %v10042_v22 }
0x2fbe   :  { %16283 = vmatprep.subr.bf16.mxu1 %v16282_v26 }
0x2fc0   :  { %15161 = vmatmul.mubr.f32.vlgmr.msra.gmra.mrb[16].mxu1 %v18371_v42 }
0x2fc1   :  { %15163 = vmatprep.mubr.f32.mxu1 %v18373_v45  ;;  %16285 = vmatpush3.bf16.msra.mxu1 %v16282_v26  ;;  %v16334_v26 = vpack.c.bf16 %v10046_v10, %v10039_v49 }
0x2fc2   :  { %16287 = vmatprep.subr.bf16.mxu1 %v16286_v27 }
0x2fc4   :  { %15164 = vmatmul.mubr.f32.gmra.mrb[18].mxu1 %v9355_v34 }
0x2fc5   :  { %16289 = vmatpush3.bf16.msra.mxu1 %v16286_v27  ;;  %15174 = vmatprep.mubr.f32.mxu1 %v9326_v37 }
0x2fc6   :  { %16291 = vmatprep.subr.bf16.mxu1 %v18353_v6 }
0x2fc8   :  { %15175 = vmatmul.mubr.f32.vlgmr.msra.gmra.mrb[16].mxu1 %v9336_v46 }
0x2fc9   :  { %15177 = vmatprep.mubr.f32.mxu1 %v9346_v48  ;;  %16293 = vmatpush3.bf16.msra.mxu1 %v18353_v6 }
0x2fca   :  { %16295 = vmatprep.subr.bf16.mxu1 %v18355_v7 }
0x2fcc   :  { %15178 = vmatmul.mubr.f32.gmra.mrb[18].mxu1 %v9356_v14 }
0x2fcd   :  { %16297 = vmatpush3.bf16.msra.mxu1 %v18355_v7  ;;  %15188 = vmatprep.mubr.f32.mxu1 %v9327_v57 }
0x2fce   :  { %16299 = vmatprep.subr.bf16.mxu1 %v16298_v43 }
0x2fd0   :  { %15189 = vmatmul.mubr.f32.vlgmr.msra.gmra.mrb[16].mxu1 %v9337_v36 }
0x2fd1   :  { %15191 = vmatprep.mubr.f32.mxu1 %v9347_v13  ;;  %16301 = vmatpush3.bf16.msra.mxu1 %v16298_v43  ;;  %v18415_v43 = vpack.c.bf16 %v10047_v19, %v10040_v18 }
0x2fd2   :  { %16303 = vmatprep.subr.bf16.mxu1 %v18362_v29 }
0x2fd4   :  { %15192 = vmatmul.mubr.f32.gmra.mrb[18].mxu1 %v9357_v1 }
0x2fd5   :  { %16305 = vmatpush3.bf16.msra.mxu1 %v18362_v29  ;;  %15202 = vmatprep.mubr.f32.mxu1 %v9325_v61  ;;  %v13184_v29 = vld [vmem:[%s18839_s7] ss:$0 sm:$0xff] }
0x2fd6   :  { %16307 = vmatprep.subr.bf16.mxu1 %v18353_v6 }
0x2fd8   :  { %15203 = vmatmul.mubr.f32.vlgmr.msra.gmra.mrb[16].mxu1 %v18371_v42 }
0x2fd9   :  { %15205 = vmatprep.mubr.f32.mxu1 %v18373_v45  ;;  %16309 = vmatpush3.bf16.msra.mxu1 %v18353_v6  ;;  %v10025_v6 = vsub.f32 %v9898_v63, %v9915_v2 }
0x2fda   :  { %16311 = vmatprep.subr.bf16.mxu1 %v18355_v7 }
0x2fdb   :  { %v10026_v12 = vand.u32 4294901760, %v10025_v6 }
0x2fdc   :  { %15206 = vmatmul.mubr.f32.gmra.mrb[18].mxu1 %v9355_v34 }
0x2fdd   :  { %16313 = vmatpush3.bf16.msra.mxu1 %v18355_v7  ;;  %15216 = vmatprep.mubr.f32.mxu1 %v9325_v61  ;;  %v10032_v7 = vsub.f32 %v9899_v62, %v9918_v3  ;;  %v10027_v28 = vsub.f32 %v10025_v6, %v10026_v12  ;;  %v9870_v62 = vld [vmem:[%s18834_s2] sm:$0xff] }
0x2fde   :  { %v10529_v2 = vsel %vm718_vm7, %v9870_v62, 0  ;;  %v9874_v8 = vsel %vm718_vm7, %v9870_v62, 0.0 }
0x2fdf   :  { %v10033_v15 = vand.u32 4294901760, %v10032_v7  ;;  %v10028_v16 = vand.u32 4294901760, %v10027_v28  ;;  %v16330_v25 = vpack.c.bf16 %v10032_v7, %v10025_v6  ;;  %v18456_v3 = vand.u32 4294901760, %v10529_v2  ;;  %9875 = vadd.xlane.f32.xlu0 %v9874_v8 }
0x2fe0   :  { %15217 = vmatmul.mubr.f32.vlgmr.msra.gmra.mrb[16].mxu1 %v18371_v42 }
0x2fe1   :  { %15219 = vmatprep.mubr.f32.mxu1 %v18373_v45  ;;  %v10034_v40 = vsub.f32 %v10032_v7, %v10033_v15  ;;  %v16346_v27 = vpack.c.bf16 %v10033_v15, %v10026_v12  ;;  %v9871_v7 = vld [vmem:[%s18834_s2 + $0x8] sm:$0xff]  ;;  %v9872_v12 = vld [vmem:[%s18834_s2 + $0x10] sm:$0xff] }
0x2fe2   :  { %v9877_v11 = vsel %vm718_vm7, %v9871_v7, 0.0  ;;  %v9880_v15 = vsel %vm718_vm7, %v9872_v12, 0.0  ;;  %v10535_v49 = vsel %vm718_vm7, %v9872_v12, 0 }
0x2fe3   :  { %v10035_v17 = vand.u32 4294901760, %v10034_v40  ;;  %9878 = vadd.xlane.f32.xlu1 %v9877_v11  ;;  %9881 = vadd.xlane.f32.xlu0 %v9880_v15  ;;  %v10532_v40 = vsel %vm718_vm7, %v9871_v7, 0 }
0x2fe4   :  { %15220 = vmatmul.mubr.f32.gmra.mrb[18].mxu1 %v9355_v34  ;;  %v18484_v10 = vand.u32 4294901760, %v10532_v40 }
0x2fe5   :  { %v16322_v51 = vpack.c.bf16 %v10035_v17, %v10028_v16  ;;  %v18486_v16 = vand.u32 4294901760, %v10535_v49 }
0x2fe6   :  { %v18490_v18 = vsub.f32 %v10532_v40, %v18484_v10 }
0x2fe7   :  { %16323 = vmatprep.subr.bf16.mxu0 %v16322_v51 }
0x2fe8   :  { %v18503_v24 = vand.u32 4294901760, %v18490_v18 }
0x306c   :  { %v9876_v8 = vpop.xlane.xlu0 %9875 }
0x3070   :  { %v9879_v11 = vpop.xlane.xlu1 %9878  ;;  %v9882_v12 = vpop.xlane.xlu0 %9881 }
0x3071   :  { %v9887_v15 = vadd.f32 1.0, %v9879_v11  ;;  %v9888_v40 = vadd.f32 1.0, %v9882_v12 }
0x3073   :  { %16993 = vrcp.f32 %v9887_v15 }
0x30b3   :  { %v15218_v30 = vpop.f32.mrb[16].mxu1 }
0x30b4   :  { %v18420_v31 = vadd.f32 %v15218_v30, %v13184_v29  ;;  %v9848_v32 = vpop.f32.mrb[17].mxu1 }
0x30b5   :  { %v18422_v33 = vadd.f32 %v13184_v29, %v9848_v32 }
0x30b6   :  { %v9906_v35 = vsel %vm718_vm7, %v18420_v31, 0 }
0x30b7   :  { %v18426_v38 = vand.u32 4294901760, %v9906_v35  ;;  %v9903_v41 = vsel %vm718_vm7, %v18422_v33, 0  ;;  %v15221_v42 = vpop.f32.mrb[18].mxu1 }
0x30b8   :  { %v9983_v45 = vand.u32 4294901760, %v9903_v41  ;;  %v18430_v46 = vadd.f32 %v15221_v42, %v13184_v29  ;;  %v9860_v47 = vpop.f32.mrb[19].mxu1 }
0x30b9   :  { %v9994_v48 = vsub.f32 %v9906_v35, %v18426_v38  ;;  %v18433_v52 = vadd.f32 %v13184_v29, %v9860_v47 }
0x30ba   :  { %v9984_v50 = vsub.f32 %v9903_v41, %v9983_v45  ;;  %v9912_v54 = vsel %vm718_vm7, %v18430_v46, 0  ;;  %v10622_v41 = vsub.f32 %v18490_v18, %v18503_v24 }
0x30bb   :  { %v10013_v61 = vand.u32 4294901760, %v9912_v54  ;;  %v9909_v34 = vsel %vm718_vm7, %v18433_v52, 0  ;;  %v9995_v36 = vand.u32 4294901760, %v9994_v48 }
0x30bc   :  { %v10003_v37 = vand.u32 4294901760, %v9909_v34  ;;  %v9985_v13 = vand.u32 4294901760, %v9984_v50 }
0x30bd   :  { %v10014_v14 = vsub.f32 %v9912_v54, %v10013_v61  ;;  %v9996_v57 = vsub.f32 %v9994_v48, %v9995_v36 }
0x30be   :  { %v10004_v39 = vsub.f32 %v9909_v34, %v10003_v37  ;;  %v9986_v1 = vsub.f32 %v9984_v50, %v9985_v13 }
0x30bf   :  { %v10015_v0 = vand.u32 4294901760, %v10014_v14  ;;  %v9997_v44 = vand.u32 4294901760, %v9996_v57  ;;  %v18533_v57 = vand.u32 4294901760, %v10622_v41 }
0x30c0   :  { %v9987_v9 = vand.u32 4294901760, %v9986_v1  ;;  %v10005_v55 = vand.u32 4294901760, %v10004_v39 }
0x30c1   :  { %v10016_v59 = vsub.f32 %v10014_v14, %v10015_v0 }
0x30c2   :  { %15230 = vmatprep.mubr.f32.mxu0 %v9987_v9  ;;  %v10006_v60 = vsub.f32 %v10004_v39, %v10005_v55 }
0x30c3   :  { %15231 = vmatmul.mubr.f32.vlgmr.msra.gmra.mrb[22].mxu0 %v9997_v44  ;;  %v10017_v63 = vand.u32 4294901760, %v10016_v59 }
0x30c4   :  { %16325 = vmatpush3.bf16.msra.mxu0 %v16322_v51  ;;  %v10007_v56 = vand.u32 4294901760, %v10006_v60  ;;  %v18495_v51 = vsub.f32 %v10535_v49, %v18486_v16 }
0x30c5   :  { %16327 = vmatprep.subr.bf16.mxu0 %v16326_v58 }
0x30c6   :  { %15233 = vmatprep.mubr.f32.mxu0 %v10007_v56 }
0x30c7   :  { %15234 = vmatmul.mubr.f32.gmra.mrb[24].mxu0 %v10017_v63 }
0x30c8   :  { %16329 = vmatpush3.bf16.msra.mxu0 %v16326_v58  ;;  %15244 = vmatprep.mubr.f32.mxu0 %v9983_v45 }
0x30c9   :  { %16331 = vmatprep.subr.bf16.mxu0 %v16330_v25 }
0x30cb   :  { %15245 = vmatmul.mubr.f32.vlgmr.msra.gmra.mrb[22].mxu0 %v18426_v38 }
0x30cc   :  { %15247 = vmatprep.mubr.f32.mxu0 %v10003_v37  ;;  %16333 = vmatpush3.bf16.msra.mxu0 %v16330_v25 }
0x30cd   :  { %16335 = vmatprep.subr.bf16.mxu0 %v16334_v26 }
0x30cf   :  { %15248 = vmatmul.mubr.f32.gmra.mrb[24].mxu0 %v10013_v61 }
0x30d0   :  { %16337 = vmatpush3.bf16.msra.mxu0 %v16334_v26  ;;  %15258 = vmatprep.mubr.f32.mxu0 %v9984_v50 }
0x30d1   :  { %16339 = vmatprep.subr.bf16.mxu0 %v18401_v53 }
0x30d3   :  { %15259 = vmatmul.mubr.f32.vlgmr.msra.gmra.mrb[22].mxu0 %v9994_v48 }
0x30d4   :  { %15261 = vmatprep.mubr.f32.mxu0 %v10004_v39  ;;  %16341 = vmatpush3.bf16.msra.mxu0 %v18401_v53 }
0x30d5   :  { %16343 = vmatprep.subr.bf16.mxu0 %v18411_v23 }
0x30d7   :  { %15262 = vmatmul.mubr.f32.gmra.mrb[24].mxu0 %v10014_v14 }
0x30d8   :  { %16345 = vmatpush3.bf16.msra.mxu0 %v18411_v23  ;;  %15272 = vmatprep.mubr.f32.mxu0 %v9985_v13 }
0x30d9   :  { %16347 = vmatprep.subr.bf16.mxu0 %v16346_v27 }
0x30db   :  { %15273 = vmatmul.mubr.f32.vlgmr.msra.gmra.mrb[22].mxu0 %v9995_v36 }
0x30dc   :  { %15275 = vmatprep.mubr.f32.mxu0 %v10005_v55  ;;  %16349 = vmatpush3.bf16.msra.mxu0 %v16346_v27  ;;  %v18511_v27 = vand.u32 4294901760, %v18495_v51 }
0x30dd   :  { %16351 = vmatprep.subr.bf16.mxu0 %v18415_v43 }
0x30df   :  { %15276 = vmatmul.mubr.f32.gmra.mrb[24].mxu0 %v10015_v0 }
0x30e0   :  { %16353 = vmatpush3.bf16.msra.mxu0 %v18415_v43  ;;  %15286 = vmatprep.mubr.f32.mxu0 %v9983_v45 }
0x30e1   :  { %16355 = vmatprep.subr.bf16.mxu0 %v18401_v53 }
0x30e3   :  { %15287 = vmatmul.mubr.f32.vlgmr.msra.gmra.mrb[22].mxu0 %v18426_v38 }
0x30e4   :  { %15289 = vmatprep.mubr.f32.mxu0 %v10003_v37  ;;  %16357 = vmatpush3.bf16.msra.mxu0 %v18401_v53  ;;  %v18459_v53 = vsub.f32 %v10529_v2, %v18456_v3 }
0x30e5   :  { %16359 = vmatprep.subr.bf16.mxu0 %v18411_v23 }
0x30e6   :  { %v18462_v4 = vand.u32 4294901760, %v18459_v53 }
0x30e7   :  { %15290 = vmatmul.mubr.f32.gmra.mrb[24].mxu0 %v10013_v61 }
0x30e8   :  { %16361 = vmatpush3.bf16.msra.mxu0 %v18411_v23  ;;  %15300 = vmatprep.mubr.f32.mxu0 %v9983_v45  ;;  %v10612_v5 = vsub.f32 %v18459_v53, %v18462_v4  ;;  %v9873_v23 = vld [vmem:[%s18834_s2 + $0x18] sm:$0xff]  ;;  %s17060_s2 = smov [#allocation6]  }
0x30e9   :  { %v9883_v28 = vsel %vm718_vm7, %v9873_v23, 0.0  ;;  %v10538_v17 = vsel %vm718_vm7, %v9873_v23, 0  ;;  %v9886_v23 = vadd.f32 1.0, %v9876_v8  ;;  %s13156_s19 = sshll.u32 %s17060_s2, 4  ;;  %s13157_s19 = int_to_ptr.vmem [resolvable:$true] %s13156_s19 }
0x30ea   :  { %v18466_v6 = vand.u32 4294901760, %v10612_v5  ;;  %9884 = vadd.xlane.f32.xlu0 %v9883_v28  ;;  %v18492_v19 = vand.u32 4294901760, %v10538_v17  ;;  %p17028_p9 = scmp.lt.s32.totalorder %s13157_s19, %s13157_s19 }
0x30eb   :  { %15301 = vmatmul.mubr.f32.vlgmr.msra.gmra.mrb[22].mxu0 %v18426_v38  ;;  %16995 = vrcp.f32 %v9886_v23 }
0x30ec   :  { %15303 = vmatprep.mubr.f32.mxu0 %v10003_v37  ;;  %15314 = vmatprep.mubr.f32.mxu1 %v18466_v6  ;;  %v18507_v25 = vsub.f32 %v10538_v17, %v18492_v19  ;;  %16997 = vrcp.f32 %v9888_v40  ;;  %v11193_v17 = vld [vmem:[%s18842_s10] sm:$0xff] }
0x30ee   :  { %v18526_v47 = vand.u32 4294901760, %v18507_v25 }
0x30ef   :  { %15304 = vmatmul.mubr.f32.gmra.mrb[24].mxu0 %v10013_v61  ;;  %v10632_v61 = vsub.f32 %v18495_v51, %v18511_v27 }
0x30f0   :  { %v10642_v9 = vsub.f32 %v18507_v25, %v18526_v47 }
0x30f1   :  { %v18537_v44 = vand.u32 4294901760, %v10632_v61 }
0x30f2   :  { %v18540_v2 = vand.u32 4294901760, %v10642_v9 }
0x3177   :  { %v9885_v28 = vpop.xlane.xlu0 %9884 }
0x3178   :  { %v9889_v49 = vadd.f32 1.0, %v9885_v28 }
0x317a   :  { %16999 = vrcp.f32 %v9889_v49 }
0x31be   :  { %v18497_v20 = vpop.f32.mrb[22].mxu0 }
0x31bf   :  { %v10544_v21 = vand.u32 4294901760, %v18497_v20  ;;  %v18500_v22 = vpop.f32.mrb[23].mxu0 }
0x31c0   :  { %v10541_v58 = vand.u32 4294901760, %v18500_v22 }
0x31c1   :  { %v10658_v26 = vsub.f32 %v18497_v20, %v10544_v21 }
0x31c2   :  { %v18513_v43 = vpack.c.bf16 %v10544_v21, %v10541_v58  ;;  %v10651_v29 = vsub.f32 %v18500_v22, %v10541_v58  ;;  %v18516_v30 = vpop.f32.mrb[24].mxu0  ;;  %v11194_v21 = vld [vmem:[%s18842_s10 + $0x8] sm:$0xff] }
0x31c3   :  { %v10659_v32 = vand.u32 4294901760, %v10658_v26  ;;  %v10550_v35 = vand.u32 4294901760, %v18516_v30  ;;  %v18519_v38 = vpop.f32.mrb[25].mxu0  ;;  %v11216_v58 = vand.u32 4294901760, %v11194_v21 }
0x31c4   :  { %v10652_v42 = vand.u32 4294901760, %v10651_v29  ;;  %v10547_v45 = vand.u32 4294901760, %v18519_v38  ;;  %16363 = vmatprep.subr.bf16.mxu1 %v18513_v43  ;;  %v16378_v48 = vpack.c.bf16 %v10658_v26, %v10651_v29 }
0x31c5   :  { %v10672_v50 = vsub.f32 %v18516_v30, %v10550_v35  ;;  %16365 = vmatpush3.bf16.msra.mxu1 %v18513_v43  ;;  %v10660_v54 = vsub.f32 %v10658_v26, %v10659_v32  ;;  %v10513_v26 = vadd.f32 nan, %v18497_v20  ;;  %v18588_v20 = vpop.eup %16993 }
0x31c6   :  { %v16366_v34 = vpack.c.bf16 %v10550_v35, %v10547_v45  ;;  %v10665_v36 = vsub.f32 %v18519_v38, %v10547_v45  ;;  %v10653_v37 = vsub.f32 %v10651_v29, %v10652_v42  ;;  %v16394_v13 = vpack.c.bf16 %v10659_v32, %v10652_v42  ;;  %v13185_v29 = vld [vmem:[%s18841_s9] ss:$0 sm:$0xff]  ;;  %v11195_v45 = vld [vmem:[%s18842_s10 + $0x10] sm:$0xff] }
0x31c7   :  { %v10673_v14 = vand.u32 4294901760, %v10672_v50  ;;  %v10661_v39 = vand.u32 4294901760, %v10660_v54  ;;  %v10507_v32 = vadd.f32 nan, %v18500_v22  ;;  %v11219_v54 = vand.u32 4294901760, %v11195_v45  ;;  %v18591_v22 = vpop.eup %16995 }
0x31c8   :  { %v10666_v1 = vand.u32 4294901760, %v10665_v36  ;;  %16367 = vmatprep.subr.bf16.mxu1 %v16366_v34  ;;  %v10654_v0 = vand.u32 4294901760, %v10653_v37  ;;  %v16382_v55 = vpack.c.bf16 %v10672_v50, %v10665_v36  ;;  %v10519_v37 = vadd.f32 nan, %v18519_v38 }
0x31c9   :  { %16369 = vmatpush3.bf16.msra.mxu1 %v16366_v34  ;;  %v10674_v59 = vsub.f32 %v10672_v50, %v10673_v14  ;;  %v11339_v49 = vsub.f32 %v11195_v45, %v11219_v54 }
0x31ca   :  { %v16370_v60 = vpack.c.bf16 %v10661_v39, %v10654_v0  ;;  %v10667_v56 = vsub.f32 %v10665_v36, %v10666_v1  ;;  %v16398_v63 = vpack.c.bf16 %v10673_v14, %v10666_v1  ;;  %v10525_v36 = vadd.f32 nan, %v18516_v30  ;;  %v11198_v30 = vld [vmem:[%s18842_s10 + $0x28] sm:$0xff] }
0x31cb   :  { %v10675_v62 = vand.u32 4294901760, %v10674_v59  ;;  %v11332_v0 = vsub.f32 %v11194_v21, %v11216_v58 }
0x31cc   :  { %15315 = vmatmul.mubr.f32.vlgmr.msra.gmra.mrb[20].mxu1 %v18533_v57  ;;  %16371 = vmatprep.subr.bf16.mxu1 %v16370_v60  ;;  %v10668_v5 = vand.u32 4294901760, %v10667_v56 }
0x31cd   :  { %16373 = vmatpush3.bf16.msra.mxu1 %v16370_v60  ;;  %15317 = vmatprep.mubr.f32.mxu1 %v18537_v44  ;;  %v11197_v60 = vld [vmem:[%s18842_s10 + $0x20] sm:$0xff]  ;;  %v11333_v12 = vand.u32 4294901760, %v11332_v0 }
0x31ce   :  { %v16374_v7 = vpack.c.bf16 %v10675_v62, %v10668_v5  ;;  %v11228_v62 = vand.u32 4294901760, %v11198_v30  ;;  %v18611_v5 = vpop.eup %16997 }
0x31cf   :  { %v18615_v15 = vpop.eup %16999  ;;  %v11334_v21 = vsub.f32 %v11332_v0, %v11333_v12 }
0x31d0   :  { %15318 = vmatmul.mubr.f32.gmra.mrb[22].mxu1 %v18540_v2  ;;  %16375 = vmatprep.subr.bf16.mxu1 %v16374_v7 }
0x31d1   :  { %16377 = vmatpush3.bf16.msra.mxu1 %v16374_v7  ;;  %15328 = vmatprep.mubr.f32.mxu1 %v18456_v3 }
0x31d2   :  { %16379 = vmatprep.subr.bf16.mxu1 %v16378_v48 }
0x31d4   :  { %15329 = vmatmul.mubr.f32.vlgmr.msra.gmra.mrb[20].mxu1 %v18484_v10 }
0x31d5   :  { %16381 = vmatpush3.bf16.msra.mxu1 %v16378_v48  ;;  %15331 = vmatprep.mubr.f32.mxu1 %v18486_v16  ;;  %v11196_v48 = vld [vmem:[%s18842_s10 + $0x18] sm:$0xff] }
0x31d6   :  { %16383 = vmatprep.subr.bf16.mxu1 %v16382_v55  ;;  %v11222_v61 = vand.u32 4294901760, %v11196_v48 }
0x31d8   :  { %15332 = vmatmul.mubr.f32.gmra.mrb[22].mxu1 %v18492_v19  ;;  %v18596_v39 = vpack.c.bf16 %v11222_v61, %v11219_v54 }
0x31d9   :  { %16385 = vmatpush3.bf16.msra.mxu1 %v16382_v55  ;;  %15342 = vmatprep.mubr.f32.mxu1 %v18459_v53 }
0x31da   :  { %16387 = vmatprep.subr.bf16.mxu1 %v18513_v43 }
0x31dc   :  { %15343 = vmatmul.mubr.f32.vlgmr.msra.gmra.mrb[20].mxu1 %v18490_v18 }
0x31dd   :  { %16389 = vmatpush3.bf16.msra.mxu1 %v18513_v43  ;;  %15345 = vmatprep.mubr.f32.mxu1 %v18495_v51 }
0x31de   :  { %16391 = vmatprep.subr.bf16.mxu1 %v16366_v34 }
0x31e0   :  { %15346 = vmatmul.mubr.f32.gmra.mrb[22].mxu1 %v18507_v25 }
0x31e1   :  { %16393 = vmatpush3.bf16.msra.mxu1 %v16366_v34  ;;  %15356 = vmatprep.mubr.f32.mxu1 %v18462_v4 }
0x31e2   :  { %16395 = vmatprep.subr.bf16.mxu1 %v16394_v13 }
0x31e4   :  { %15357 = vmatmul.mubr.f32.vlgmr.msra.gmra.mrb[20].mxu1 %v18503_v24 }
0x31e5   :  { %16397 = vmatpush3.bf16.msra.mxu1 %v16394_v13  ;;  %15359 = vmatprep.mubr.f32.mxu1 %v18511_v27 }
0x31e6   :  { %16399 = vmatprep.subr.bf16.mxu1 %v16398_v63 }
0x31e8   :  { %15360 = vmatmul.mubr.f32.gmra.mrb[22].mxu1 %v18526_v47 }
0x31e9   :  { %16401 = vmatpush3.bf16.msra.mxu1 %v16398_v63  ;;  %15370 = vmatprep.mubr.f32.mxu1 %v18456_v3  ;;  %v11225_v63 = vand.u32 4294901760, %v11197_v60 }
0x31ea   :  { %16403 = vmatprep.subr.bf16.mxu1 %v18513_v43 }
0x31eb   :  { %v18618_v40 = vpack.c.bf16 %v11228_v62, %v11225_v63 }
0x31ec   :  { %15371 = vmatmul.mubr.f32.vlgmr.msra.gmra.mrb[20].mxu1 %v18484_v10 }
0x31ed   :  { %16405 = vmatpush3.bf16.msra.mxu1 %v18513_v43  ;;  %15373 = vmatprep.mubr.f32.mxu1 %v18486_v16 }
0x31ee   :  { %16407 = vmatprep.subr.bf16.mxu1 %v16366_v34 }
0x31f0   :  { %15374 = vmatmul.mubr.f32.gmra.mrb[22].mxu1 %v18492_v19 }
0x31f1   :  { %16409 = vmatpush3.bf16.msra.mxu1 %v16366_v34  ;;  %15384 = vmatprep.mubr.f32.mxu1 %v18456_v3 }
0x31f4   :  { %15385 = vmatmul.mubr.f32.vlgmr.msra.gmra.mrb[20].mxu1 %v18484_v10 }
0x31f5   :  { %15387 = vmatprep.mubr.f32.mxu1 %v18486_v16 }
0x31f8   :  { %15388 = vmatmul.mubr.f32.gmra.mrb[22].mxu1 %v18492_v19 }
0x31f9   :  { %15506 = vmatprep.mubr.f32.mxu1 %v18466_v6  ;;  %v11213_v6 = vand.u32 4294901760, %v11193_v17 }
0x31fb   :  { %v18580_v35 = vpack.c.bf16 %v11216_v58, %v11213_v6  ;;  %v11325_v1 = vsub.f32 %v11193_v17, %v11213_v6  ;;  %v11346_v6 = vsub.f32 %v11196_v48, %v11222_v61  ;;  %v11353_v48 = vsub.f32 %v11197_v60, %v11225_v63 }
0x31fd   :  { %16411 = vmatprep.subr.bf16.mxu0 %v18580_v35  ;;  %v11326_v11 = vand.u32 4294901760, %v11325_v1 }
0x31fe   :  { %16413 = vmatpush3.bf16.msra.mxu0 %v18580_v35 }
0x31ff   :  { %16415 = vmatprep.subr.bf16.mxu0 %v18596_v39  ;;  %v11327_v17 = vsub.f32 %v11325_v1, %v11326_v11 }
0x3202   :  { %16417 = vmatpush3.bf16.msra.mxu0 %v18596_v39 }
0x3203   :  { %16419 = vmatprep.subr.bf16.mxu0 %v18618_v40 }
0x3206   :  { %16421 = vmatpush3.bf16.msra.mxu0 %v18618_v40 }
0x32c7   :  { %v15386_v43 = vpop.f32.mrb[20].mxu1 }
0x32c8   :  { %v16607_v41 = vadd.f32 %v15386_v43, %v10513_v26  ;;  %v11132_v42 = vpop.f32.mrb[21].mxu1  ;;  %v11340_v26 = vand.u32 4294901760, %v11339_v49 }
0x32c9   :  { %v16608_v50 = vadd.f32 %v11132_v42, %v10507_v32  ;;  %v11335_v32 = vand.u32 4294901760, %v11334_v21 }
0x32ca   :  { %v11162_v34 = vadd.f32 %v16607_v41, %v13185_v29  ;;  %v11347_v41 = vand.u32 4294901760, %v11346_v6  ;;  %v11341_v45 = vsub.f32 %v11339_v49, %v11340_v26 }
0x32cb   :  { %v11161_v13 = vadd.f32 %v16608_v50, %v13185_v29  ;;  %v15389_v14 = vpop.f32.mrb[22].mxu1  ;;  %v11360_v50 = vsub.f32 %v11198_v30, %v11228_v62  ;;  %v16434_v62 = vpack.c.bf16 %v11332_v0, %v11325_v1 }
0x32cc   :  { %v18599_v9 = vmul.f32 %v18588_v20, %v11162_v34  ;;  %v16609_v55 = vadd.f32 %v15389_v14, %v10525_v36  ;;  %v11144_v59 = vpop.f32.mrb[23].mxu1  ;;  %v11348_v61 = vsub.f32 %v11346_v6, %v11347_v41  ;;  %v11342_v34 = vand.u32 4294901760, %v11341_v45 }
0x32cd   :  { %v16610_v38 = vadd.f32 %v11144_v59, %v10519_v37  ;;  %v18608_v56 = vmul.f32 %v18591_v22, %v11161_v13  ;;  %v11354_v36 = vand.u32 4294901760, %v11353_v48  ;;  %v11361_v37 = vand.u32 4294901760, %v11360_v50 }
0x32ce   :  { %v11170_v7 = vmax.f32 %v18599_v9, 0.0  ;;  %v11164_v8 = vadd.f32 %v16609_v55, %v13185_v29  ;;  %v11349_v13 = vand.u32 4294901760, %v11348_v61  ;;  %v18644_v21 = vpack.c.bf16 %v11347_v41, %v11340_v26 }
0x32cf   :  { %v11163_v23 = vadd.f32 %v16610_v38, %v13185_v29  ;;  %v11169_v28 = vmax.f32 %v18608_v56, 0.0  ;;  %v11328_v29 = vand.u32 4294901760, %v11327_v17  ;;  %v11355_v55 = vsub.f32 %v11353_v48, %v11354_v36 }
0x32d0   :  { %11179 = vrot.lane.b32.xlu0 %v11170_v7, %s17057_s28  ;;  %v18631_v43 = vmul.f32 %v18615_v15, %v11164_v8  ;;  %v11362_v59 = vsub.f32 %v11360_v50, %v11361_v37  ;;  %v16426_v38 = vpack.c.bf16 %v11349_v13, %v11342_v34  ;;  %v16438_v8 = vpack.c.bf16 %v11346_v6, %v11339_v49 }
0x32d1   :  { %v18624_v58 = vmul.f32 %v18611_v5, %v11163_v23  ;;  %11177 = vrot.lane.b32.xlu1 %v11169_v28, %s17057_s28  ;;  %v16422_v54 = vpack.c.bf16 %v11335_v32, %v11328_v29  ;;  %v11356_v60 = vand.u32 4294901760, %v11355_v55  ;;  %v16442_v23 = vpack.c.bf16 %v11360_v50, %v11353_v48 }
0x32d2   :  { %v18848_v14 = vmax.f32 %v18631_v43, 0.0  ;;  %v11363_v30 = vand.u32 4294901760, %v11362_v59  ;;  %v18642_v17 = vpack.c.bf16 %v11333_v12, %v11326_v11  ;;  %v18646_v29 = vpack.c.bf16 %v11361_v37, %v11354_v36 }
0x32d3   :  { %v18847_v42 = vmax.f32 %v18624_v58, 0.0  ;;  %16423 = vmatprep.subr.bf16.mxu0 %v16422_v54 }
0x32d4   :  { %v16430_v63 = vpack.c.bf16 %v11363_v30, %v11356_v60 }
0x32d5   :  { %11181 = vrot.lane.b32.xlu1 %v18847_v42, %s17057_s28 }
0x32d9   :  { %11183 = vrot.lane.b32.xlu1 %v18848_v14, %s17057_s28 }
0x3342   :  { %v11180_v32 = vpop.permute.xlu0 %11179 }
0x3343   :  { %v11190_v45 = vsel %vm718_vm7, %v18420_v31, %v11180_v32  ;;  %v11178_v61 = vpop.permute.xlu1 %11177 }
0x3344   :  { %v11204_v34 = vsel %vm11199_vm8, %v11190_v45, 0  ;;  %v11189_v13 = vsel %vm718_vm7, %v18422_v33, %v11178_v61 }
0x3345   :  { %v18653_v1 = vand.u32 4294901760, %v11204_v34  ;;  %v11201_v0 = vsel %vm11199_vm8, %v11189_v13, 0 }
0x3346   :  { %v18656_v11 = vand.u32 4294901760, %v11201_v0 }
0x3347   :  { %v11294_v12 = vsub.f32 %v11204_v34, %v18653_v1  ;;  %v11182_v49 = vpop.permute.xlu1 %11181 }
0x3348   :  { %v11284_v6 = vsub.f32 %v11201_v0, %v18656_v11  ;;  %v11191_v26 = vsel %vm718_vm7, %v18433_v52, %v11182_v49 }
0x3349   :  { %v11295_v41 = vand.u32 4294901760, %v11294_v12  ;;  %v11207_v48 = vsel %vm11199_vm8, %v11191_v26, 0 }
0x334a   :  { %v18663_v50 = vand.u32 4294901760, %v11207_v48  ;;  %v11285_v36 = vand.u32 4294901760, %v11284_v6 }
0x334b   :  { %v11296_v37 = vsub.f32 %v11294_v12, %v11295_v41  ;;  %v11184_v55 = vpop.permute.xlu1 %11183 }
0x334c   :  { %v11304_v59 = vsub.f32 %v11207_v48, %v18663_v50  ;;  %v11192_v60 = vsel %vm718_vm7, %v18430_v46, %v11184_v55  ;;  %v11286_v30 = vsub.f32 %v11284_v6, %v11285_v36 }
0x334d   :  { %v11210_v32 = vsel %vm11199_vm8, %v11192_v60, 0  ;;  %v11297_v13 = vand.u32 4294901760, %v11296_v37 }
0x334e   :  { %v11313_v45 = vand.u32 4294901760, %v11210_v32  ;;  %v11287_v61 = vand.u32 4294901760, %v11286_v30  ;;  %v11305_v34 = vand.u32 4294901760, %v11304_v59 }
0x3350   :  { %v11314_v0 = vsub.f32 %v11210_v32, %v11313_v45  ;;  %15402 = vmatprep.mubr.f32.mxu0 %v11287_v61  ;;  %v11306_v49 = vsub.f32 %v11304_v59, %v11305_v34 }
0x3351   :  { %15403 = vmatmul.mubr.f32.vlgmr.msra.gmra.mrb[26].mxu0 %v11297_v13 }
0x3352   :  { %16425 = vmatpush3.bf16.msra.mxu0 %v16422_v54  ;;  %v11307_v26 = vand.u32 4294901760, %v11306_v49  ;;  %v11315_v42 = vand.u32 4294901760, %v11314_v0 }
0x3353   :  { %16427 = vmatprep.subr.bf16.mxu0 %v16426_v38 }
0x3354   :  { %15405 = vmatprep.mubr.f32.mxu0 %v11307_v26  ;;  %v11316_v48 = vsub.f32 %v11314_v0, %v11315_v42 }
0x3356   :  { %16429 = vmatpush3.bf16.msra.mxu0 %v16426_v38  ;;  %v11317_v14 = vand.u32 4294901760, %v11316_v48 }
0x3357   :  { %16431 = vmatprep.subr.bf16.mxu0 %v16430_v63 }
0x3358   :  { %15406 = vmatmul.mubr.f32.gmra.mrb[28].mxu0 %v11317_v14 }
0x3359   :  { %15420 = vmatprep.mubr.f32.mxu0 %v18656_v11 }
0x335a   :  { %16433 = vmatpush3.bf16.msra.mxu0 %v16430_v63 }
0x335b   :  { %16435 = vmatprep.subr.bf16.mxu0 %v16434_v62 }
0x335d   :  { %15421 = vmatmul.mubr.f32.vlgmr.msra.gmra.mrb[26].mxu0 %v18653_v1 }
0x335e   :  { %15423 = vmatprep.mubr.f32.mxu0 %v18663_v50  ;;  %16437 = vmatpush3.bf16.msra.mxu0 %v16434_v62 }
0x335f   :  { %16439 = vmatprep.subr.bf16.mxu0 %v16438_v8 }
0x3361   :  { %15424 = vmatmul.mubr.f32.gmra.mrb[28].mxu0 %v11313_v45 }
0x3362   :  { %16441 = vmatpush3.bf16.msra.mxu0 %v16438_v8  ;;  %15438 = vmatprep.mubr.f32.mxu0 %v11284_v6 }
0x3363   :  { %16443 = vmatprep.subr.bf16.mxu0 %v16442_v23 }
0x3366   :  { %16445 = vmatpush3.bf16.msra.mxu0 %v16442_v23 }
0x3367   :  { %16447 = vmatprep.subr.bf16.mxu0 %v18580_v35 }
0x3369   :  { %15439 = vmatmul.mubr.f32.vlgmr.msra.gmra.mrb[26].mxu0 %v11294_v12 }
0x336a   :  { %15441 = vmatprep.mubr.f32.mxu0 %v11304_v59  ;;  %16449 = vmatpush3.bf16.msra.mxu0 %v18580_v35 }
0x336b   :  { %16451 = vmatprep.subr.bf16.mxu0 %v18596_v39 }
0x336d   :  { %15442 = vmatmul.mubr.f32.gmra.mrb[28].mxu0 %v11314_v0 }
0x336e   :  { %16453 = vmatpush3.bf16.msra.mxu0 %v18596_v39  ;;  %15456 = vmatprep.mubr.f32.mxu0 %v11285_v36 }
0x336f   :  { %16455 = vmatprep.subr.bf16.mxu0 %v18618_v40 }
0x3372   :  { %16457 = vmatpush3.bf16.msra.mxu0 %v18618_v40 }
0x3373   :  { %16459 = vmatprep.subr.bf16.mxu0 %v18642_v17 }
0x3375   :  { %15457 = vmatmul.mubr.f32.vlgmr.msra.gmra.mrb[26].mxu0 %v11295_v41 }
0x3376   :  { %15459 = vmatprep.mubr.f32.mxu0 %v11305_v34  ;;  %16461 = vmatpush3.bf16.msra.mxu0 %v18642_v17 }
0x3377   :  { %16463 = vmatprep.subr.bf16.mxu0 %v18644_v21 }
0x3379   :  { %15460 = vmatmul.mubr.f32.gmra.mrb[28].mxu0 %v11315_v42 }
0x337a   :  { %16465 = vmatpush3.bf16.msra.mxu0 %v18644_v21  ;;  %15474 = vmatprep.mubr.f32.mxu0 %v18656_v11 }
0x337b   :  { %16467 = vmatprep.subr.bf16.mxu0 %v18646_v29 }
0x337e   :  { %16469 = vmatpush3.bf16.msra.mxu0 %v18646_v29 }
0x337f   :  { %16471 = vmatprep.subr.bf16.mxu0 %v18580_v35 }
0x3381   :  { %15475 = vmatmul.mubr.f32.vlgmr.msra.gmra.mrb[26].mxu0 %v18653_v1 }
0x3382   :  { %15477 = vmatprep.mubr.f32.mxu0 %v18663_v50  ;;  %16473 = vmatpush3.bf16.msra.mxu0 %v18580_v35 }
0x3383   :  { %16475 = vmatprep.subr.bf16.mxu0 %v18596_v39 }
0x3385   :  { %15478 = vmatmul.mubr.f32.gmra.mrb[28].mxu0 %v11313_v45 }
0x3386   :  { %16477 = vmatpush3.bf16.msra.mxu0 %v18596_v39  ;;  %15492 = vmatprep.mubr.f32.mxu0 %v18656_v11 }
0x3387   :  { %16479 = vmatprep.subr.bf16.mxu0 %v18618_v40 }
0x338a   :  { %16481 = vmatpush3.bf16.msra.mxu0 %v18618_v40 }
0x338d   :  { %15493 = vmatmul.mubr.f32.vlgmr.msra.gmra.mrb[26].mxu0 %v18653_v1 }
0x338e   :  { %15495 = vmatprep.mubr.f32.mxu0 %v18663_v50 }
0x3391   :  { %15496 = vmatmul.mubr.f32.gmra.mrb[28].mxu0 %v11313_v45 }
0x3460   :  { %v18696_v42 = vpop.f32.mrb[26].mxu0 }
0x3461   :  { %v11856_v35 = vand.u32 4294901760, %v18696_v42  ;;  %v18699_v54 = vpop.f32.mrb[27].mxu0 }
0x3462   :  { %v11853_v14 = vand.u32 4294901760, %v18699_v54 }
0x3463   :  { %v11970_v39 = vsub.f32 %v18696_v42, %v11856_v35 }
0x3464   :  { %v18703_v38 = vpack.c.bf16 %v11856_v35, %v11853_v14  ;;  %v11963_v63 = vsub.f32 %v18699_v54, %v11853_v14  ;;  %v18706_v40 = vpop.f32.mrb[28].mxu0 }
0x3465   :  { %v11971_v62 = vand.u32 4294901760, %v11970_v39  ;;  %v11862_v8 = vand.u32 4294901760, %v18706_v40  ;;  %v18709_v23 = vpop.f32.mrb[29].mxu0 }
0x3466   :  { %v11964_v17 = vand.u32 4294901760, %v11963_v63  ;;  %v11859_v21 = vand.u32 4294901760, %v18709_v23  ;;  %16483 = vmatprep.subr.bf16.mxu1 %v18703_v38  ;;  %v16498_v29 = vpack.c.bf16 %v11970_v39, %v11963_v63  ;;  %v11843_v14 = vadd.f32 nan, %v18709_v23 }
0x3467   :  { %v11984_v1 = vsub.f32 %v18706_v40, %v11862_v8  ;;  %16485 = vmatpush3.bf16.msra.mxu1 %v18703_v38  ;;  %v11972_v11 = vsub.f32 %v11970_v39, %v11971_v62 }
0x3468   :  { %v16486_v12 = vpack.c.bf16 %v11862_v8, %v11859_v21  ;;  %v11977_v6 = vsub.f32 %v18709_v23, %v11859_v21  ;;  %v11965_v41 = vsub.f32 %v11963_v63, %v11964_v17  ;;  %v16514_v50 = vpack.c.bf16 %v11971_v62, %v11964_v17 }
0x3469   :  { %v11985_v36 = vand.u32 4294901760, %v11984_v1  ;;  %v11973_v37 = vand.u32 4294901760, %v11972_v11 }
0x346a   :  { %v11978_v55 = vand.u32 4294901760, %v11977_v6  ;;  %16487 = vmatprep.subr.bf16.mxu1 %v16486_v12  ;;  %v11966_v59 = vand.u32 4294901760, %v11965_v41  ;;  %v16502_v60 = vpack.c.bf16 %v11984_v1, %v11977_v6 }
0x346b   :  { %16489 = vmatpush3.bf16.msra.mxu1 %v16486_v12  ;;  %v11986_v30 = vsub.f32 %v11984_v1, %v11985_v36 }
0x346c   :  { %v16490_v32 = vpack.c.bf16 %v11973_v37, %v11966_v59  ;;  %v11979_v45 = vsub.f32 %v11977_v6, %v11978_v55  ;;  %v16518_v61 = vpack.c.bf16 %v11985_v36, %v11978_v55 }
0x346d   :  { %v11987_v34 = vand.u32 4294901760, %v11986_v30 }
0x346e   :  { %15507 = vmatmul.mubr.f32.vlgmr.msra.gmra.mrb[24].mxu1 %v18533_v57  ;;  %16491 = vmatprep.subr.bf16.mxu1 %v16490_v32  ;;  %v11980_v13 = vand.u32 4294901760, %v11979_v45 }
0x346f   :  { %16493 = vmatpush3.bf16.msra.mxu1 %v16490_v32  ;;  %15509 = vmatprep.mubr.f32.mxu1 %v18537_v44 }
0x3470   :  { %v16494_v0 = vpack.c.bf16 %v11987_v34, %v11980_v13 }
0x3472   :  { %15510 = vmatmul.mubr.f32.gmra.mrb[26].mxu1 %v18540_v2  ;;  %16495 = vmatprep.subr.bf16.mxu1 %v16494_v0 }
0x3473   :  { %16497 = vmatpush3.bf16.msra.mxu1 %v16494_v0  ;;  %15520 = vmatprep.mubr.f32.mxu1 %v18456_v3 }
0x3474   :  { %16499 = vmatprep.subr.bf16.mxu1 %v16498_v29 }
0x3476   :  { %15521 = vmatmul.mubr.f32.vlgmr.msra.gmra.mrb[24].mxu1 %v18484_v10 }
0x3477   :  { %16501 = vmatpush3.bf16.msra.mxu1 %v16498_v29  ;;  %15523 = vmatprep.mubr.f32.mxu1 %v18486_v16 }
0x3478   :  { %16503 = vmatprep.subr.bf16.mxu1 %v16502_v60 }
0x347a   :  { %15524 = vmatmul.mubr.f32.gmra.mrb[26].mxu1 %v18492_v19 }
0x347b   :  { %16505 = vmatpush3.bf16.msra.mxu1 %v16502_v60  ;;  %15534 = vmatprep.mubr.f32.mxu1 %v18459_v53  ;;  %v12510_v53 = vld [vmem:[%s18844_s12] sm:$0xff] }
0x347c   :  { %16507 = vmatprep.subr.bf16.mxu1 %v18703_v38 }
0x347e   :  { %15535 = vmatmul.mubr.f32.vlgmr.msra.gmra.mrb[24].mxu1 %v18490_v18  ;;  %v12534_v18 = vand.u32 4294901760, %v12510_v53 }
0x347f   :  { %16509 = vmatpush3.bf16.msra.mxu1 %v18703_v38  ;;  %15537 = vmatprep.mubr.f32.mxu1 %v18495_v51 }
0x3480   :  { %16511 = vmatprep.subr.bf16.mxu1 %v16486_v12 }
0x3482   :  { %15538 = vmatmul.mubr.f32.gmra.mrb[26].mxu1 %v18507_v25  ;;  %v13186_v25 = vld [vmem:[%s18843_s11] ss:$0 sm:$0xff]  ;;  %s17059_s11 = smov 16  }
0x3483   :  { %16513 = vmatpush3.bf16.msra.mxu1 %v16486_v12  ;;  %15548 = vmatprep.mubr.f32.mxu1 %v18462_v4  ;;  %v12511_v4 = vld [vmem:[%s18844_s12 + $0x8] sm:$0xff] }
0x3484   :  { %16515 = vmatprep.subr.bf16.mxu1 %v16514_v50  ;;  %v12537_v51 = vand.u32 4294901760, %v12511_v4 }
0x3486   :  { %15549 = vmatmul.mubr.f32.vlgmr.msra.gmra.mrb[24].mxu1 %v18503_v24  ;;  %v18749_v24 = vpack.c.bf16 %v12537_v51, %v12534_v18  ;;  %v12651_v17 = vsub.f32 %v12511_v4, %v12537_v51 }
0x3487   :  { %16517 = vmatpush3.bf16.msra.mxu1 %v16514_v50  ;;  %15551 = vmatprep.mubr.f32.mxu1 %v18511_v27  ;;  %v11831_v27 = vadd.f32 nan, %v18699_v54 }
0x3488   :  { %16519 = vmatprep.subr.bf16.mxu1 %v16518_v61  ;;  %16571 = vmatprep.subr.bf16.mxu0 %v18749_v24 }
0x3489   :  { %16573 = vmatpush3.bf16.msra.mxu0 %v18749_v24 }
0x348a   :  { %15552 = vmatmul.mubr.f32.gmra.mrb[26].mxu1 %v18526_v47 }
0x348b   :  { %16521 = vmatpush3.bf16.msra.mxu1 %v16518_v61  ;;  %15562 = vmatprep.mubr.f32.mxu1 %v18456_v3 }
0x348c   :  { %16523 = vmatprep.subr.bf16.mxu1 %v18703_v38 }
0x348e   :  { %15563 = vmatmul.mubr.f32.vlgmr.msra.gmra.mrb[24].mxu1 %v18484_v10 }
0x348f   :  { %16525 = vmatpush3.bf16.msra.mxu1 %v18703_v38  ;;  %15565 = vmatprep.mubr.f32.mxu1 %v18486_v16 }
0x3490   :  { %16527 = vmatprep.subr.bf16.mxu1 %v16486_v12 }
0x3492   :  { %15566 = vmatmul.mubr.f32.gmra.mrb[26].mxu1 %v18492_v19 }
0x3493   :  { %16529 = vmatpush3.bf16.msra.mxu1 %v16486_v12  ;;  %15576 = vmatprep.mubr.f32.mxu1 %v18456_v3  ;;  %v11837_v3 = vadd.f32 nan, %v18696_v42  ;;  %v11849_v42 = vadd.f32 nan, %v18706_v40  ;;  %v12644_v40 = vsub.f32 %v12510_v53, %v12534_v18  ;;  %v12652_v12 = vand.u32 4294901760, %v12651_v17 }
0x3494   :  { %16531 = vmatprep.subr.bf16.mxu1 %v18749_v24 }
0x3495   :  { %v12645_v11 = vand.u32 4294901760, %v12644_v40  ;;  %v12653_v50 = vsub.f32 %v12651_v17, %v12652_v12  ;;  %v16546_v0 = vpack.c.bf16 %v12651_v17, %v12644_v40 }
0x3496   :  { %15577 = vmatmul.mubr.f32.vlgmr.msra.gmra.mrb[24].mxu1 %v18484_v10  ;;  %v12512_v10 = vld [vmem:[%s18844_s12 + $0x10] sm:$0xff] }
0x3497   :  { %15579 = vmatprep.mubr.f32.mxu1 %v18486_v16  ;;  %v12513_v16 = vld [vmem:[%s18844_s12 + $0x18] sm:$0xff]  ;;  %v12540_v47 = vand.u32 4294901760, %v12512_v10  ;;  %16533 = vmatpush3.bf16.msra.mxu1 %v18749_v24  ;;  %v12646_v41 = vsub.f32 %v12644_v40, %v12645_v11  ;;  %v12654_v60 = vand.u32 4294901760, %v12653_v50  ;;  %v18778_v4 = vpack.c.bf16 %v12652_v12, %v12645_v11 }
0x3498   :  { %v12543_v57 = vand.u32 4294901760, %v12513_v16 }
0x3499   :  { %v12658_v36 = vsub.f32 %v12512_v10, %v12540_v47  ;;  %v12647_v59 = vand.u32 4294901760, %v12646_v41 }
0x349a   :  { %15580 = vmatmul.mubr.f32.gmra.mrb[26].mxu1 %v18492_v19  ;;  %v18766_v26 = vpack.c.bf16 %v12543_v57, %v12540_v47  ;;  %v12665_v37 = vsub.f32 %v12513_v16, %v12543_v57 }
0x349b   :  { %v12659_v30 = vand.u32 4294901760, %v12658_v36  ;;  %v16538_v45 = vpack.c.bf16 %v12654_v60, %v12647_v59 }
0x349c   :  { %16575 = vmatprep.subr.bf16.mxu0 %v18766_v26  ;;  %16535 = vmatprep.subr.bf16.mxu1 %v18766_v26  ;;  %v12666_v32 = vand.u32 4294901760, %v12665_v37  ;;  %v16550_v53 = vpack.c.bf16 %v12665_v37, %v12658_v36 }
0x349d   :  { %16577 = vmatpush3.bf16.msra.mxu0 %v18766_v26  ;;  %16537 = vmatpush3.bf16.msra.mxu1 %v18766_v26  ;;  %v12660_v61 = vsub.f32 %v12658_v36, %v12659_v30 }
0x349e   :  { %16539 = vmatprep.subr.bf16.mxu1 %v16538_v45  ;;  %v18780_v18 = vpack.c.bf16 %v12666_v32, %v12659_v30 }
0x349f   :  { %v12661_v34 = vand.u32 4294901760, %v12660_v61 }
0x3569   :  { %v15578_v19 = vpop.f32.mrb[24].mxu1 }
0x356a   :  { %v16611_v44 = vadd.f32 %v15578_v19, %v11837_v3  ;;  %v12444_v2 = vpop.f32.mrb[25].mxu1 }
0x356b   :  { %v16612_v49 = vadd.f32 %v12444_v2, %v11831_v27  ;;  %v18853_v2 = vmax.f32 %v18631_v43, 0.0 }
0x356c   :  { %v12474_v48 = vadd.f32 %v16611_v44, %v13186_v25 }
0x356d   :  { %v12473_v35 = vadd.f32 %v16612_v49, %v13186_v25  ;;  %v15581_v54 = vpop.f32.mrb[26].mxu1 }
0x356e   :  { %v12478_v39 = vmul.f32 %v18588_v20, %v12474_v48  ;;  %v16613_v38 = vadd.f32 %v15581_v54, %v11849_v42  ;;  %v12456_v63 = vpop.f32.mrb[27].mxu1 }
0x356f   :  { %v12477_v62 = vmul.f32 %v18591_v22, %v12473_v35  ;;  %v16614_v8 = vadd.f32 %v12456_v63, %v11843_v14 }
0x3570   :  { %v12482_v21 = vmax.f32 %v12478_v39, 0.0  ;;  %v12476_v29 = vadd.f32 %v16613_v38, %v13186_v25 }
0x3571   :  { %v12481_v23 = vmax.f32 %v12477_v62, 0.0  ;;  %v12475_v1 = vadd.f32 %v16614_v8, %v13186_v25 }
0x3572   :  { %v12480_v6 = vmul.f32 %v18615_v15, %v12476_v29  ;;  %12491 = vrot.lane.b32.xlu1 %v12482_v21, %s17059_s11  ;;  %v12667_v15 = vsub.f32 %v12665_v37, %v12666_v32 }
0x3573   :  { %v12479_v20 = vmul.f32 %v18611_v5, %v12475_v1  ;;  %12489 = vrot.lane.b32.xlu0 %v12481_v23, %s17059_s11 }
0x3574   :  { %v12484_v22 = vmax.f32 %v12480_v6, 0.0  ;;  %v12668_v13 = vand.u32 4294901760, %v12667_v15  ;;  %v13187_v6 = vld [vmem:[%s18845_s13] ss:$0 sm:$0xff]  ;;  %s17023_s13 = scalar_lea.vmem %s13157_s19, 512 }
0x3575   :  { %v12483_v55 = vmax.f32 %v12479_v20, 0.0  ;;  %p17024_p8 = scmp.ne.s32.totalorder %s13157_s19, %s17023_s13  ;;  %p17029_p10 = scmp.lt.s32.totalorder %s17023_s13, %s17023_s13 }
0x3576   :  { %12495 = vrot.lane.b32.xlu1 %v12484_v22, %s17059_s11  ;;  %v16542_v5 = vpack.c.bf16 %v12668_v13, %v12661_v34 }
0x3577   :  { %12493 = vrot.lane.b32.xlu0 %v12483_v55, %s17059_s11  ;;  %p17030_p11 = por %p17029_p10, %p17028_p9 }
0x3579   :  { %p17031_p12 = pnand %p17030_p11, %p17024_p8 }
0x35e4   :  { %v12492_v51 = vpop.permute.xlu1 %12491 }
0x35e5   :  { %v12503_v3 = vsel %vm12501_vm9, %v11170_v7, %v12492_v51  ;;  %v12490_v10 = vpop.permute.xlu0 %12489 }
0x35e6   :  { %v12507_v16 = vadd.f32 %v18420_v31, %v12503_v3  ;;  %v12502_v19 = vsel %vm12501_vm9, %v11169_v28, %v12490_v10  ;;  %v18854_v31 = vmax.f32 %v18624_v58, 0.0 }
0x35e7   :  { %v12506_v25 = vadd.f32 %v18422_v33, %v12502_v19 }
0x35e8   :  { %v12525_v27 = vsel %vm718_vm7, %v12507_v16, 0  ;;  %v12496_v47 = vpop.permute.xlu1 %12495 }
0x35e9   :  { %v12612_v57 = vand.u32 4294901760, %v12525_v27  ;;  %v12522_v44 = vsel %vm718_vm7, %v12506_v25, 0  ;;  %v12505_v49 = vsel %vm12501_vm9, %v18853_v2, %v12496_v47  ;;  %v12494_v48 = vpop.permute.xlu0 %12493 }
0x35ea   :  { %v12602_v9 = vand.u32 4294901760, %v12522_v44  ;;  %v12509_v7 = vadd.f32 %v18430_v46, %v12505_v49  ;;  %v12504_v42 = vsel %vm12501_vm9, %v18854_v31, %v12494_v48 }
0x35eb   :  { %v12613_v56 = vsub.f32 %v12525_v27, %v12612_v57  ;;  %v12508_v28 = vadd.f32 %v18433_v52, %v12504_v42 }
0x35ec   :  { %v12603_v33 = vsub.f32 %v12522_v44, %v12602_v9  ;;  %v12531_v35 = vsel %vm718_vm7, %v12509_v7, 0  ;;  %15660 = vmatprep.mubr.f32.mxu0 %v12602_v9 }
0x35ed   :  { %v12614_v54 = vand.u32 4294901760, %v12613_v56  ;;  %v12632_v14 = vand.u32 4294901760, %v12531_v35  ;;  %v12528_v39 = vsel %vm718_vm7, %v12508_v28, 0  ;;  %15661 = vmatmul.mubr.f32.vlgmr.msra.gmra.mrb[30].mxu0 %v12612_v57 }
0x35ee   :  { %v12622_v43 = vand.u32 4294901760, %v12528_v39  ;;  %v12604_v38 = vand.u32 4294901760, %v12603_v33 }
0x35ef   :  { %v12615_v63 = vsub.f32 %v12613_v56, %v12614_v54  ;;  %v12633_v62 = vsub.f32 %v12531_v35, %v12632_v14 }
0x35f0   :  { %v12623_v46 = vsub.f32 %v12528_v39, %v12622_v43  ;;  %v12605_v8 = vsub.f32 %v12603_v33, %v12604_v38 }
0x35f1   :  { %v12634_v58 = vand.u32 4294901760, %v12633_v62  ;;  %v12616_v21 = vand.u32 4294901760, %v12615_v63 }
0x35f2   :  { %v12606_v40 = vand.u32 4294901760, %v12605_v8  ;;  %v12624_v17 = vand.u32 4294901760, %v12623_v46 }
0x35f3   :  { %v12635_v52 = vsub.f32 %v12633_v62, %v12634_v58 }
0x35f4   :  { %15590 = vmatprep.mubr.f32.mxu1 %v12606_v40  ;;  %v12625_v29 = vsub.f32 %v12623_v46, %v12624_v17 }
0x35f5   :  { %15591 = vmatmul.mubr.f32.vlgmr.msra.gmra.mrb[28].mxu1 %v12616_v21  ;;  %v12636_v1 = vand.u32 4294901760, %v12635_v52 }
0x35f6   :  { %16541 = vmatpush3.bf16.msra.mxu1 %v16538_v45  ;;  %v12626_v23 = vand.u32 4294901760, %v12625_v29 }
0x35f7   :  { %16543 = vmatprep.subr.bf16.mxu1 %v16542_v5 }
0x35f8   :  { %15593 = vmatprep.mubr.f32.mxu1 %v12626_v23 }
0x35f9   :  { %15594 = vmatmul.mubr.f32.gmra.mrb[30].mxu1 %v12636_v1 }
0x35fa   :  { %16545 = vmatpush3.bf16.msra.mxu1 %v16542_v5  ;;  %15604 = vmatprep.mubr.f32.mxu1 %v12602_v9 }
0x35fb   :  { %16547 = vmatprep.subr.bf16.mxu1 %v16546_v0 }
0x35fd   :  { %15605 = vmatmul.mubr.f32.vlgmr.msra.gmra.mrb[28].mxu1 %v12612_v57 }
0x35fe   :  { %15607 = vmatprep.mubr.f32.mxu1 %v12622_v43  ;;  %16549 = vmatpush3.bf16.msra.mxu1 %v16546_v0 }
0x35ff   :  { %16551 = vmatprep.subr.bf16.mxu1 %v16550_v53 }
0x3601   :  { %15608 = vmatmul.mubr.f32.gmra.mrb[30].mxu1 %v12632_v14 }
0x3602   :  { %16553 = vmatpush3.bf16.msra.mxu1 %v16550_v53  ;;  %15618 = vmatprep.mubr.f32.mxu1 %v12603_v33 }
0x3603   :  { %16555 = vmatprep.subr.bf16.mxu1 %v18749_v24 }
0x3605   :  { %15619 = vmatmul.mubr.f32.vlgmr.msra.gmra.mrb[28].mxu1 %v12613_v56 }
0x3606   :  { %15621 = vmatprep.mubr.f32.mxu1 %v12623_v46  ;;  %16557 = vmatpush3.bf16.msra.mxu1 %v18749_v24 }
0x3607   :  { %16559 = vmatprep.subr.bf16.mxu1 %v18766_v26 }
0x3609   :  { %15622 = vmatmul.mubr.f32.gmra.mrb[30].mxu1 %v12633_v62 }
0x360a   :  { %16561 = vmatpush3.bf16.msra.mxu1 %v18766_v26  ;;  %15632 = vmatprep.mubr.f32.mxu1 %v12604_v38 }
0x360b   :  { %16563 = vmatprep.subr.bf16.mxu1 %v18778_v4 }
0x360d   :  { %15633 = vmatmul.mubr.f32.vlgmr.msra.gmra.mrb[28].mxu1 %v12614_v54 }
0x360e   :  { %15635 = vmatprep.mubr.f32.mxu1 %v12624_v17  ;;  %16565 = vmatpush3.bf16.msra.mxu1 %v18778_v4 }
0x360f   :  { %16567 = vmatprep.subr.bf16.mxu1 %v18780_v18 }
0x3611   :  { %15636 = vmatmul.mubr.f32.gmra.mrb[30].mxu1 %v12634_v58 }
0x3612   :  { %16569 = vmatpush3.bf16.msra.mxu1 %v18780_v18  ;;  %15646 = vmatprep.mubr.f32.mxu1 %v12602_v9 }
0x3613   :  { %16578 = vmatprep.subr.bf16.mxu1 %v18749_v24 }
0x3615   :  { %15647 = vmatmul.mubr.f32.vlgmr.msra.gmra.mrb[28].mxu1 %v12612_v57 }
0x3616   :  { %15649 = vmatprep.mubr.f32.mxu1 %v12622_v43  ;;  %16580 = vmatpush3.bf16.msra.mxu1 %v18749_v24 }
0x3617   :  { %16579 = vmatprep.subr.bf16.mxu1 %v18766_v26 }
0x3619   :  { %15650 = vmatmul.mubr.f32.gmra.mrb[30].mxu1 %v12632_v14 }
0x361a   :  { %15663 = vmatprep.mubr.f32.mxu1 %v12622_v43  ;;  %16581 = vmatpush3.bf16.msra.mxu1 %v18766_v26 }
0x3621   :  { %15664 = vmatmul.mubr.f32.vlgmr.msra.gmra.mrb[30].mxu1 %v12632_v14 }
0x36c0   :  { %v15662_v11 = vpop.f32.mrb[30].mxu0 }
0x36c1   :  { %v13125_v12 = vpop.f32.mrb[31].mxu0 }
0x36e8   :  { %v15648_v20 = vpop.f32.mrb[28].mxu1 }
0x36e9   :  { %v16615_v41 = vadd.f32 %v15648_v20, %v13187_v6  ;;  %v13032_v50 = vpop.f32.mrb[29].mxu1 }
0x36ea   :  { %v16617_v36 = vadd.f32 %v13187_v6, %v13032_v50 }
0x36eb   :  { %v16616_v22 = vadd.f32 %v16615_v41, %v15662_v11 }
0x36ec   :  { %v16618_v37 = vadd.f32 %v16617_v36, %v13125_v12 }
0x36ed   :  { %13148 = vst.msk [vmem:[#allocation6 + $0x8] sm:$0xff] %vm718_vm7, %v16616_v22 }
0x36ee   :  { %13147 = vst.msk [vmem:[#allocation6] sm:$0xff] %vm718_vm7, %v16618_v37 }
0x36f4   :  { %v15665_v24 = vpop.f32.mrb[30].mxu1 }
0x36f5   :  { %v16619_v26 = vadd.f32 %v15665_v24, %v13187_v6  ;;  %v13137_v55 = vpop.f32.mrb[31].mxu1 }
0x36f6   :  { %v16620_v59 = vadd.f32 %v13187_v6, %v13137_v55 }
0x36f7   :  { %13150 = vst.msk [vmem:[#allocation6 + $0x18] sm:$0xff] %vm718_vm7, %v16619_v26 }
0x36f8   :  { %13149 = vst.msk [vmem:[#allocation6 + $0x10] sm:$0xff] %vm718_vm7, %v16620_v59 }
0x36f9   :  { %17034 = shalt.err (!%p17031_p12)
}
0x36fa   :  { %s17035_s1 = scalar_lea.hbm %s18846_s14, 512 }
0x36fb   :  { %p17036_p13 = scmp.ne.s32.totalorder %s18846_s14, %s17035_s1  ;;  %p17039_p0 = scmp.lt.u32.totalorder %s17035_s1, %s18846_s14 }
0x36fd   :  { %p17041_p1 = pnand %p17039_p0, %p17036_p13 }
0x36ff   :  { %17044 = shalt.err (!%p17041_p1)
}
0x3700   :  { %13162 = dma.vmem_to_hbm [thread:$0]  %s13157_s19, 512, %s18846_s14, [#allocation5], %s17050_s23, %s17050_s23, %s17051_s24  }
0x3701   :  { %17047 = dma.done.wait [#allocation5], 512  }
0x3702   :  { %17048 = vsyncadd [#allocation5], 4294966784 }
0x3703   :  { %13166 = vsyncpa [#allocation4], 1 }
0x3704   :  { %13167 = vsyncpa [#allocation5], 1 }

</bundles_post_ra>
